<compile_context>
chip_gen: v7x
topology: tpu7x:2x2x1
jax: 0.10.0
libtpu: 0.0.40
codegen_flags: <defaults>
</compile_context>

<pallas_src>
import numpy as np
import jax
import jax.numpy as jnp
from jax import lax
from jax.experimental import pallas as pl
from jax.experimental.pallas import tpu as pltpu

NUM_HEADS = 4
_LN_EPS = 1e-5
_TRANS_B = (((1,), (1,)), ((), ()))   # contract last axes of both: A @ B.T
_MATMUL = (((1,), (0,)), ((), ()))    # standard A @ B

# colmat column layout (f32, per-channel / per-head columns)
_BV, _BO, _LNW, _LNB, _B1, _B2 = 0, 1, 2, 3, 4, 5
_U0 = 6     # 4 columns: U^T  (per-head fold of rowsum(Wk) through Wq)
_V0 = 10    # 4 columns: head-masked rowsum(Wv)
_NCOL = 14


def _erf(x):
    # lax.erf has no guaranteed Mosaic lowering; exp-based erfc polynomial
    # (Numerical Recipes), |rel err| < 1.2e-7 -- fp32-exact for our tolerance.
    a = jnp.abs(x)
    t = 1.0 / (1.0 + 0.5 * a)
    y = t * jnp.exp(
        -a * a - 1.26551223 + t * (1.00002368 + t * (0.37409196 + t * (
            0.09678418 + t * (-0.18628806 + t * (0.27886807 + t * (
                -1.13520398 + t * (1.48851587 + t * (-0.82215223 + t * 0.17087277)))))))))
    erf_abs = 1.0 - y
    return jnp.where(x >= 0, erf_abs, -erf_abs)


def _gelu_exact(x):
    # TODO(synk): on v5e, if the VALU slot saturates, switch the fast path to
    # tanh-approx GELU (EUP tanh) -- kept exact here to match nn.GELU() exactly.
    return 0.5 * x * (1.0 + _erf(x * (1.0 / np.sqrt(2.0))))


def _make_kernel(C, nkv, kv_tile, mm_dtype, approx_recip):
    scale = 1.0 / np.sqrt(float(C // NUM_HEADS))
    f32 = jnp.float32

    def kernel(img_ref, txt_ref, w_img_ref, w_txt_ref, wo_ref, w1_ref, w2_ref,
               colmat_ref, uconst_ref, out_ref):
        img = img_ref[0]             # (C, S+1)  mm_dtype (ones column appended)
        txt = txt_ref[0]             # (1, T+1)  mm_dtype
        cm = colmat_ref[...]         # (C, 14)   f32
        ucst = uconst_ref[...]       # (1, 4)    f32

        # img_proj(img).swapaxes(1,2), transposed to (C, l_tile); bias folded in.
        q_in = lax.dot_general(img, w_img_ref[...], _TRANS_B,
                               preferred_element_type=f32)        # (C, Lt)
        lt = q_in.shape[1]

        # text is repeated identically over channels before txt_proj, so k/v are
        # rank-1 over channels: only the (L,) kv profile is needed (bias folded).
        kv_col = lax.dot_general(w_txt_ref[...], txt, _TRANS_B,
                                 preferred_element_type=f32)      # (L, 1)
        kv_max = jnp.max(kv_col, axis=0, keepdims=True)           # (1, 1)
        kv_min = jnp.min(kv_col, axis=0, keepdims=True)

        # Rank-1 attention, per head h:
        #   scores[l, m] = scale * (a_h[l]*kv[m] + c_h[l]); c_h is constant over
        #   m and cancels in softmax.  a_h = q_in . U_h + const_h  (Wq folded).
        #   ctx_h[:, l]  = cbar_h[l] * wv_rs_h + bv_h  with
        #   cbar_h[l] = sum_m p[l,m]*kv[m]   (softmax rows sum to 1).
        ctx = jnp.zeros((C, lt), f32)
        for h in range(NUM_HEADS):
            u_col = cm[:, _U0 + h:_U0 + h + 1]                    # (C, 1)
            a_h = jnp.sum(q_in * u_col, axis=0, keepdims=True) + ucst[:, h:h + 1]
            a_s = a_h * scale                                     # (1, Lt)
            # row max of the scores is known up front -> no online rescaling
            m_cap = jnp.where(a_s >= 0.0, a_s * kv_max, a_s * kv_min)
            denom = jnp.zeros_like(a_s)
            numer = jnp.zeros_like(a_s)
            for t in range(nkv):                                  # kv tiles
                kvc = kv_col[t * kv_tile:(t + 1) * kv_tile, :]    # (kt, 1)
                p = jnp.exp(kvc * a_s - m_cap)                    # (kt, Lt)  EUP
                denom = denom + jnp.sum(p, axis=0, keepdims=True)
                numer = numer + jnp.sum(p * kvc, axis=0, keepdims=True)
            cbar = numer * pl.reciprocal(denom, approx=approx_recip)   # (1, Lt)
            ctx = ctx + cm[:, _V0 + h:_V0 + h + 1] * cbar         # (C,1)*(1,Lt)
        ctx = ctx + cm[:, _BV:_BV + 1]

        # output projection + residual (all in the (C, Lt) orientation)
        mha = lax.dot_general(wo_ref[...], ctx.astype(mm_dtype), _MATMUL,
                              preferred_element_type=f32) + cm[:, _BO:_BO + 1]
        x = mha + q_in

        # ff_self: LayerNorm over channels (sublane axis) -> Linear -> GELU -> Linear
        mean = jnp.mean(x, axis=0, keepdims=True)
        var = jnp.mean((x - mean) ** 2, axis=0, keepdims=True)
        xn = (x - mean) * lax.rsqrt(var + _LN_EPS)
        xn = xn * cm[:, _LNW:_LNW + 1] + cm[:, _LNB:_LNB + 1]
        h1 = lax.dot_general(w1_ref[...], xn.astype(mm_dtype), _MATMUL,
                             preferred_element_type=f32) + cm[:, _B1:_B1 + 1]
        g = _gelu_exact(h1)
        h2 = lax.dot_general(w2_ref[...], g.astype(mm_dtype), _MATMUL,
                             preferred_element_type=f32) + cm[:, _B2:_B2 + 1]
        y = h2 + x                                                # (C, Lt)

        # Already (C, L)-oriented: no transpose, lane-dense store.
        out_ref[0] = y.astype(out_ref.dtype)

    return kernel


def _pick_l_tile(L):
    if L % 128 != 0:
        return L
    for cand in (512, 256, 128):
        if L % cand == 0 and L > cand:
            return cand
    return L


def _pick_kv_tile(L):
    if L <= 1024:
        return L
    for cand in (1024, 512, 256, 128):
        if L % cand == 0:
            return cand
    return L


def cross_modal_mha(img, text, params, img_size, channels, hidden, text_size, *,
                    mm_dtype=jnp.bfloat16, approx_recip=True,
                    l_tile=None, kv_tile=None):
    """Forward of CrossModalMultiHeadAttention as a single pallas_call."""
    B = img.shape[0]
    C, S, L, T = channels, img_size * img_size, hidden, text_size
    # PyTorch module's final .view requires hidden_state == img_size**2.
    assert L == S, "hidden_state must equal img_size * img_size"
    assert C % NUM_HEADS == 0
    dh = C // NUM_HEADS

    if l_tile is None:
        l_tile = _pick_l_tile(L)
    assert L % l_tile == 0 and (l_tile == L or l_tile % 128 == 0)
    if kv_tile is None:
        kv_tile = _pick_kv_tile(L)
    assert L % kv_tile == 0 and (kv_tile == L or kv_tile % 8 == 0)
    n_lt = L // l_tile
    nkv = L // kv_tile

    f32 = jnp.float32
    # Fold projection biases into the matmuls via an appended ones column
    # (no lane-padded (L,1) bias blocks in HBM or VMEM).
    img_flat = img.reshape(B, C, S).astype(f32)
    img_aug = jnp.concatenate([img_flat, jnp.ones((B, C, 1), f32)],
                              axis=2).astype(mm_dtype)                       # (B,C,S+1)
    txt_aug = jnp.concatenate([text.reshape(B, T).astype(f32),
                               jnp.ones((B, 1), f32)], axis=1)
    txt_aug = txt_aug.reshape(B, 1, T + 1).astype(mm_dtype)                  # (B,1,T+1)
    w_img_aug = jnp.concatenate([params["w_img"], params["b_img"][:, None]],
                                axis=1).astype(mm_dtype)                     # (L, S+1)
    w_txt_aug = jnp.concatenate([params["w_txt"], params["b_txt"][:, None]],
                                axis=1).astype(mm_dtype)                     # (L, T+1)
    wo = params["wo"].astype(mm_dtype)
    w1 = params["w1"].astype(mm_dtype)
    w2 = params["w2"].astype(mm_dtype)

    # Rank-1 folds (host/XLA side, tiny).  k = kv*wk_rs + bk, v = kv*wv_rs + bv,
    # and q only enters through per-head dot products with wk_rs, so the whole
    # Wq projection folds into U (NUM_HEADS, C) plus a per-head constant; bk
    # cancels in the softmax.  Valid only because the module repeats the text
    # identically across channels before txt_proj.
    wk_rs = params["wk"].sum(axis=1)
    wv_rs = params["wv"].sum(axis=1)
    head_of = jnp.arange(C) // dh
    onehot = (head_of[None, :] == jnp.arange(NUM_HEADS)[:, None]).astype(f32)  # (4,C)
    masked_wk = onehot * wk_rs[None, :]
    u_mat = masked_wk @ params["wq"]                                  # (4, C)
    u_const = (masked_wk @ params["bq"]).reshape(1, NUM_HEADS).astype(f32)
    vsel_t = (onehot * wv_rs[None, :]).T                              # (C, 4)
    colmat = jnp.concatenate(
        [jnp.stack([params["bv"], params["bo"], params["lnw"], params["lnb"],
                    params["b1"], params["b2"]], axis=1),
         u_mat.T, vsel_t], axis=1).astype(f32)                        # (C, 14)

    kernel = _make_kernel(C, nkv, kv_tile, mm_dtype, approx_recip)
    grid = (B, n_lt)

    # Generation-aware VMEM limit: ~96 MiB on v5e/v6e, ~48 MiB on v7x.
    try:
        vmem_cap = pltpu.get_tpu_info().vmem_capacity_bytes
    except Exception:
        vmem_cap = 64 * 1024 * 1024
    vmem_limit = int(min(vmem_cap, 128 * 1024 * 1024) * 3 // 4)

    def run(use_buffered):
        def const_spec(shape):
            idx = lambda b, j: (0,) * len(shape)
            if use_buffered:
                # constant-index weights: single buffer, no useless double-buffering
                return pl.BlockSpec(shape, idx, pipeline_mode=pl.Buffered(1))
            return pl.BlockSpec(shape, idx)

        in_specs = [
            pl.BlockSpec((1, C, S + 1), lambda b, j: (b, 0, 0)),   # img (per batch)
            pl.BlockSpec((1, 1, T + 1), lambda b, j: (b, 0, 0)),   # text (per batch)
            pl.BlockSpec((l_tile, S + 1), lambda b, j: (j, 0)),    # w_img (per L tile)
            const_spec((L, T + 1)),                                # w_txt (resident)
            const_spec((C, C)),                                    # wo
            const_spec((C, C)),                                    # w1
            const_spec((C, C)),                                    # w2
            const_spec((C, _NCOL)),                                # packed columns
            const_spec((1, NUM_HEADS)),                            # per-head consts
        ]
        # TODO(synk): for L < 128 configs, flatten the output block to a single
        # lane-dense (1, C*L) slab to avoid masked partial stores.
        out_spec = pl.BlockSpec((1, C, l_tile), lambda b, j: (b, 0, j))
        return pl.pallas_call(
            kernel,
            out_shape=jax.ShapeDtypeStruct((B, C, L), f32),
            grid_spec=pl.GridSpec(grid=grid, in_specs=in_specs, out_specs=out_spec),
            compiler_params=pltpu.CompilerParams(
                dimension_semantics=("parallel", "parallel"),
                vmem_limit_bytes=vmem_limit),
        )(img_aug, txt_aug, w_img_aug, w_txt_aug, wo, w1, w2, colmat, u_const)

    try:
        out = run(True)
    except Exception:
        # pipeline_mode / Buffered(1) not supported by this JAX build: identical
        # kernel with default double-buffered weight blocks.
        out = run(False)

    # (B, C, L) is already channel-major; the final NCHW view is a free reshape.
    return out.reshape(B, C, img_size, img_size)


def reference(img, text, p, img_size, C):
    """Pure-JAX mirror of the PyTorch forward (for correctness check)."""
    B = img.shape[0]
    S = img_size * img_size
    x = img.reshape(B, C, S)
    q_in = jnp.swapaxes(x @ p["w_img"].T + p["b_img"], 1, 2)                 # (B, L, C)
    text_rep = jnp.broadcast_to(text[:, None, :], (B, C, text.shape[-1]))
    kv_in = jnp.swapaxes(text_rep @ p["w_txt"].T + p["b_txt"], 1, 2)         # (B, L, C)

    def lin(z, w, b):
        return z @ w.T + b

    q, k, v = lin(q_in, p["wq"], p["bq"]), lin(kv_in, p["wk"], p["bk"]), lin(kv_in, p["wv"], p["bv"])
    L = q.shape[1]
    dh = C // NUM_HEADS

    def split(z):
        return jnp.transpose(z.reshape(B, L, NUM_HEADS, dh), (0, 2, 1, 3))

    qh, kh, vh = split(q), split(k), split(v)
    scores = jnp.einsum("bhld,bhmd->bhlm", qh, kh) / np.sqrt(float(dh))
    attn = jax.nn.softmax(scores, axis=-1)
    ctx = jnp.einsum("bhlm,bhmd->bhld", attn, vh)
    ctx = jnp.transpose(ctx, (0, 2, 1, 3)).reshape(B, L, C)
    mha_out = lin(ctx, p["wo"], p["bo"])

    res = mha_out + q_in
    mean = jnp.mean(res, -1, keepdims=True)
    var = jnp.mean((res - mean) ** 2, -1, keepdims=True)
    ln = (res - mean) / jnp.sqrt(var + _LN_EPS) * p["lnw"] + p["lnb"]
    h = lin(ln, p["w1"], p["b1"])
    h = jax.nn.gelu(h, approximate=False)
    h = lin(h, p["w2"], p["b2"])
    out = h + res
    return jnp.swapaxes(out, 2, 1).reshape(B, C, img_size, img_size)


def _make_params(key, C, S, L, T):
    ks = jax.random.split(key, 18)

    def rnd(k, shape, scale=0.1):
        return scale * jax.random.normal(k, shape, dtype=jnp.float32)

    return dict(
        w_img=rnd(ks[0], (L, S)), b_img=rnd(ks[1], (L,)),
        w_txt=rnd(ks[2], (L, T)), b_txt=rnd(ks[3], (L,)),
        wq=rnd(ks[4], (C, C)), bq=rnd(ks[5], (C,)),
        wk=rnd(ks[6], (C, C)), bk=rnd(ks[7], (C,)),
        wv=rnd(ks[8], (C, C)), bv=rnd(ks[9], (C,)),
        wo=rnd(ks[10], (C, C)), bo=rnd(ks[11], (C,)),
        lnw=1.0 + rnd(ks[12], (C,)), lnb=rnd(ks[13], (C,)),
        w1=rnd(ks[14], (C, C)), b1=rnd(ks[15], (C,)),
        w2=rnd(ks[16], (C, C)), b2=rnd(ks[17], (C,)),
    )


if __name__ == "__main__":
    # ---- config 1: tiny shapes; exercises the multi-chunk kv loop (kv_tile=8)
    B, C, IMG, T = 2, 8, 4, 8
    HIDDEN = IMG * IMG     # final .view requires hidden_state == img_size**2
    k1, k2, k3 = jax.random.split(jax.random.PRNGKey(0), 3)
    params = _make_params(k1, C, IMG * IMG, HIDDEN, T)
    img = jax.random.normal(k2, (B, C, IMG, IMG), dtype=jnp.float32)
    text = jax.random.normal(k3, (B, T), dtype=jnp.float32)
    ref = reference(img, text, params, IMG, C)

    # exact path: f32 MXU operands + exact reciprocal
    out_exact = cross_modal_mha(img, text, params, IMG, C, HIDDEN, T,
                                mm_dtype=jnp.float32, approx_recip=False, kv_tile=8)
    out_exact = jax.block_until_ready(out_exact)
    np.testing.assert_allclose(np.asarray(out_exact), np.asarray(ref),
                               atol=5e-4, rtol=5e-4)

    # fast (default) path: bf16 MXU operands + EUP approx reciprocal
    out_fast = cross_modal_mha(img, text, params, IMG, C, HIDDEN, T, kv_tile=8)
    out_fast = jax.block_until_ready(out_fast)
    np.testing.assert_allclose(np.asarray(out_fast), np.asarray(ref),
                               atol=4e-2, rtol=4e-2)
    assert out_exact.shape == (B, C, IMG, IMG)

    # ---- config 2: larger L -> exercises the L-tile 'parallel' grid axis
    B2, C2, IMG2, T2 = 2, 8, 16, 8
    HIDDEN2 = IMG2 * IMG2          # 256 -> 2 L tiles of 128
    k4, k5, k6 = jax.random.split(jax.random.PRNGKey(1), 3)
    params2 = _make_params(k4, C2, IMG2 * IMG2, HIDDEN2, T2)
    img2 = jax.random.normal(k5, (B2, C2, IMG2, IMG2), dtype=jnp.float32)
    text2 = jax.random.normal(k6, (B2, T2), dtype=jnp.float32)
    ref2 = reference(img2, text2, params2, IMG2, C2)

    out2_exact = cross_modal_mha(img2, text2, params2, IMG2, C2, HIDDEN2, T2,
                                 mm_dtype=jnp.float32, approx_recip=False,
                                 l_tile=128, kv_tile=64)
    out2_exact = jax.block_until_ready(out2_exact)
    np.testing.assert_allclose(np.asarray(out2_exact), np.asarray(ref2),
                               atol=5e-4, rtol=5e-4)

    out2_fast = cross_modal_mha(img2, text2, params2, IMG2, C2, HIDDEN2, T2)
    out2_fast = jax.block_until_ready(out2_fast)
    np.testing.assert_allclose(np.asarray(out2_fast), np.asarray(ref2),
                               atol=4e-2, rtol=4e-2)
    assert out2_fast.shape == (B2, C2, IMG2, IMG2)

    print("KERNEL_OK")
</pallas_src>

<mosaic_0001>
module attributes {stable_mosaic.version = 11 : i64} {
  func.func @kernel(%arg0: i32, %arg1: i32, %arg2: memref<1x8x17xf32, #tpu.memory_space<vmem>>, %arg3: memref<1x1x9xf32, #tpu.memory_space<vmem>>, %arg4: memref<16x17xf32, #tpu.memory_space<vmem>>, %arg5: memref<16x9xf32, #tpu.memory_space<vmem>>, %arg6: memref<8x8xf32, #tpu.memory_space<vmem>>, %arg7: memref<8x8xf32, #tpu.memory_space<vmem>>, %arg8: memref<8x8xf32, #tpu.memory_space<vmem>>, %arg9: memref<8x14xf32, #tpu.memory_space<vmem>>, %arg10: memref<1x4xf32, #tpu.memory_space<vmem>>, %arg11: memref<1x8x16xf32, #tpu.memory_space<vmem>>) attributes {dimension_semantics = [#tpu.dimension_semantics<parallel>, #tpu.dimension_semantics<parallel>], iteration_bounds = array<i64: 2, 1>, scalar_prefetch = 0 : i64, scratch_operands = 0 : i64, tpu.core_type = #tpu.core_type<tc>, window_params = [{transform_indices = @transform_0, window_bounds = array<i64: 1, 8, 17>}, {transform_indices = @transform_1, window_bounds = array<i64: 1, 1, 9>}, {transform_indices = @transform_2, window_bounds = array<i64: 16, 17>}, {pipeline_mode = #tpu.pipeline_mode<synchronous>, transform_indices = @transform_3, window_bounds = array<i64: 16, 9>}, {pipeline_mode = #tpu.pipeline_mode<synchronous>, transform_indices = @transform_4, window_bounds = array<i64: 8, 8>}, {pipeline_mode = #tpu.pipeline_mode<synchronous>, transform_indices = @transform_5, window_bounds = array<i64: 8, 8>}, {pipeline_mode = #tpu.pipeline_mode<synchronous>, transform_indices = @transform_6, window_bounds = array<i64: 8, 8>}, {pipeline_mode = #tpu.pipeline_mode<synchronous>, transform_indices = @transform_7, window_bounds = array<i64: 8, 14>}, {pipeline_mode = #tpu.pipeline_mode<synchronous>, transform_indices = @transform_8, window_bounds = array<i64: 1, 4>}, {transform_indices = @transform_9, window_bounds = array<i64: 1, 8, 16>}]} {
    %c0 = arith.constant 0 : index
    %c0_0 = arith.constant 0 : index
    %c0_1 = arith.constant 0 : index
    %0 = vector.load %arg2[%c0, %c0_0, %c0_1] : memref<1x8x17xf32, #tpu.memory_space<vmem>>, vector<1x8x17xf32>
    %1 = vector.shape_cast %0 : vector<1x8x17xf32> to vector<8x17xf32>
    %c0_2 = arith.constant 0 : index
    %c0_3 = arith.constant 0 : index
    %c0_4 = arith.constant 0 : index
    %2 = vector.load %arg3[%c0_2, %c0_3, %c0_4] : memref<1x1x9xf32, #tpu.memory_space<vmem>>, vector<1x1x9xf32>
    %3 = vector.shape_cast %2 : vector<1x1x9xf32> to vector<1x9xf32>
    %c0_5 = arith.constant 0 : index
    %c0_6 = arith.constant 0 : index
    %4 = vector.load %arg9[%c0_5, %c0_6] : memref<8x14xf32, #tpu.memory_space<vmem>>, vector<8x14xf32>
    %c0_7 = arith.constant 0 : index
    %c0_8 = arith.constant 0 : index
    %5 = vector.load %arg10[%c0_7, %c0_8] : memref<1x4xf32, #tpu.memory_space<vmem>>, vector<1x4xf32>
    %c0_9 = arith.constant 0 : index
    %c0_10 = arith.constant 0 : index
    %6 = vector.load %arg4[%c0_9, %c0_10] : memref<16x17xf32, #tpu.memory_space<vmem>>, vector<16x17xf32>
    %cst = arith.constant dense<0.000000e+00> : vector<8x16xf32>
    %7 = tpu.matmul %1, %6, %cst {dimension_numbers = #tpu.dot_dimension_numbers<[1], [1], [0], [0], [0, 0, 1, 0], [], []>} : vector<8x17xf32>, vector<16x17xf32>, vector<8x16xf32> -> vector<8x16xf32>
    %c0_11 = arith.constant 0 : index
    %c0_12 = arith.constant 0 : index
    %8 = vector.load %arg5[%c0_11, %c0_12] : memref<16x9xf32, #tpu.memory_space<vmem>>, vector<16x9xf32>
    %cst_13 = arith.constant dense<0.000000e+00> : vector<16x1xf32>
    %9 = tpu.matmul %8, %3, %cst_13 {dimension_numbers = #tpu.dot_dimension_numbers<[1], [1], [0], [0], [0, 0, 1, 0], [], []>} : vector<16x9xf32>, vector<1x9xf32>, vector<16x1xf32> -> vector<16x1xf32>
    %cst_14 = arith.constant dense<0xFF800000> : vector<1xf32>
    %10 = vector.multi_reduction <maximumf>, %9, %cst_14 [0] : vector<16x1xf32> to vector<1xf32>
    %11 = vector.shape_cast %10 : vector<1xf32> to vector<1x1xf32>
    %cst_15 = arith.constant dense<0x7F800000> : vector<1xf32>
    %12 = vector.multi_reduction <minimumf>, %9, %cst_15 [0] : vector<16x1xf32> to vector<1xf32>
    %13 = vector.shape_cast %12 : vector<1xf32> to vector<1x1xf32>
    %cst_16 = arith.constant 0.000000e+00 : f32
    %14 = vector.broadcast %cst_16 : f32 to vector<8x16xf32>
    %15 = vector.extract_strided_slice %4 {offsets = [0, 6], sizes = [8, 1], strides = [1, 1]} : vector<8x14xf32> to vector<8x1xf32>
    %16 = vector.broadcast %15 : vector<8x1xf32> to vector<8x16xf32>
    %17 = arith.mulf %7, %16 : vector<8x16xf32>
    %cst_17 = arith.constant dense<0.000000e+00> : vector<16xf32>
    %18 = vector.multi_reduction <add>, %17, %cst_17 [0] : vector<8x16xf32> to vector<16xf32>
    %19 = vector.shape_cast %18 : vector<16xf32> to vector<1x16xf32>
    %20 = vector.extract_strided_slice %5 {offsets = [0, 0], sizes = [1, 1], strides = [1, 1]} : vector<1x4xf32> to vector<1x1xf32>
    %21 = vector.broadcast %20 : vector<1x1xf32> to vector<1x16xf32>
    %22 = arith.addf %19, %21 : vector<1x16xf32>
    %cst_18 = arith.constant 0.707106769 : f32
    %23 = vector.broadcast %cst_18 : f32 to vector<1x16xf32>
    %24 = arith.mulf %22, %23 : vector<1x16xf32>
    %cst_19 = arith.constant 0.000000e+00 : f32
    %25 = vector.broadcast %cst_19 : f32 to vector<1x16xf32>
    %26 = arith.cmpf oge, %24, %25 : vector<1x16xf32>
    %27 = vector.broadcast %11 : vector<1x1xf32> to vector<1x16xf32>
    %28 = arith.mulf %24, %27 : vector<1x16xf32>
    %29 = vector.broadcast %13 : vector<1x1xf32> to vector<1x16xf32>
    %30 = arith.mulf %24, %29 : vector<1x16xf32>
    %31 = arith.select %26, %28, %30 : vector<1x16xi1>, vector<1x16xf32>
    %cst_20 = arith.constant 0.000000e+00 : f32
    %32 = vector.broadcast %cst_20 : f32 to vector<1x16xf32>
    %cst_21 = arith.constant 0.000000e+00 : f32
    %33 = vector.broadcast %cst_21 : f32 to vector<1x16xf32>
    %34 = vector.extract_strided_slice %9 {offsets = [0, 0], sizes = [8, 1], strides = [1, 1]} : vector<16x1xf32> to vector<8x1xf32>
    %35 = vector.broadcast %34 : vector<8x1xf32> to vector<8x16xf32>
    %36 = vector.broadcast %24 : vector<1x16xf32> to vector<8x16xf32>
    %37 = arith.mulf %35, %36 : vector<8x16xf32>
    %38 = vector.broadcast %31 : vector<1x16xf32> to vector<8x16xf32>
    %39 = arith.subf %37, %38 : vector<8x16xf32>
    %40 = math.exp %39 : vector<8x16xf32>
    %cst_22 = arith.constant dense<0.000000e+00> : vector<16xf32>
    %41 = vector.multi_reduction <add>, %40, %cst_22 [0] : vector<8x16xf32> to vector<16xf32>
    %42 = vector.shape_cast %41 : vector<16xf32> to vector<1x16xf32>
    %43 = arith.addf %32, %42 : vector<1x16xf32>
    %44 = vector.broadcast %34 : vector<8x1xf32> to vector<8x16xf32>
    %45 = arith.mulf %40, %44 : vector<8x16xf32>
    %cst_23 = arith.constant dense<0.000000e+00> : vector<16xf32>
    %46 = vector.multi_reduction <add>, %45, %cst_23 [0] : vector<8x16xf32> to vector<16xf32>
    %47 = vector.shape_cast %46 : vector<16xf32> to vector<1x16xf32>
    %48 = arith.addf %33, %47 : vector<1x16xf32>
    %49 = vector.extract_strided_slice %9 {offsets = [8, 0], sizes = [8, 1], strides = [1, 1]} : vector<16x1xf32> to vector<8x1xf32>
    %50 = vector.broadcast %49 : vector<8x1xf32> to vector<8x16xf32>
    %51 = vector.broadcast %24 : vector<1x16xf32> to vector<8x16xf32>
    %52 = arith.mulf %50, %51 : vector<8x16xf32>
    %53 = vector.broadcast %31 : vector<1x16xf32> to vector<8x16xf32>
    %54 = arith.subf %52, %53 : vector<8x16xf32>
    %55 = math.exp %54 : vector<8x16xf32>
    %cst_24 = arith.constant dense<0.000000e+00> : vector<16xf32>
    %56 = vector.multi_reduction <add>, %55, %cst_24 [0] : vector<8x16xf32> to vector<16xf32>
    %57 = vector.shape_cast %56 : vector<16xf32> to vector<1x16xf32>
    %58 = arith.addf %43, %57 : vector<1x16xf32>
    %59 = vector.broadcast %49 : vector<8x1xf32> to vector<8x16xf32>
    %60 = arith.mulf %55, %59 : vector<8x16xf32>
    %cst_25 = arith.constant dense<0.000000e+00> : vector<16xf32>
    %61 = vector.multi_reduction <add>, %60, %cst_25 [0] : vector<8x16xf32> to vector<16xf32>
    %62 = vector.shape_cast %61 : vector<16xf32> to vector<1x16xf32>
    %63 = arith.addf %48, %62 : vector<1x16xf32>
    %64 = tpu.reciprocal %58 : vector<1x16xf32> -> vector<1x16xf32>
    %65 = arith.mulf %63, %64 : vector<1x16xf32>
    %66 = vector.extract_strided_slice %4 {offsets = [0, 10], sizes = [8, 1], strides = [1, 1]} : vector<8x14xf32> to vector<8x1xf32>
    %67 = vector.broadcast %66 : vector<8x1xf32> to vector<8x16xf32>
    %68 = vector.broadcast %65 : vector<1x16xf32> to vector<8x16xf32>
    %69 = arith.mulf %67, %68 : vector<8x16xf32>
    %70 = arith.addf %14, %69 : vector<8x16xf32>
    %71 = vector.extract_strided_slice %4 {offsets = [0, 7], sizes = [8, 1], strides = [1, 1]} : vector<8x14xf32> to vector<8x1xf32>
    %72 = vector.broadcast %71 : vector<8x1xf32> to vector<8x16xf32>
    %73 = arith.mulf %7, %72 : vector<8x16xf32>
    %cst_26 = arith.constant dense<0.000000e+00> : vector<16xf32>
    %74 = vector.multi_reduction <add>, %73, %cst_26 [0] : vector<8x16xf32> to vector<16xf32>
    %75 = vector.shape_cast %74 : vector<16xf32> to vector<1x16xf32>
    %76 = vector.extract_strided_slice %5 {offsets = [0, 1], sizes = [1, 1], strides = [1, 1]} : vector<1x4xf32> to vector<1x1xf32>
    %77 = vector.broadcast %76 : vector<1x1xf32> to vector<1x16xf32>
    %78 = arith.addf %75, %77 : vector<1x16xf32>
    %cst_27 = arith.constant 0.707106769 : f32
    %79 = vector.broadcast %cst_27 : f32 to vector<1x16xf32>
    %80 = arith.mulf %78, %79 : vector<1x16xf32>
    %cst_28 = arith.constant 0.000000e+00 : f32
    %81 = vector.broadcast %cst_28 : f32 to vector<1x16xf32>
    %82 = arith.cmpf oge, %80, %81 : vector<1x16xf32>
    %83 = vector.broadcast %11 : vector<1x1xf32> to vector<1x16xf32>
    %84 = arith.mulf %80, %83 : vector<1x16xf32>
    %85 = vector.broadcast %13 : vector<1x1xf32> to vector<1x16xf32>
    %86 = arith.mulf %80, %85 : vector<1x16xf32>
    %87 = arith.select %82, %84, %86 : vector<1x16xi1>, vector<1x16xf32>
    %cst_29 = arith.constant 0.000000e+00 : f32
    %88 = vector.broadcast %cst_29 : f32 to vector<1x16xf32>
    %cst_30 = arith.constant 0.000000e+00 : f32
    %89 = vector.broadcast %cst_30 : f32 to vector<1x16xf32>
    %90 = vector.extract_strided_slice %9 {offsets = [0, 0], sizes = [8, 1], strides = [1, 1]} : vector<16x1xf32> to vector<8x1xf32>
    %91 = vector.broadcast %90 : vector<8x1xf32> to vector<8x16xf32>
    %92 = vector.broadcast %80 : vector<1x16xf32> to vector<8x16xf32>
    %93 = arith.mulf %91, %92 : vector<8x16xf32>
    %94 = vector.broadcast %87 : vector<1x16xf32> to vector<8x16xf32>
    %95 = arith.subf %93, %94 : vector<8x16xf32>
    %96 = math.exp %95 : vector<8x16xf32>
    %cst_31 = arith.constant dense<0.000000e+00> : vector<16xf32>
    %97 = vector.multi_reduction <add>, %96, %cst_31 [0] : vector<8x16xf32> to vector<16xf32>
    %98 = vector.shape_cast %97 : vector<16xf32> to vector<1x16xf32>
    %99 = arith.addf %88, %98 : vector<1x16xf32>
    %100 = vector.broadcast %90 : vector<8x1xf32> to vector<8x16xf32>
    %101 = arith.mulf %96, %100 : vector<8x16xf32>
    %cst_32 = arith.constant dense<0.000000e+00> : vector<16xf32>
    %102 = vector.multi_reduction <add>, %101, %cst_32 [0] : vector<8x16xf32> to vector<16xf32>
    %103 = vector.shape_cast %102 : vector<16xf32> to vector<1x16xf32>
    %104 = arith.addf %89, %103 : vector<1x16xf32>
    %105 = vector.extract_strided_slice %9 {offsets = [8, 0], sizes = [8, 1], strides = [1, 1]} : vector<16x1xf32> to vector<8x1xf32>
    %106 = vector.broadcast %105 : vector<8x1xf32> to vector<8x16xf32>
    %107 = vector.broadcast %80 : vector<1x16xf32> to vector<8x16xf32>
    %108 = arith.mulf %106, %107 : vector<8x16xf32>
    %109 = vector.broadcast %87 : vector<1x16xf32> to vector<8x16xf32>
    %110 = arith.subf %108, %109 : vector<8x16xf32>
    %111 = math.exp %110 : vector<8x16xf32>
    %cst_33 = arith.constant dense<0.000000e+00> : vector<16xf32>
    %112 = vector.multi_reduction <add>, %111, %cst_33 [0] : vector<8x16xf32> to vector<16xf32>
    %113 = vector.shape_cast %112 : vector<16xf32> to vector<1x16xf32>
    %114 = arith.addf %99, %113 : vector<1x16xf32>
    %115 = vector.broadcast %105 : vector<8x1xf32> to vector<8x16xf32>
    %116 = arith.mulf %111, %115 : vector<8x16xf32>
    %cst_34 = arith.constant dense<0.000000e+00> : vector<16xf32>
    %117 = vector.multi_reduction <add>, %116, %cst_34 [0] : vector<8x16xf32> to vector<16xf32>
    %118 = vector.shape_cast %117 : vector<16xf32> to vector<1x16xf32>
    %119 = arith.addf %104, %118 : vector<1x16xf32>
    %120 = tpu.reciprocal %114 : vector<1x16xf32> -> vector<1x16xf32>
    %121 = arith.mulf %119, %120 : vector<1x16xf32>
    %122 = vector.extract_strided_slice %4 {offsets = [0, 11], sizes = [8, 1], strides = [1, 1]} : vector<8x14xf32> to vector<8x1xf32>
    %123 = vector.broadcast %122 : vector<8x1xf32> to vector<8x16xf32>
    %124 = vector.broadcast %121 : vector<1x16xf32> to vector<8x16xf32>
    %125 = arith.mulf %123, %124 : vector<8x16xf32>
    %126 = arith.addf %70, %125 : vector<8x16xf32>
    %127 = vector.extract_strided_slice %4 {offsets = [0, 8], sizes = [8, 1], strides = [1, 1]} : vector<8x14xf32> to vector<8x1xf32>
    %128 = vector.broadcast %127 : vector<8x1xf32> to vector<8x16xf32>
    %129 = arith.mulf %7, %128 : vector<8x16xf32>
    %cst_35 = arith.constant dense<0.000000e+00> : vector<16xf32>
    %130 = vector.multi_reduction <add>, %129, %cst_35 [0] : vector<8x16xf32> to vector<16xf32>
    %131 = vector.shape_cast %130 : vector<16xf32> to vector<1x16xf32>
    %132 = vector.extract_strided_slice %5 {offsets = [0, 2], sizes = [1, 1], strides = [1, 1]} : vector<1x4xf32> to vector<1x1xf32>
    %133 = vector.broadcast %132 : vector<1x1xf32> to vector<1x16xf32>
    %134 = arith.addf %131, %133 : vector<1x16xf32>
    %cst_36 = arith.constant 0.707106769 : f32
    %135 = vector.broadcast %cst_36 : f32 to vector<1x16xf32>
    %136 = arith.mulf %134, %135 : vector<1x16xf32>
    %cst_37 = arith.constant 0.000000e+00 : f32
    %137 = vector.broadcast %cst_37 : f32 to vector<1x16xf32>
    %138 = arith.cmpf oge, %136, %137 : vector<1x16xf32>
    %139 = vector.broadcast %11 : vector<1x1xf32> to vector<1x16xf32>
    %140 = arith.mulf %136, %139 : vector<1x16xf32>
    %141 = vector.broadcast %13 : vector<1x1xf32> to vector<1x16xf32>
    %142 = arith.mulf %136, %141 : vector<1x16xf32>
    %143 = arith.select %138, %140, %142 : vector<1x16xi1>, vector<1x16xf32>
    %cst_38 = arith.constant 0.000000e+00 : f32
    %144 = vector.broadcast %cst_38 : f32 to vector<1x16xf32>
    %cst_39 = arith.constant 0.000000e+00 : f32
    %145 = vector.broadcast %cst_39 : f32 to vector<1x16xf32>
    %146 = vector.extract_strided_slice %9 {offsets = [0, 0], sizes = [8, 1], strides = [1, 1]} : vector<16x1xf32> to vector<8x1xf32>
    %147 = vector.broadcast %146 : vector<8x1xf32> to vector<8x16xf32>
    %148 = vector.broadcast %136 : vector<1x16xf32> to vector<8x16xf32>
    %149 = arith.mulf %147, %148 : vector<8x16xf32>
    %150 = vector.broadcast %143 : vector<1x16xf32> to vector<8x16xf32>
    %151 = arith.subf %149, %150 : vector<8x16xf32>
    %152 = math.exp %151 : vector<8x16xf32>
    %cst_40 = arith.constant dense<0.000000e+00> : vector<16xf32>
    %153 = vector.multi_reduction <add>, %152, %cst_40 [0] : vector<8x16xf32> to vector<16xf32>
    %154 = vector.shape_cast %153 : vector<16xf32> to vector<1x16xf32>
    %155 = arith.addf %144, %154 : vector<1x16xf32>
    %156 = vector.broadcast %146 : vector<8x1xf32> to vector<8x16xf32>
    %157 = arith.mulf %152, %156 : vector<8x16xf32>
    %cst_41 = arith.constant dense<0.000000e+00> : vector<16xf32>
    %158 = vector.multi_reduction <add>, %157, %cst_41 [0] : vector<8x16xf32> to vector<16xf32>
    %159 = vector.shape_cast %158 : vector<16xf32> to vector<1x16xf32>
    %160 = arith.addf %145, %159 : vector<1x16xf32>
    %161 = vector.extract_strided_slice %9 {offsets = [8, 0], sizes = [8, 1], strides = [1, 1]} : vector<16x1xf32> to vector<8x1xf32>
    %162 = vector.broadcast %161 : vector<8x1xf32> to vector<8x16xf32>
    %163 = vector.broadcast %136 : vector<1x16xf32> to vector<8x16xf32>
    %164 = arith.mulf %162, %163 : vector<8x16xf32>
    %165 = vector.broadcast %143 : vector<1x16xf32> to vector<8x16xf32>
    %166 = arith.subf %164, %165 : vector<8x16xf32>
    %167 = math.exp %166 : vector<8x16xf32>
    %cst_42 = arith.constant dense<0.000000e+00> : vector<16xf32>
    %168 = vector.multi_reduction <add>, %167, %cst_42 [0] : vector<8x16xf32> to vector<16xf32>
    %169 = vector.shape_cast %168 : vector<16xf32> to vector<1x16xf32>
    %170 = arith.addf %155, %169 : vector<1x16xf32>
    %171 = vector.broadcast %161 : vector<8x1xf32> to vector<8x16xf32>
    %172 = arith.mulf %167, %171 : vector<8x16xf32>
    %cst_43 = arith.constant dense<0.000000e+00> : vector<16xf32>
    %173 = vector.multi_reduction <add>, %172, %cst_43 [0] : vector<8x16xf32> to vector<16xf32>
    %174 = vector.shape_cast %173 : vector<16xf32> to vector<1x16xf32>
    %175 = arith.addf %160, %174 : vector<1x16xf32>
    %176 = tpu.reciprocal %170 : vector<1x16xf32> -> vector<1x16xf32>
    %177 = arith.mulf %175, %176 : vector<1x16xf32>
    %178 = vector.extract_strided_slice %4 {offsets = [0, 12], sizes = [8, 1], strides = [1, 1]} : vector<8x14xf32> to vector<8x1xf32>
    %179 = vector.broadcast %178 : vector<8x1xf32> to vector<8x16xf32>
    %180 = vector.broadcast %177 : vector<1x16xf32> to vector<8x16xf32>
    %181 = arith.mulf %179, %180 : vector<8x16xf32>
    %182 = arith.addf %126, %181 : vector<8x16xf32>
    %183 = vector.extract_strided_slice %4 {offsets = [0, 9], sizes = [8, 1], strides = [1, 1]} : vector<8x14xf32> to vector<8x1xf32>
    %184 = vector.broadcast %183 : vector<8x1xf32> to vector<8x16xf32>
    %185 = arith.mulf %7, %184 : vector<8x16xf32>
    %cst_44 = arith.constant dense<0.000000e+00> : vector<16xf32>
    %186 = vector.multi_reduction <add>, %185, %cst_44 [0] : vector<8x16xf32> to vector<16xf32>
    %187 = vector.shape_cast %186 : vector<16xf32> to vector<1x16xf32>
    %188 = vector.extract_strided_slice %5 {offsets = [0, 3], sizes = [1, 1], strides = [1, 1]} : vector<1x4xf32> to vector<1x1xf32>
    %189 = vector.broadcast %188 : vector<1x1xf32> to vector<1x16xf32>
    %190 = arith.addf %187, %189 : vector<1x16xf32>
    %cst_45 = arith.constant 0.707106769 : f32
    %191 = vector.broadcast %cst_45 : f32 to vector<1x16xf32>
    %192 = arith.mulf %190, %191 : vector<1x16xf32>
    %cst_46 = arith.constant 0.000000e+00 : f32
    %193 = vector.broadcast %cst_46 : f32 to vector<1x16xf32>
    %194 = arith.cmpf oge, %192, %193 : vector<1x16xf32>
    %195 = vector.broadcast %11 : vector<1x1xf32> to vector<1x16xf32>
    %196 = arith.mulf %192, %195 : vector<1x16xf32>
    %197 = vector.broadcast %13 : vector<1x1xf32> to vector<1x16xf32>
    %198 = arith.mulf %192, %197 : vector<1x16xf32>
    %199 = arith.select %194, %196, %198 : vector<1x16xi1>, vector<1x16xf32>
    %cst_47 = arith.constant 0.000000e+00 : f32
    %200 = vector.broadcast %cst_47 : f32 to vector<1x16xf32>
    %cst_48 = arith.constant 0.000000e+00 : f32
    %201 = vector.broadcast %cst_48 : f32 to vector<1x16xf32>
    %202 = vector.extract_strided_slice %9 {offsets = [0, 0], sizes = [8, 1], strides = [1, 1]} : vector<16x1xf32> to vector<8x1xf32>
    %203 = vector.broadcast %202 : vector<8x1xf32> to vector<8x16xf32>
    %204 = vector.broadcast %192 : vector<1x16xf32> to vector<8x16xf32>
    %205 = arith.mulf %203, %204 : vector<8x16xf32>
    %206 = vector.broadcast %199 : vector<1x16xf32> to vector<8x16xf32>
    %207 = arith.subf %205, %206 : vector<8x16xf32>
    %208 = math.exp %207 : vector<8x16xf32>
    %cst_49 = arith.constant dense<0.000000e+00> : vector<16xf32>
    %209 = vector.multi_reduction <add>, %208, %cst_49 [0] : vector<8x16xf32> to vector<16xf32>
    %210 = vector.shape_cast %209 : vector<16xf32> to vector<1x16xf32>
    %211 = arith.addf %200, %210 : vector<1x16xf32>
    %212 = vector.broadcast %202 : vector<8x1xf32> to vector<8x16xf32>
    %213 = arith.mulf %208, %212 : vector<8x16xf32>
    %cst_50 = arith.constant dense<0.000000e+00> : vector<16xf32>
    %214 = vector.multi_reduction <add>, %213, %cst_50 [0] : vector<8x16xf32> to vector<16xf32>
    %215 = vector.shape_cast %214 : vector<16xf32> to vector<1x16xf32>
    %216 = arith.addf %201, %215 : vector<1x16xf32>
    %217 = vector.extract_strided_slice %9 {offsets = [8, 0], sizes = [8, 1], strides = [1, 1]} : vector<16x1xf32> to vector<8x1xf32>
    %218 = vector.broadcast %217 : vector<8x1xf32> to vector<8x16xf32>
    %219 = vector.broadcast %192 : vector<1x16xf32> to vector<8x16xf32>
    %220 = arith.mulf %218, %219 : vector<8x16xf32>
    %221 = vector.broadcast %199 : vector<1x16xf32> to vector<8x16xf32>
    %222 = arith.subf %220, %221 : vector<8x16xf32>
    %223 = math.exp %222 : vector<8x16xf32>
    %cst_51 = arith.constant dense<0.000000e+00> : vector<16xf32>
    %224 = vector.multi_reduction <add>, %223, %cst_51 [0] : vector<8x16xf32> to vector<16xf32>
    %225 = vector.shape_cast %224 : vector<16xf32> to vector<1x16xf32>
    %226 = arith.addf %211, %225 : vector<1x16xf32>
    %227 = vector.broadcast %217 : vector<8x1xf32> to vector<8x16xf32>
    %228 = arith.mulf %223, %227 : vector<8x16xf32>
    %cst_52 = arith.constant dense<0.000000e+00> : vector<16xf32>
    %229 = vector.multi_reduction <add>, %228, %cst_52 [0] : vector<8x16xf32> to vector<16xf32>
    %230 = vector.shape_cast %229 : vector<16xf32> to vector<1x16xf32>
    %231 = arith.addf %216, %230 : vector<1x16xf32>
    %232 = tpu.reciprocal %226 : vector<1x16xf32> -> vector<1x16xf32>
    %233 = arith.mulf %231, %232 : vector<1x16xf32>
    %234 = vector.extract_strided_slice %4 {offsets = [0, 13], sizes = [8, 1], strides = [1, 1]} : vector<8x14xf32> to vector<8x1xf32>
    %235 = vector.broadcast %234 : vector<8x1xf32> to vector<8x16xf32>
    %236 = vector.broadcast %233 : vector<1x16xf32> to vector<8x16xf32>
    %237 = arith.mulf %235, %236 : vector<8x16xf32>
    %238 = arith.addf %182, %237 : vector<8x16xf32>
    %239 = vector.extract_strided_slice %4 {offsets = [0, 0], sizes = [8, 1], strides = [1, 1]} : vector<8x14xf32> to vector<8x1xf32>
    %240 = vector.broadcast %239 : vector<8x1xf32> to vector<8x16xf32>
    %241 = arith.addf %238, %240 : vector<8x16xf32>
    %c0_53 = arith.constant 0 : index
    %c0_54 = arith.constant 0 : index
    %242 = vector.load %arg6[%c0_53, %c0_54] : memref<8x8xf32, #tpu.memory_space<vmem>>, vector<8x8xf32>
    %cst_55 = arith.constant dense<0.000000e+00> : vector<8x16xf32>
    %243 = tpu.matmul %242, %241, %cst_55 {dimension_numbers = #tpu.dot_dimension_numbers<[1], [0], [0], [1], [0, 0, 1, 1], [], []>} : vector<8x8xf32>, vector<8x16xf32>, vector<8x16xf32> -> vector<8x16xf32>
    %244 = vector.extract_strided_slice %4 {offsets = [0, 1], sizes = [8, 1], strides = [1, 1]} : vector<8x14xf32> to vector<8x1xf32>
    %245 = vector.broadcast %244 : vector<8x1xf32> to vector<8x16xf32>
    %246 = arith.addf %243, %245 : vector<8x16xf32>
    %247 = arith.addf %246, %7 : vector<8x16xf32>
    %cst_56 = arith.constant dense<0.000000e+00> : vector<16xf32>
    %248 = vector.multi_reduction <add>, %247, %cst_56 [0] : vector<8x16xf32> to vector<16xf32>
    %249 = vector.shape_cast %248 : vector<16xf32> to vector<1x16xf32>
    %cst_57 = arith.constant 8.000000e+00 : f32
    %250 = vector.broadcast %cst_57 : f32 to vector<1x16xf32>
    %251 = arith.divf %249, %250 : vector<1x16xf32>
    %252 = vector.broadcast %251 : vector<1x16xf32> to vector<8x16xf32>
    %253 = arith.subf %247, %252 : vector<8x16xf32>
    %254 = arith.mulf %253, %253 : vector<8x16xf32>
    %cst_58 = arith.constant dense<0.000000e+00> : vector<16xf32>
    %255 = vector.multi_reduction <add>, %254, %cst_58 [0] : vector<8x16xf32> to vector<16xf32>
    %256 = vector.shape_cast %255 : vector<16xf32> to vector<1x16xf32>
    %cst_59 = arith.constant 8.000000e+00 : f32
    %257 = vector.broadcast %cst_59 : f32 to vector<1x16xf32>
    %258 = arith.divf %256, %257 : vector<1x16xf32>
    %259 = vector.broadcast %251 : vector<1x16xf32> to vector<8x16xf32>
    %260 = arith.subf %247, %259 : vector<8x16xf32>
    %cst_60 = arith.constant 9.99999974E-6 : f32
    %261 = vector.broadcast %cst_60 : f32 to vector<1x16xf32>
    %262 = arith.addf %258, %261 : vector<1x16xf32>
    %263 = math.rsqrt %262 : vector<1x16xf32>
    %264 = vector.broadcast %263 : vector<1x16xf32> to vector<8x16xf32>
    %265 = arith.mulf %260, %264 : vector<8x16xf32>
    %266 = vector.extract_strided_slice %4 {offsets = [0, 2], sizes = [8, 1], strides = [1, 1]} : vector<8x14xf32> to vector<8x1xf32>
    %267 = vector.broadcast %266 : vector<8x1xf32> to vector<8x16xf32>
    %268 = arith.mulf %265, %267 : vector<8x16xf32>
    %269 = vector.extract_strided_slice %4 {offsets = [0, 3], sizes = [8, 1], strides = [1, 1]} : vector<8x14xf32> to vector<8x1xf32>
    %270 = vector.broadcast %269 : vector<8x1xf32> to vector<8x16xf32>
    %271 = arith.addf %268, %270 : vector<8x16xf32>
    %c0_61 = arith.constant 0 : index
    %c0_62 = arith.constant 0 : index
    %272 = vector.load %arg7[%c0_61, %c0_62] : memref<8x8xf32, #tpu.memory_space<vmem>>, vector<8x8xf32>
    %cst_63 = arith.constant dense<0.000000e+00> : vector<8x16xf32>
    %273 = tpu.matmul %272, %271, %cst_63 {dimension_numbers = #tpu.dot_dimension_numbers<[1], [0], [0], [1], [0, 0, 1, 1], [], []>} : vector<8x8xf32>, vector<8x16xf32>, vector<8x16xf32> -> vector<8x16xf32>
    %274 = vector.extract_strided_slice %4 {offsets = [0, 4], sizes = [8, 1], strides = [1, 1]} : vector<8x14xf32> to vector<8x1xf32>
    %275 = vector.broadcast %274 : vector<8x1xf32> to vector<8x16xf32>
    %276 = arith.addf %273, %275 : vector<8x16xf32>
    %cst_64 = arith.constant 5.000000e-01 : f32
    %277 = vector.broadcast %cst_64 : f32 to vector<8x16xf32>
    %278 = arith.mulf %277, %276 : vector<8x16xf32>
    %cst_65 = arith.constant 0.707106769 : f32
    %279 = vector.broadcast %cst_65 : f32 to vector<8x16xf32>
    %280 = arith.mulf %276, %279 : vector<8x16xf32>
    %281 = math.absf %280 : vector<8x16xf32>
    %cst_66 = arith.constant 5.000000e-01 : f32
    %282 = vector.broadcast %cst_66 : f32 to vector<8x16xf32>
    %283 = arith.mulf %282, %281 : vector<8x16xf32>
    %cst_67 = arith.constant 1.000000e+00 : f32
    %284 = vector.broadcast %cst_67 : f32 to vector<8x16xf32>
    %285 = arith.addf %284, %283 : vector<8x16xf32>
    %cst_68 = arith.constant 1.000000e+00 : f32
    %286 = vector.broadcast %cst_68 : f32 to vector<8x16xf32>
    %287 = arith.divf %286, %285 : vector<8x16xf32>
    %cst_69 = arith.constant 0.000000e+00 : f32
    %288 = vector.broadcast %cst_69 : f32 to vector<8x16xf32>
    %289 = arith.subf %288, %281 : vector<8x16xf32>
    %290 = arith.mulf %289, %281 : vector<8x16xf32>
    %cst_70 = arith.constant 1.26551223 : f32
    %291 = vector.broadcast %cst_70 : f32 to vector<8x16xf32>
    %292 = arith.subf %290, %291 : vector<8x16xf32>
    %cst_71 = arith.constant 0.170872763 : f32
    %293 = vector.broadcast %cst_71 : f32 to vector<8x16xf32>
    %294 = arith.mulf %287, %293 : vector<8x16xf32>
    %cst_72 = arith.constant -0.822152256 : f32
    %295 = vector.broadcast %cst_72 : f32 to vector<8x16xf32>
    %296 = arith.addf %295, %294 : vector<8x16xf32>
    %297 = arith.mulf %287, %296 : vector<8x16xf32>
    %cst_73 = arith.constant 1.48851585 : f32
    %298 = vector.broadcast %cst_73 : f32 to vector<8x16xf32>
    %299 = arith.addf %298, %297 : vector<8x16xf32>
    %300 = arith.mulf %287, %299 : vector<8x16xf32>
    %cst_74 = arith.constant -1.13520396 : f32
    %301 = vector.broadcast %cst_74 : f32 to vector<8x16xf32>
    %302 = arith.addf %301, %300 : vector<8x16xf32>
    %303 = arith.mulf %287, %302 : vector<8x16xf32>
    %cst_75 = arith.constant 0.278868079 : f32
    %304 = vector.broadcast %cst_75 : f32 to vector<8x16xf32>
    %305 = arith.addf %304, %303 : vector<8x16xf32>
    %306 = arith.mulf %287, %305 : vector<8x16xf32>
    %cst_76 = arith.constant -0.186288059 : f32
    %307 = vector.broadcast %cst_76 : f32 to vector<8x16xf32>
    %308 = arith.addf %307, %306 : vector<8x16xf32>
    %309 = arith.mulf %287, %308 : vector<8x16xf32>
    %cst_77 = arith.constant 0.0967841818 : f32
    %310 = vector.broadcast %cst_77 : f32 to vector<8x16xf32>
    %311 = arith.addf %310, %309 : vector<8x16xf32>
    %312 = arith.mulf %287, %311 : vector<8x16xf32>
    %cst_78 = arith.constant 0.374091953 : f32
    %313 = vector.broadcast %cst_78 : f32 to vector<8x16xf32>
    %314 = arith.addf %313, %312 : vector<8x16xf32>
    %315 = arith.mulf %287, %314 : vector<8x16xf32>
    %cst_79 = arith.constant 1.00002372 : f32
    %316 = vector.broadcast %cst_79 : f32 to vector<8x16xf32>
    %317 = arith.addf %316, %315 : vector<8x16xf32>
    %318 = arith.mulf %287, %317 : vector<8x16xf32>
    %319 = arith.addf %292, %318 : vector<8x16xf32>
    %320 = math.exp %319 : vector<8x16xf32>
    %321 = arith.mulf %287, %320 : vector<8x16xf32>
    %cst_80 = arith.constant 1.000000e+00 : f32
    %322 = vector.broadcast %cst_80 : f32 to vector<8x16xf32>
    %323 = arith.subf %322, %321 : vector<8x16xf32>
    %cst_81 = arith.constant 0.000000e+00 : f32
    %324 = vector.broadcast %cst_81 : f32 to vector<8x16xf32>
    %325 = arith.cmpf oge, %280, %324 : vector<8x16xf32>
    %cst_82 = arith.constant 0.000000e+00 : f32
    %326 = vector.broadcast %cst_82 : f32 to vector<8x16xf32>
    %327 = arith.subf %326, %323 : vector<8x16xf32>
    %328 = arith.select %325, %323, %327 : vector<8x16xi1>, vector<8x16xf32>
    %cst_83 = arith.constant 1.000000e+00 : f32
    %329 = vector.broadcast %cst_83 : f32 to vector<8x16xf32>
    %330 = arith.addf %329, %328 : vector<8x16xf32>
    %331 = arith.mulf %278, %330 : vector<8x16xf32>
    %c0_84 = arith.constant 0 : index
    %c0_85 = arith.constant 0 : index
    %332 = vector.load %arg8[%c0_84, %c0_85] : memref<8x8xf32, #tpu.memory_space<vmem>>, vector<8x8xf32>
    %cst_86 = arith.constant dense<0.000000e+00> : vector<8x16xf32>
    %333 = tpu.matmul %332, %331, %cst_86 {dimension_numbers = #tpu.dot_dimension_numbers<[1], [0], [0], [1], [0, 0, 1, 1], [], []>} : vector<8x8xf32>, vector<8x16xf32>, vector<8x16xf32> -> vector<8x16xf32>
    %334 = vector.extract_strided_slice %4 {offsets = [0, 5], sizes = [8, 1], strides = [1, 1]} : vector<8x14xf32> to vector<8x1xf32>
    %335 = vector.broadcast %334 : vector<8x1xf32> to vector<8x16xf32>
    %336 = arith.addf %333, %335 : vector<8x16xf32>
    %337 = arith.addf %336, %247 : vector<8x16xf32>
    %c0_87 = arith.constant 0 : index
    %c0_88 = arith.constant 0 : index
    %c0_89 = arith.constant 0 : index
    %338 = vector.load %arg11[%c0_87, %c0_88, %c0_89] : memref<1x8x16xf32, #tpu.memory_space<vmem>>, vector<1x8x16xf32>
    %339 = vector.shape_cast %338 : vector<1x8x16xf32> to vector<8x16xf32>
    %340 = vector.shape_cast %337 : vector<8x16xf32> to vector<1x8x16xf32>
    tpu.vector_store %arg11[%c0_87, %c0_88, %c0_89], %340 {strides = array<i32>} : memref<1x8x16xf32, #tpu.memory_space<vmem>>, vector<1x8x16xf32>,
    return
  }
  func.func @transform_0(%arg0: i32, %arg1: i32) -> (i32, i32, i32) {
    %c0_i32 = arith.constant 0 : i32
    %c0_i32_0 = arith.constant 0 : i32
    %c0_i32_1 = arith.constant 0 : i32
    return %arg0, %c0_i32, %c0_i32_0 : i32, i32, i32
  }
  func.func @transform_1(%arg0: i32, %arg1: i32) -> (i32, i32, i32) {
    %c0_i32 = arith.constant 0 : i32
    %c0_i32_0 = arith.constant 0 : i32
    %c0_i32_1 = arith.constant 0 : i32
    return %arg0, %c0_i32, %c0_i32_0 : i32, i32, i32
  }
  func.func @transform_2(%arg0: i32, %arg1: i32) -> (i32, i32) {
    %c0_i32 = arith.constant 0 : i32
    %c0_i32_0 = arith.constant 0 : i32
    return %arg1, %c0_i32 : i32, i32
  }
  func.func @transform_3(%arg0: i32, %arg1: i32) -> (i32, i32) {
    %c0_i32 = arith.constant 0 : i32
    %c0_i32_0 = arith.constant 0 : i32
    %c0_i32_1 = arith.constant 0 : i32
    return %c0_i32, %c0_i32_0 : i32, i32
  }
  func.func @transform_4(%arg0: i32, %arg1: i32) -> (i32, i32) {
    %c0_i32 = arith.constant 0 : i32
    %c0_i32_0 = arith.constant 0 : i32
    %c0_i32_1 = arith.constant 0 : i32
    return %c0_i32, %c0_i32_0 : i32, i32
  }
  func.func @transform_5(%arg0: i32, %arg1: i32) -> (i32, i32) {
    %c0_i32 = arith.constant 0 : i32
    %c0_i32_0 = arith.constant 0 : i32
    %c0_i32_1 = arith.constant 0 : i32
    return %c0_i32, %c0_i32_0 : i32, i32
  }
  func.func @transform_6(%arg0: i32, %arg1: i32) -> (i32, i32) {
    %c0_i32 = arith.constant 0 : i32
    %c0_i32_0 = arith.constant 0 : i32
    %c0_i32_1 = arith.constant 0 : i32
    return %c0_i32, %c0_i32_0 : i32, i32
  }
  func.func @transform_7(%arg0: i32, %arg1: i32) -> (i32, i32) {
    %c0_i32 = arith.constant 0 : i32
    %c0_i32_0 = arith.constant 0 : i32
    %c0_i32_1 = arith.constant 0 : i32
    return %c0_i32, %c0_i32_0 : i32, i32
  }
  func.func @transform_8(%arg0: i32, %arg1: i32) -> (i32, i32) {
    %c0_i32 = arith.constant 0 : i32
    %c0_i32_0 = arith.constant 0 : i32
    %c0_i32_1 = arith.constant 0 : i32
    return %c0_i32, %c0_i32_0 : i32, i32
  }
  func.func @transform_9(%arg0: i32, %arg1: i32) -> (i32, i32, i32) {
    %c0_i32 = arith.constant 0 : i32
    %c0_i32_0 = arith.constant 0 : i32
    return %arg0, %c0_i32, %arg1 : i32, i32, i32
  }
}

module attributes {stable_mosaic.version = 11 : i64} {
  func.func @kernel(%arg0: i32, %arg1: i32, %arg2: memref<1x8x17xf32, #tpu.memory_space<vmem>>, %arg3: memref<1x1x9xf32, #tpu.memory_space<vmem>>, %arg4: memref<16x17xf32, #tpu.memory_space<vmem>>, %arg5: memref<16x9xf32, #tpu.memory_space<vmem>>, %arg6: memref<8x8xf32, #tpu.memory_space<vmem>>, %arg7: memref<8x8xf32, #tpu.memory_space<vmem>>, %arg8: memref<8x8xf32, #tpu.memory_space<vmem>>, %arg9: memref<8x14xf32, #tpu.memory_space<vmem>>, %arg10: memref<1x4xf32, #tpu.memory_space<vmem>>, %arg11: memref<1x8x16xf32, #tpu.memory_space<vmem>>) attributes {dimension_semantics = [#tpu.dimension_semantics<parallel>, #tpu.dimension_semantics<parallel>], iteration_bounds = array<i64: 2, 1>, scalar_prefetch = 0 : i64, scratch_operands = 0 : i64, tpu.core_type = #tpu.core_type<tc>, window_params = [{transform_indices = @transform_0, window_bounds = array<i64: 1, 8, 17>}, {transform_indices = @transform_1, window_bounds = array<i64: 1, 1, 9>}, {transform_indices = @transform_2, window_bounds = array<i64: 16, 17>}, {pipeline_mode = #tpu.pipeline_mode<synchronous>, transform_indices = @transform_3, window_bounds = array<i64: 16, 9>}, {pipeline_mode = #tpu.pipeline_mode<synchronous>, transform_indices = @transform_4, window_bounds = array<i64: 8, 8>}, {pipeline_mode = #tpu.pipeline_mode<synchronous>, transform_indices = @transform_5, window_bounds = array<i64: 8, 8>}, {pipeline_mode = #tpu.pipeline_mode<synchronous>, transform_indices = @transform_6, window_bounds = array<i64: 8, 8>}, {pipeline_mode = #tpu.pipeline_mode<synchronous>, transform_indices = @transform_7, window_bounds = array<i64: 8, 14>}, {pipeline_mode = #tpu.pipeline_mode<synchronous>, transform_indices = @transform_8, window_bounds = array<i64: 1, 4>}, {transform_indices = @transform_9, window_bounds = array<i64: 1, 8, 16>}]} {
    %c0 = arith.constant 0 : index
    %c0_0 = arith.constant 0 : index
    %c0_1 = arith.constant 0 : index
    %0 = vector.load %arg2[%c0, %c0_0, %c0_1] : memref<1x8x17xf32, #tpu.memory_space<vmem>>, vector<1x8x17xf32>
    %1 = vector.shape_cast %0 : vector<1x8x17xf32> to vector<8x17xf32>
    %c0_2 = arith.constant 0 : index
    %c0_3 = arith.constant 0 : index
    %c0_4 = arith.constant 0 : index
    %2 = vector.load %arg3[%c0_2, %c0_3, %c0_4] : memref<1x1x9xf32, #tpu.memory_space<vmem>>, vector<1x1x9xf32>
    %3 = vector.shape_cast %2 : vector<1x1x9xf32> to vector<1x9xf32>
    %c0_5 = arith.constant 0 : index
    %c0_6 = arith.constant 0 : index
    %4 = vector.load %arg9[%c0_5, %c0_6] : memref<8x14xf32, #tpu.memory_space<vmem>>, vector<8x14xf32>
    %c0_7 = arith.constant 0 : index
    %c0_8 = arith.constant 0 : index
    %5 = vector.load %arg10[%c0_7, %c0_8] : memref<1x4xf32, #tpu.memory_space<vmem>>, vector<1x4xf32>
    %c0_9 = arith.constant 0 : index
    %c0_10 = arith.constant 0 : index
    %6 = vector.load %arg4[%c0_9, %c0_10] : memref<16x17xf32, #tpu.memory_space<vmem>>, vector<16x17xf32>
    %cst = arith.constant dense<0.000000e+00> : vector<8x16xf32>
    %7 = tpu.matmul %1, %6, %cst {dimension_numbers = #tpu.dot_dimension_numbers<[1], [1], [0], [0], [0, 0, 1, 0], [], []>} : vector<8x17xf32>, vector<16x17xf32>, vector<8x16xf32> -> vector<8x16xf32>
    %c0_11 = arith.constant 0 : index
    %c0_12 = arith.constant 0 : index
    %8 = vector.load %arg5[%c0_11, %c0_12] : memref<16x9xf32, #tpu.memory_space<vmem>>, vector<16x9xf32>
    %cst_13 = arith.constant dense<0.000000e+00> : vector<16x1xf32>
    %9 = tpu.matmul %8, %3, %cst_13 {dimension_numbers = #tpu.dot_dimension_numbers<[1], [1], [0], [0], [0, 0, 1, 0], [], []>} : vector<16x9xf32>, vector<1x9xf32>, vector<16x1xf32> -> vector<16x1xf32>
    %cst_14 = arith.constant dense<0xFF800000> : vector<1xf32>
    %10 = vector.multi_reduction <maximumf>, %9, %cst_14 [0] : vector<16x1xf32> to vector<1xf32>
    %11 = vector.shape_cast %10 : vector<1xf32> to vector<1x1xf32>
    %cst_15 = arith.constant dense<0x7F800000> : vector<1xf32>
    %12 = vector.multi_reduction <minimumf>, %9, %cst_15 [0] : vector<16x1xf32> to vector<1xf32>
    %13 = vector.shape_cast %12 : vector<1xf32> to vector<1x1xf32>
    %cst_16 = arith.constant 0.000000e+00 : f32
    %14 = vector.broadcast %cst_16 : f32 to vector<8x16xf32>
    %15 = vector.extract_strided_slice %4 {offsets = [0, 6], sizes = [8, 1], strides = [1, 1]} : vector<8x14xf32> to vector<8x1xf32>
    %16 = vector.broadcast %15 : vector<8x1xf32> to vector<8x16xf32>
    %17 = arith.mulf %7, %16 : vector<8x16xf32>
    %cst_17 = arith.constant dense<0.000000e+00> : vector<16xf32>
    %18 = vector.multi_reduction <add>, %17, %cst_17 [0] : vector<8x16xf32> to vector<16xf32>
    %19 = vector.shape_cast %18 : vector<16xf32> to vector<1x16xf32>
    %20 = vector.extract_strided_slice %5 {offsets = [0, 0], sizes = [1, 1], strides = [1, 1]} : vector<1x4xf32> to vector<1x1xf32>
    %21 = vector.broadcast %20 : vector<1x1xf32> to vector<1x16xf32>
    %22 = arith.addf %19, %21 : vector<1x16xf32>
    %cst_18 = arith.constant 0.707106769 : f32
    %23 = vector.broadcast %cst_18 : f32 to vector<1x16xf32>
    %24 = arith.mulf %22, %23 : vector<1x16xf32>
    %cst_19 = arith.constant 0.000000e+00 : f32
    %25 = vector.broadcast %cst_19 : f32 to vector<1x16xf32>
    %26 = arith.cmpf oge, %24, %25 : vector<1x16xf32>
    %27 = vector.broadcast %11 : vector<1x1xf32> to vector<1x16xf32>
    %28 = arith.mulf %24, %27 : vector<1x16xf32>
    %29 = vector.broadcast %13 : vector<1x1xf32> to vector<1x16xf32>
    %30 = arith.mulf %24, %29 : vector<1x16xf32>
    %31 = arith.select %26, %28, %30 : vector<1x16xi1>, vector<1x16xf32>
    %cst_20 = arith.constant 0.000000e+00 : f32
    %32 = vector.broadcast %cst_20 : f32 to vector<1x16xf32>
    %cst_21 = arith.constant 0.000000e+00 : f32
    %33 = vector.broadcast %cst_21 : f32 to vector<1x16xf32>
    %34 = vector.extract_strided_slice %9 {offsets = [0, 0], sizes = [8, 1], strides = [1, 1]} : vector<16x1xf32> to vector<8x1xf32>
    %35 = vector.broadcast %34 : vector<8x1xf32> to vector<8x16xf32>
    %36 = vector.broadcast %24 : vector<1x16xf32> to vector<8x16xf32>
    %37 = arith.mulf %35, %36 : vector<8x16xf32>
    %38 = vector.broadcast %31 : vector<1x16xf32> to vector<8x16xf32>
    %39 = arith.subf %37, %38 : vector<8x16xf32>
    %40 = math.exp %39 : vector<8x16xf32>
    %cst_22 = arith.constant dense<0.000000e+00> : vector<16xf32>
    %41 = vector.multi_reduction <add>, %40, %cst_22 [0] : vector<8x16xf32> to vector<16xf32>
    %42 = vector.shape_cast %41 : vector<16xf32> to vector<1x16xf32>
    %43 = arith.addf %32, %42 : vector<1x16xf32>
    %44 = vector.broadcast %34 : vector<8x1xf32> to vector<8x16xf32>
    %45 = arith.mulf %40, %44 : vector<8x16xf32>
    %cst_23 = arith.constant dense<0.000000e+00> : vector<16xf32>
    %46 = vector.multi_reduction <add>, %45, %cst_23 [0] : vector<8x16xf32> to vector<16xf32>
    %47 = vector.shape_cast %46 : vector<16xf32> to vector<1x16xf32>
    %48 = arith.addf %33, %47 : vector<1x16xf32>
    %49 = vector.extract_strided_slice %9 {offsets = [8, 0], sizes = [8, 1], strides = [1, 1]} : vector<16x1xf32> to vector<8x1xf32>
    %50 = vector.broadcast %49 : vector<8x1xf32> to vector<8x16xf32>
    %51 = vector.broadcast %24 : vector<1x16xf32> to vector<8x16xf32>
    %52 = arith.mulf %50, %51 : vector<8x16xf32>
    %53 = vector.broadcast %31 : vector<1x16xf32> to vector<8x16xf32>
    %54 = arith.subf %52, %53 : vector<8x16xf32>
    %55 = math.exp %54 : vector<8x16xf32>
    %cst_24 = arith.constant dense<0.000000e+00> : vector<16xf32>
    %56 = vector.multi_reduction <add>, %55, %cst_24 [0] : vector<8x16xf32> to vector<16xf32>
    %57 = vector.shape_cast %56 : vector<16xf32> to vector<1x16xf32>
    %58 = arith.addf %43, %57 : vector<1x16xf32>
    %59 = vector.broadcast %49 : vector<8x1xf32> to vector<8x16xf32>
    %60 = arith.mulf %55, %59 : vector<8x16xf32>
    %cst_25 = arith.constant dense<0.000000e+00> : vector<16xf32>
    %61 = vector.multi_reduction <add>, %60, %cst_25 [0] : vector<8x16xf32> to vector<16xf32>
    %62 = vector.shape_cast %61 : vector<16xf32> to vector<1x16xf32>
    %63 = arith.addf %48, %62 : vector<1x16xf32>
    %64 = tpu.reciprocal %58 : vector<1x16xf32> -> vector<1x16xf32>
    %65 = arith.mulf %63, %64 : vector<1x16xf32>
    %66 = vector.extract_strided_slice %4 {offsets = [0, 10], sizes = [8, 1], strides = [1, 1]} : vector<8x14xf32> to vector<8x1xf32>
    %67 = vector.broadcast %66 : vector<8x1xf32> to vector<8x16xf32>
    %68 = vector.broadcast %65 : vector<1x16xf32> to vector<8x16xf32>
    %69 = arith.mulf %67, %68 : vector<8x16xf32>
    %70 = arith.addf %14, %69 : vector<8x16xf32>
    %71 = vector.extract_strided_slice %4 {offsets = [0, 7], sizes = [8, 1], strides = [1, 1]} : vector<8x14xf32> to vector<8x1xf32>
    %72 = vector.broadcast %71 : vector<8x1xf32> to vector<8x16xf32>
    %73 = arith.mulf %7, %72 : vector<8x16xf32>
    %cst_26 = arith.constant dense<0.000000e+00> : vector<16xf32>
    %74 = vector.multi_reduction <add>, %73, %cst_26 [0] : vector<8x16xf32> to vector<16xf32>
    %75 = vector.shape_cast %74 : vector<16xf32> to vector<1x16xf32>
    %76 = vector.extract_strided_slice %5 {offsets = [0, 1], sizes = [1, 1], strides = [1, 1]} : vector<1x4xf32> to vector<1x1xf32>
    %77 = vector.broadcast %76 : vector<1x1xf32> to vector<1x16xf32>
    %78 = arith.addf %75, %77 : vector<1x16xf32>
    %cst_27 = arith.constant 0.707106769 : f32
    %79 = vector.broadcast %cst_27 : f32 to vector<1x16xf32>
    %80 = arith.mulf %78, %79 : vector<1x16xf32>
    %cst_28 = arith.constant 0.000000e+00 : f32
    %81 = vector.broadcast %cst_28 : f32 to vector<1x16xf32>
    %82 = arith.cmpf oge, %80, %81 : vector<1x16xf32>
    %83 = vector.broadcast %11 : vector<1x1xf32> to vector<1x16xf32>
    %84 = arith.mulf %80, %83 : vector<1x16xf32>
    %85 = vector.broadcast %13 : vector<1x1xf32> to vector<1x16xf32>
    %86 = arith.mulf %80, %85 : vector<1x16xf32>
    %87 = arith.select %82, %84, %86 : vector<1x16xi1>, vector<1x16xf32>
    %cst_29 = arith.constant 0.000000e+00 : f32
    %88 = vector.broadcast %cst_29 : f32 to vector<1x16xf32>
    %cst_30 = arith.constant 0.000000e+00 : f32
    %89 = vector.broadcast %cst_30 : f32 to vector<1x16xf32>
    %90 = vector.extract_strided_slice %9 {offsets = [0, 0], sizes = [8, 1], strides = [1, 1]} : vector<16x1xf32> to vector<8x1xf32>
    %91 = vector.broadcast %90 : vector<8x1xf32> to vector<8x16xf32>
    %92 = vector.broadcast %80 : vector<1x16xf32> to vector<8x16xf32>
    %93 = arith.mulf %91, %92 : vector<8x16xf32>
    %94 = vector.broadcast %87 : vector<1x16xf32> to vector<8x16xf32>
    %95 = arith.subf %93, %94 : vector<8x16xf32>
    %96 = math.exp %95 : vector<8x16xf32>
    %cst_31 = arith.constant dense<0.000000e+00> : vector<16xf32>
    %97 = vector.multi_reduction <add>, %96, %cst_31 [0] : vector<8x16xf32> to vector<16xf32>
    %98 = vector.shape_cast %97 : vector<16xf32> to vector<1x16xf32>
    %99 = arith.addf %88, %98 : vector<1x16xf32>
    %100 = vector.broadcast %90 : vector<8x1xf32> to vector<8x16xf32>
    %101 = arith.mulf %96, %100 : vector<8x16xf32>
    %cst_32 = arith.constant dense<0.000000e+00> : vector<16xf32>
    %102 = vector.multi_reduction <add>, %101, %cst_32 [0] : vector<8x16xf32> to vector<16xf32>
    %103 = vector.shape_cast %102 : vector<16xf32> to vector<1x16xf32>
    %104 = arith.addf %89, %103 : vector<1x16xf32>
    %105 = vector.extract_strided_slice %9 {offsets = [8, 0], sizes = [8, 1], strides = [1, 1]} : vector<16x1xf32> to vector<8x1xf32>
    %106 = vector.broadcast %105 : vector<8x1xf32> to vector<8x16xf32>
    %107 = vector.broadcast %80 : vector<1x16xf32> to vector<8x16xf32>
    %108 = arith.mulf %106, %107 : vector<8x16xf32>
    %109 = vector.broadcast %87 : vector<1x16xf32> to vector<8x16xf32>
    %110 = arith.subf %108, %109 : vector<8x16xf32>
    %111 = math.exp %110 : vector<8x16xf32>
    %cst_33 = arith.constant dense<0.000000e+00> : vector<16xf32>
    %112 = vector.multi_reduction <add>, %111, %cst_33 [0] : vector<8x16xf32> to vector<16xf32>
    %113 = vector.shape_cast %112 : vector<16xf32> to vector<1x16xf32>
    %114 = arith.addf %99, %113 : vector<1x16xf32>
    %115 = vector.broadcast %105 : vector<8x1xf32> to vector<8x16xf32>
    %116 = arith.mulf %111, %115 : vector<8x16xf32>
    %cst_34 = arith.constant dense<0.000000e+00> : vector<16xf32>
    %117 = vector.multi_reduction <add>, %116, %cst_34 [0] : vector<8x16xf32> to vector<16xf32>
    %118 = vector.shape_cast %117 : vector<16xf32> to vector<1x16xf32>
    %119 = arith.addf %104, %118 : vector<1x16xf32>
    %120 = tpu.reciprocal %114 : vector<1x16xf32> -> vector<1x16xf32>
    %121 = arith.mulf %119, %120 : vector<1x16xf32>
    %122 = vector.extract_strided_slice %4 {offsets = [0, 11], sizes = [8, 1], strides = [1, 1]} : vector<8x14xf32> to vector<8x1xf32>
    %123 = vector.broadcast %122 : vector<8x1xf32> to vector<8x16xf32>
    %124 = vector.broadcast %121 : vector<1x16xf32> to vector<8x16xf32>
    %125 = arith.mulf %123, %124 : vector<8x16xf32>
    %126 = arith.addf %70, %125 : vector<8x16xf32>
    %127 = vector.extract_strided_slice %4 {offsets = [0, 8], sizes = [8, 1], strides = [1, 1]} : vector<8x14xf32> to vector<8x1xf32>
    %128 = vector.broadcast %127 : vector<8x1xf32> to vector<8x16xf32>
    %129 = arith.mulf %7, %128 : vector<8x16xf32>
    %cst_35 = arith.constant dense<0.000000e+00> : vector<16xf32>
    %130 = vector.multi_reduction <add>, %129, %cst_35 [0] : vector<8x16xf32> to vector<16xf32>
    %131 = vector.shape_cast %130 : vector<16xf32> to vector<1x16xf32>
    %132 = vector.extract_strided_slice %5 {offsets = [0, 2], sizes = [1, 1], strides = [1, 1]} : vector<1x4xf32> to vector<1x1xf32>
    %133 = vector.broadcast %132 : vector<1x1xf32> to vector<1x16xf32>
    %134 = arith.addf %131, %133 : vector<1x16xf32>
    %cst_36 = arith.constant 0.707106769 : f32
    %135 = vector.broadcast %cst_36 : f32 to vector<1x16xf32>
    %136 = arith.mulf %134, %135 : vector<1x16xf32>
    %cst_37 = arith.constant 0.000000e+00 : f32
    %137 = vector.broadcast %cst_37 : f32 to vector<1x16xf32>
    %138 = arith.cmpf oge, %136, %137 : vector<1x16xf32>
    %139 = vector.broadcast %11 : vector<1x1xf32> to vector<1x16xf32>
    %140 = arith.mulf %136, %139 : vector<1x16xf32>
    %141 = vector.broadcast %13 : vector<1x1xf32> to vector<1x16xf32>
    %142 = arith.mulf %136, %141 : vector<1x16xf32>
    %143 = arith.select %138, %140, %142 : vector<1x16xi1>, vector<1x16xf32>
    %cst_38 = arith.constant 0.000000e+00 : f32
    %144 = vector.broadcast %cst_38 : f32 to vector<1x16xf32>
    %cst_39 = arith.constant 0.000000e+00 : f32
    %145 = vector.broadcast %cst_39 : f32 to vector<1x16xf32>
    %146 = vector.extract_strided_slice %9 {offsets = [0, 0], sizes = [8, 1], strides = [1, 1]} : vector<16x1xf32> to vector<8x1xf32>
    %147 = vector.broadcast %146 : vector<8x1xf32> to vector<8x16xf32>
    %148 = vector.broadcast %136 : vector<1x16xf32> to vector<8x16xf32>
    %149 = arith.mulf %147, %148 : vector<8x16xf32>
    %150 = vector.broadcast %143 : vector<1x16xf32> to vector<8x16xf32>
    %151 = arith.subf %149, %150 : vector<8x16xf32>
    %152 = math.exp %151 : vector<8x16xf32>
    %cst_40 = arith.constant dense<0.000000e+00> : vector<16xf32>
    %153 = vector.multi_reduction <add>, %152, %cst_40 [0] : vector<8x16xf32> to vector<16xf32>
    %154 = vector.shape_cast %153 : vector<16xf32> to vector<1x16xf32>
    %155 = arith.addf %144, %154 : vector<1x16xf32>
    %156 = vector.broadcast %146 : vector<8x1xf32> to vector<8x16xf32>
    %157 = arith.mulf %152, %156 : vector<8x16xf32>
    %cst_41 = arith.constant dense<0.000000e+00> : vector<16xf32>
    %158 = vector.multi_reduction <add>, %157, %cst_41 [0] : vector<8x16xf32> to vector<16xf32>
    %159 = vector.shape_cast %158 : vector<16xf32> to vector<1x16xf32>
    %160 = arith.addf %145, %159 : vector<1x16xf32>
    %161 = vector.extract_strided_slice %9 {offsets = [8, 0], sizes = [8, 1], strides = [1, 1]} : vector<16x1xf32> to vector<8x1xf32>
    %162 = vector.broadcast %161 : vector<8x1xf32> to vector<8x16xf32>
    %163 = vector.broadcast %136 : vector<1x16xf32> to vector<8x16xf32>
    %164 = arith.mulf %162, %163 : vector<8x16xf32>
    %165 = vector.broadcast %143 : vector<1x16xf32> to vector<8x16xf32>
    %166 = arith.subf %164, %165 : vector<8x16xf32>
    %167 = math.exp %166 : vector<8x16xf32>
    %cst_42 = arith.constant dense<0.000000e+00> : vector<16xf32>
    %168 = vector.multi_reduction <add>, %167, %cst_42 [0] : vector<8x16xf32> to vector<16xf32>
    %169 = vector.shape_cast %168 : vector<16xf32> to vector<1x16xf32>
    %170 = arith.addf %155, %169 : vector<1x16xf32>
    %171 = vector.broadcast %161 : vector<8x1xf32> to vector<8x16xf32>
    %172 = arith.mulf %167, %171 : vector<8x16xf32>
    %cst_43 = arith.constant dense<0.000000e+00> : vector<16xf32>
    %173 = vector.multi_reduction <add>, %172, %cst_43 [0] : vector<8x16xf32> to vector<16xf32>
    %174 = vector.shape_cast %173 : vector<16xf32> to vector<1x16xf32>
    %175 = arith.addf %160, %174 : vector<1x16xf32>
    %176 = tpu.reciprocal %170 : vector<1x16xf32> -> vector<1x16xf32>
    %177 = arith.mulf %175, %176 : vector<1x16xf32>
    %178 = vector.extract_strided_slice %4 {offsets = [0, 12], sizes = [8, 1], strides = [1, 1]} : vector<8x14xf32> to vector<8x1xf32>
    %179 = vector.broadcast %178 : vector<8x1xf32> to vector<8x16xf32>
    %180 = vector.broadcast %177 : vector<1x16xf32> to vector<8x16xf32>
    %181 = arith.mulf %179, %180 : vector<8x16xf32>
    %182 = arith.addf %126, %181 : vector<8x16xf32>
    %183 = vector.extract_strided_slice %4 {offsets = [0, 9], sizes = [8, 1], strides = [1, 1]} : vector<8x14xf32> to vector<8x1xf32>
    %184 = vector.broadcast %183 : vector<8x1xf32> to vector<8x16xf32>
    %185 = arith.mulf %7, %184 : vector<8x16xf32>
    %cst_44 = arith.constant dense<0.000000e+00> : vector<16xf32>
    %186 = vector.multi_reduction <add>, %185, %cst_44 [0] : vector<8x16xf32> to vector<16xf32>
    %187 = vector.shape_cast %186 : vector<16xf32> to vector<1x16xf32>
    %188 = vector.extract_strided_slice %5 {offsets = [0, 3], sizes = [1, 1], strides = [1, 1]} : vector<1x4xf32> to vector<1x1xf32>
    %189 = vector.broadcast %188 : vector<1x1xf32> to vector<1x16xf32>
    %190 = arith.addf %187, %189 : vector<1x16xf32>
    %cst_45 = arith.constant 0.707106769 : f32
    %191 = vector.broadcast %cst_45 : f32 to vector<1x16xf32>
    %192 = arith.mulf %190, %191 : vector<1x16xf32>
    %cst_46 = arith.constant 0.000000e+00 : f32
    %193 = vector.broadcast %cst_46 : f32 to vector<1x16xf32>
    %194 = arith.cmpf oge, %192, %193 : vector<1x16xf32>
    %195 = vector.broadcast %11 : vector<1x1xf32> to vector<1x16xf32>
    %196 = arith.mulf %192, %195 : vector<1x16xf32>
    %197 = vector.broadcast %13 : vector<1x1xf32> to vector<1x16xf32>
    %198 = arith.mulf %192, %197 : vector<1x16xf32>
    %199 = arith.select %194, %196, %198 : vector<1x16xi1>, vector<1x16xf32>
    %cst_47 = arith.constant 0.000000e+00 : f32
    %200 = vector.broadcast %cst_47 : f32 to vector<1x16xf32>
    %cst_48 = arith.constant 0.000000e+00 : f32
    %201 = vector.broadcast %cst_48 : f32 to vector<1x16xf32>
    %202 = vector.extract_strided_slice %9 {offsets = [0, 0], sizes = [8, 1], strides = [1, 1]} : vector<16x1xf32> to vector<8x1xf32>
    %203 = vector.broadcast %202 : vector<8x1xf32> to vector<8x16xf32>
    %204 = vector.broadcast %192 : vector<1x16xf32> to vector<8x16xf32>
    %205 = arith.mulf %203, %204 : vector<8x16xf32>
    %206 = vector.broadcast %199 : vector<1x16xf32> to vector<8x16xf32>
    %207 = arith.subf %205, %206 : vector<8x16xf32>
    %208 = math.exp %207 : vector<8x16xf32>
    %cst_49 = arith.constant dense<0.000000e+00> : vector<16xf32>
    %209 = vector.multi_reduction <add>, %208, %cst_49 [0] : vector<8x16xf32> to vector<16xf32>
    %210 = vector.shape_cast %209 : vector<16xf32> to vector<1x16xf32>
    %211 = arith.addf %200, %210 : vector<1x16xf32>
    %212 = vector.broadcast %202 : vector<8x1xf32> to vector<8x16xf32>
    %213 = arith.mulf %208, %212 : vector<8x16xf32>
    %cst_50 = arith.constant dense<0.000000e+00> : vector<16xf32>
    %214 = vector.multi_reduction <add>, %213, %cst_50 [0] : vector<8x16xf32> to vector<16xf32>
    %215 = vector.shape_cast %214 : vector<16xf32> to vector<1x16xf32>
    %216 = arith.addf %201, %215 : vector<1x16xf32>
    %217 = vector.extract_strided_slice %9 {offsets = [8, 0], sizes = [8, 1], strides = [1, 1]} : vector<16x1xf32> to vector<8x1xf32>
    %218 = vector.broadcast %217 : vector<8x1xf32> to vector<8x16xf32>
    %219 = vector.broadcast %192 : vector<1x16xf32> to vector<8x16xf32>
    %220 = arith.mulf %218, %219 : vector<8x16xf32>
    %221 = vector.broadcast %199 : vector<1x16xf32> to vector<8x16xf32>
    %222 = arith.subf %220, %221 : vector<8x16xf32>
    %223 = math.exp %222 : vector<8x16xf32>
    %cst_51 = arith.constant dense<0.000000e+00> : vector<16xf32>
    %224 = vector.multi_reduction <add>, %223, %cst_51 [0] : vector<8x16xf32> to vector<16xf32>
    %225 = vector.shape_cast %224 : vector<16xf32> to vector<1x16xf32>
    %226 = arith.addf %211, %225 : vector<1x16xf32>
    %227 = vector.broadcast %217 : vector<8x1xf32> to vector<8x16xf32>
    %228 = arith.mulf %223, %227 : vector<8x16xf32>
    %cst_52 = arith.constant dense<0.000000e+00> : vector<16xf32>
    %229 = vector.multi_reduction <add>, %228, %cst_52 [0] : vector<8x16xf32> to vector<16xf32>
    %230 = vector.shape_cast %229 : vector<16xf32> to vector<1x16xf32>
    %231 = arith.addf %216, %230 : vector<1x16xf32>
    %232 = tpu.reciprocal %226 : vector<1x16xf32> -> vector<1x16xf32>
    %233 = arith.mulf %231, %232 : vector<1x16xf32>
    %234 = vector.extract_strided_slice %4 {offsets = [0, 13], sizes = [8, 1], strides = [1, 1]} : vector<8x14xf32> to vector<8x1xf32>
    %235 = vector.broadcast %234 : vector<8x1xf32> to vector<8x16xf32>
    %236 = vector.broadcast %233 : vector<1x16xf32> to vector<8x16xf32>
    %237 = arith.mulf %235, %236 : vector<8x16xf32>
    %238 = arith.addf %182, %237 : vector<8x16xf32>
    %239 = vector.extract_strided_slice %4 {offsets = [0, 0], sizes = [8, 1], strides = [1, 1]} : vector<8x14xf32> to vector<8x1xf32>
    %240 = vector.broadcast %239 : vector<8x1xf32> to vector<8x16xf32>
    %241 = arith.addf %238, %240 : vector<8x16xf32>
    %c0_53 = arith.constant 0 : index
    %c0_54 = arith.constant 0 : index
    %242 = vector.load %arg6[%c0_53, %c0_54] : memref<8x8xf32, #tpu.memory_space<vmem>>, vector<8x8xf32>
    %cst_55 = arith.constant dense<0.000000e+00> : vector<8x16xf32>
    %243 = tpu.matmul %242, %241, %cst_55 {dimension_numbers = #tpu.dot_dimension_numbers<[1], [0], [0], [1], [0, 0, 1, 1], [], []>} : vector<8x8xf32>, vector<8x16xf32>, vector<8x16xf32> -> vector<8x16xf32>
    %244 = vector.extract_strided_slice %4 {offsets = [0, 1], sizes = [8, 1], strides = [1, 1]} : vector<8x14xf32> to vector<8x1xf32>
    %245 = vector.broadcast %244 : vector<8x1xf32> to vector<8x16xf32>
    %246 = arith.addf %243, %245 : vector<8x16xf32>
    %247 = arith.addf %246, %7 : vector<8x16xf32>
    %cst_56 = arith.constant dense<0.000000e+00> : vector<16xf32>
    %248 = vector.multi_reduction <add>, %247, %cst_56 [0] : vector<8x16xf32> to vector<16xf32>
    %249 = vector.shape_cast %248 : vector<16xf32> to vector<1x16xf32>
    %cst_57 = arith.constant 8.000000e+00 : f32
    %250 = vector.broadcast %cst_57 : f32 to vector<1x16xf32>
    %251 = arith.divf %249, %250 : vector<1x16xf32>
    %252 = vector.broadcast %251 : vector<1x16xf32> to vector<8x16xf32>
    %253 = arith.subf %247, %252 : vector<8x16xf32>
    %254 = arith.mulf %253, %253 : vector<8x16xf32>
    %cst_58 = arith.constant dense<0.000000e+00> : vector<16xf32>
    %255 = vector.multi_reduction <add>, %254, %cst_58 [0] : vector<8x16xf32> to vector<16xf32>
    %256 = vector.shape_cast %255 : vector<16xf32> to vector<1x16xf32>
    %cst_59 = arith.constant 8.000000e+00 : f32
    %257 = vector.broadcast %cst_59 : f32 to vector<1x16xf32>
    %258 = arith.divf %256, %257 : vector<1x16xf32>
    %259 = vector.broadcast %251 : vector<1x16xf32> to vector<8x16xf32>
    %260 = arith.subf %247, %259 : vector<8x16xf32>
    %cst_60 = arith.constant 9.99999974E-6 : f32
    %261 = vector.broadcast %cst_60 : f32 to vector<1x16xf32>
    %262 = arith.addf %258, %261 : vector<1x16xf32>
    %263 = math.rsqrt %262 : vector<1x16xf32>
    %264 = vector.broadcast %263 : vector<1x16xf32> to vector<8x16xf32>
    %265 = arith.mulf %260, %264 : vector<8x16xf32>
    %266 = vector.extract_strided_slice %4 {offsets = [0, 2], sizes = [8, 1], strides = [1, 1]} : vector<8x14xf32> to vector<8x1xf32>
    %267 = vector.broadcast %266 : vector<8x1xf32> to vector<8x16xf32>
    %268 = arith.mulf %265, %267 : vector<8x16xf32>
    %269 = vector.extract_strided_slice %4 {offsets = [0, 3], sizes = [8, 1], strides = [1, 1]} : vector<8x14xf32> to vector<8x1xf32>
    %270 = vector.broadcast %269 : vector<8x1xf32> to vector<8x16xf32>
    %271 = arith.addf %268, %270 : vector<8x16xf32>
    %c0_61 = arith.constant 0 : index
    %c0_62 = arith.constant 0 : index
    %272 = vector.load %arg7[%c0_61, %c0_62] : memref<8x8xf32, #tpu.memory_space<vmem>>, vector<8x8xf32>
    %cst_63 = arith.constant dense<0.000000e+00> : vector<8x16xf32>
    %273 = tpu.matmul %272, %271, %cst_63 {dimension_numbers = #tpu.dot_dimension_numbers<[1], [0], [0], [1], [0, 0, 1, 1], [], []>} : vector<8x8xf32>, vector<8x16xf32>, vector<8x16xf32> -> vector<8x16xf32>
    %274 = vector.extract_strided_slice %4 {offsets = [0, 4], sizes = [8, 1], strides = [1, 1]} : vector<8x14xf32> to vector<8x1xf32>
    %275 = vector.broadcast %274 : vector<8x1xf32> to vector<8x16xf32>
    %276 = arith.addf %273, %275 : vector<8x16xf32>
    %cst_64 = arith.constant 5.000000e-01 : f32
    %277 = vector.broadcast %cst_64 : f32 to vector<8x16xf32>
    %278 = arith.mulf %277, %276 : vector<8x16xf32>
    %cst_65 = arith.constant 0.707106769 : f32
    %279 = vector.broadcast %cst_65 : f32 to vector<8x16xf32>
    %280 = arith.mulf %276, %279 : vector<8x16xf32>
    %281 = math.absf %280 : vector<8x16xf32>
    %cst_66 = arith.constant 5.000000e-01 : f32
    %282 = vector.broadcast %cst_66 : f32 to vector<8x16xf32>
    %283 = arith.mulf %282, %281 : vector<8x16xf32>
    %cst_67 = arith.constant 1.000000e+00 : f32
    %284 = vector.broadcast %cst_67 : f32 to vector<8x16xf32>
    %285 = arith.addf %284, %283 : vector<8x16xf32>
    %cst_68 = arith.constant 1.000000e+00 : f32
    %286 = vector.broadcast %cst_68 : f32 to vector<8x16xf32>
    %287 = arith.divf %286, %285 : vector<8x16xf32>
    %cst_69 = arith.constant 0.000000e+00 : f32
    %288 = vector.broadcast %cst_69 : f32 to vector<8x16xf32>
    %289 = arith.subf %288, %281 : vector<8x16xf32>
    %290 = arith.mulf %289, %281 : vector<8x16xf32>
    %cst_70 = arith.constant 1.26551223 : f32
    %291 = vector.broadcast %cst_70 : f32 to vector<8x16xf32>
    %292 = arith.subf %290, %291 : vector<8x16xf32>
    %cst_71 = arith.constant 0.170872763 : f32
    %293 = vector.broadcast %cst_71 : f32 to vector<8x16xf32>
    %294 = arith.mulf %287, %293 : vector<8x16xf32>
    %cst_72 = arith.constant -0.822152256 : f32
    %295 = vector.broadcast %cst_72 : f32 to vector<8x16xf32>
    %296 = arith.addf %295, %294 : vector<8x16xf32>
    %297 = arith.mulf %287, %296 : vector<8x16xf32>
    %cst_73 = arith.constant 1.48851585 : f32
    %298 = vector.broadcast %cst_73 : f32 to vector<8x16xf32>
    %299 = arith.addf %298, %297 : vector<8x16xf32>
    %300 = arith.mulf %287, %299 : vector<8x16xf32>
    %cst_74 = arith.constant -1.13520396 : f32
    %301 = vector.broadcast %cst_74 : f32 to vector<8x16xf32>
    %302 = arith.addf %301, %300 : vector<8x16xf32>
    %303 = arith.mulf %287, %302 : vector<8x16xf32>
    %cst_75 = arith.constant 0.278868079 : f32
    %304 = vector.broadcast %cst_75 : f32 to vector<8x16xf32>
    %305 = arith.addf %304, %303 : vector<8x16xf32>
    %306 = arith.mulf %287, %305 : vector<8x16xf32>
    %cst_76 = arith.constant -0.186288059 : f32
    %307 = vector.broadcast %cst_76 : f32 to vector<8x16xf32>
    %308 = arith.addf %307, %306 : vector<8x16xf32>
    %309 = arith.mulf %287, %308 : vector<8x16xf32>
    %cst_77 = arith.constant 0.0967841818 : f32
    %310 = vector.broadcast %cst_77 : f32 to vector<8x16xf32>
    %311 = arith.addf %310, %309 : vector<8x16xf32>
    %312 = arith.mulf %287, %311 : vector<8x16xf32>
    %cst_78 = arith.constant 0.374091953 : f32
    %313 = vector.broadcast %cst_78 : f32 to vector<8x16xf32>
    %314 = arith.addf %313, %312 : vector<8x16xf32>
    %315 = arith.mulf %287, %314 : vector<8x16xf32>
    %cst_79 = arith.constant 1.00002372 : f32
    %316 = vector.broadcast %cst_79 : f32 to vector<8x16xf32>
    %317 = arith.addf %316, %315 : vector<8x16xf32>
    %318 = arith.mulf %287, %317 : vector<8x16xf32>
    %319 = arith.addf %292, %318 : vector<8x16xf32>
    %320 = math.exp %319 : vector<8x16xf32>
    %321 = arith.mulf %287, %320 : vector<8x16xf32>
    %cst_80 = arith.constant 1.000000e+00 : f32
    %322 = vector.broadcast %cst_80 : f32 to vector<8x16xf32>
    %323 = arith.subf %322, %321 : vector<8x16xf32>
    %cst_81 = arith.constant 0.000000e+00 : f32
    %324 = vector.broadcast %cst_81 : f32 to vector<8x16xf32>
    %325 = arith.cmpf oge, %280, %324 : vector<8x16xf32>
    %cst_82 = arith.constant 0.000000e+00 : f32
    %326 = vector.broadcast %cst_82 : f32 to vector<8x16xf32>
    %327 = arith.subf %326, %323 : vector<8x16xf32>
    %328 = arith.select %325, %323, %327 : vector<8x16xi1>, vector<8x16xf32>
    %cst_83 = arith.constant 1.000000e+00 : f32
    %329 = vector.broadcast %cst_83 : f32 to vector<8x16xf32>
    %330 = arith.addf %329, %328 : vector<8x16xf32>
    %331 = arith.mulf %278, %330 : vector<8x16xf32>
    %c0_84 = arith.constant 0 : index
    %c0_85 = arith.constant 0 : index
    %332 = vector.load %arg8[%c0_84, %c0_85] : memref<8x8xf32, #tpu.memory_space<vmem>>, vector<8x8xf32>
    %cst_86 = arith.constant dense<0.000000e+00> : vector<8x16xf32>
    %333 = tpu.matmul %332, %331, %cst_86 {dimension_numbers = #tpu.dot_dimension_numbers<[1], [0], [0], [1], [0, 0, 1, 1], [], []>} : vector<8x8xf32>, vector<8x16xf32>, vector<8x16xf32> -> vector<8x16xf32>
    %334 = vector.extract_strided_slice %4 {offsets = [0, 5], sizes = [8, 1], strides = [1, 1]} : vector<8x14xf32> to vector<8x1xf32>
    %335 = vector.broadcast %334 : vector<8x1xf32> to vector<8x16xf32>
    %336 = arith.addf %333, %335 : vector<8x16xf32>
    %337 = arith.addf %336, %247 : vector<8x16xf32>
    %c0_87 = arith.constant 0 : index
    %c0_88 = arith.constant 0 : index
    %c0_89 = arith.constant 0 : index
    %338 = vector.load %arg11[%c0_87, %c0_88, %c0_89] : memref<1x8x16xf32, #tpu.memory_space<vmem>>, vector<1x8x16xf32>
    %339 = vector.shape_cast %338 : vector<1x8x16xf32> to vector<8x16xf32>
    %340 = vector.shape_cast %337 : vector<8x16xf32> to vector<1x8x16xf32>
    tpu.vector_store %arg11[%c0_87, %c0_88, %c0_89], %340 {strides = array<i32>} : memref<1x8x16xf32, #tpu.memory_space<vmem>>, vector<1x8x16xf32>,
    return
  }
  func.func @transform_0(%arg0: i32, %arg1: i32) -> (i32, i32, i32) {
    %c0_i32 = arith.constant 0 : i32
    %c0_i32_0 = arith.constant 0 : i32
    %c0_i32_1 = arith.constant 0 : i32
    return %arg0, %c0_i32, %c0_i32_0 : i32, i32, i32
  }
  func.func @transform_1(%arg0: i32, %arg1: i32) -> (i32, i32, i32) {
    %c0_i32 = arith.constant 0 : i32
    %c0_i32_0 = arith.constant 0 : i32
    %c0_i32_1 = arith.constant 0 : i32
    return %arg0, %c0_i32, %c0_i32_0 : i32, i32, i32
  }
  func.func @transform_2(%arg0: i32, %arg1: i32) -> (i32, i32) {
    %c0_i32 = arith.constant 0 : i32
    %c0_i32_0 = arith.constant 0 : i32
    return %arg1, %c0_i32 : i32, i32
  }
  func.func @transform_3(%arg0: i32, %arg1: i32) -> (i32, i32) {
    %c0_i32 = arith.constant 0 : i32
    %c0_i32_0 = arith.constant 0 : i32
    %c0_i32_1 = arith.constant 0 : i32
    return %c0_i32, %c0_i32_0 : i32, i32
  }
  func.func @transform_4(%arg0: i32, %arg1: i32) -> (i32, i32) {
    %c0_i32 = arith.constant 0 : i32
    %c0_i32_0 = arith.constant 0 : i32
    %c0_i32_1 = arith.constant 0 : i32
    return %c0_i32, %c0_i32_0 : i32, i32
  }
  func.func @transform_5(%arg0: i32, %arg1: i32) -> (i32, i32) {
    %c0_i32 = arith.constant 0 : i32
    %c0_i32_0 = arith.constant 0 : i32
    %c0_i32_1 = arith.constant 0 : i32
    return %c0_i32, %c0_i32_0 : i32, i32
  }
  func.func @transform_6(%arg0: i32, %arg1: i32) -> (i32, i32) {
    %c0_i32 = arith.constant 0 : i32
    %c0_i32_0 = arith.constant 0 : i32
    %c0_i32_1 = arith.constant 0 : i32
    return %c0_i32, %c0_i32_0 : i32, i32
  }
  func.func @transform_7(%arg0: i32, %arg1: i32) -> (i32, i32) {
    %c0_i32 = arith.constant 0 : i32
    %c0_i32_0 = arith.constant 0 : i32
    %c0_i32_1 = arith.constant 0 : i32
    return %c0_i32, %c0_i32_0 : i32, i32
  }
  func.func @transform_8(%arg0: i32, %arg1: i32) -> (i32, i32) {
    %c0_i32 = arith.constant 0 : i32
    %c0_i32_0 = arith.constant 0 : i32
    %c0_i32_1 = arith.constant 0 : i32
    return %c0_i32, %c0_i32_0 : i32, i32
  }
  func.func @transform_9(%arg0: i32, %arg1: i32) -> (i32, i32, i32) {
    %c0_i32 = arith.constant 0 : i32
    %c0_i32_0 = arith.constant 0 : i32
    return %arg0, %c0_i32, %arg1 : i32, i32, i32
  }
}

</mosaic_0001>

<bundles_post_ra>
// kernel: tpu_custom_call.1
= control target key start
LH: loop header
LB: loop body
LE: loop exit
PB: predicated region body
PF: predicated region fallthrough
CT: control target
= control target key end

     0   :  { %s2190_s0 = inlined_call_operand.hbm [shape: f32[2,8,17], index: 0, kind: input, shape index: {}]   ;;  %s2191_s1 = inlined_call_operand.vmem [shape: f32[2,1,9], index: 1, kind: input, shape index: {}]   ;;  %s2192_s2 = inlined_call_operand.hbm [shape: f32[16,17], index: 2, kind: input, shape index: {}]   ;;  %s2193_s3 = inlined_call_operand.hbm [shape: f32[16,9], index: 3, kind: input, shape index: {}]   ;;  %s2194_s4 = inlined_call_operand.vmem [shape: f32[8,8], index: 4, kind: input, shape index: {}]   ;;  %s2195_s5 = inlined_call_operand.vmem [shape: f32[8,8], index: 5, kind: input, shape index: {}]   ;;  %s2196_s6 = inlined_call_operand.hbm [shape: f32[8,8], index: 6, kind: input, shape index: {}]   ;;  %s2197_s7 = inlined_call_operand.vmem [shape: f32[8,14], index: 7, kind: input, shape index: {}]   ;;  %s2198_s8 = inlined_call_operand.vmem [shape: f32[1,4], index: 8, kind: input, shape index: {}]   ;;  %s2199_s9 = inlined_call_operand.hbm [shape: f32[2,8,16], index: 9, kind: output, shape index: {}]  }
   0x1   :  { %2207 = sst [smem:[#allocation17_spill]] %s2194_s4 }
   0x2   :  { %2208 = sst [smem:[#allocation18_spill]] %s2195_s5 }
   0x3   :  { %2209 = sst [smem:[#allocation19_spill]] %s2198_s8 }
   0x4   :  { %2210 = sst [smem:[#allocation20_spill]] %s2199_s9 }
   0x5   :  { %14 = vsyncpa [#allocation3], 0 }
   0x6   :  { %16 = vsyncpa [#allocation3 + $0x1], 0 }
   0x7   :  { %17 = vsyncpa [#allocation6], 0 }
   0x8   :  { %18 = vsyncpa [#allocation9], 0 }
   0x9   :  { %19 = vsyncpa [#allocation4], 0 }
   0xa   :  { %21 = vsyncpa [#allocation4 + $0x1], 0  ;;  %s1799_s30 = smov 0   ;;  %s1801_s10 = smov 0  }
   0xb   :  { %s1803_s11 = smov 0   ;;  %s1805_s12 = smov 0  }
   0xc   :  { %s1807_s13 = smov 0   ;;  %s1809_s14 = smov 0  }
   0xd LB: > { %2211 = sst [smem:[#allocation15_spill]] %s1703_s30  ;;  %s1297_s15 = sadd.s32 4294967295, %s1723_s14   ;;  %s1723_s14 = sphi %s1809_s14, %s27_s14   ;;  %s1719_s13 = sphi %s1807_s13, %s2238_s13   ;;  %s1715_s12 = sphi %s1805_s12, %s2237_s12   ;;  %s1711_s11 = sphi %s1803_s11, %s2236_s11   ;;  %s1707_s10 = sphi %s1801_s10, %s2235_s10   ;;  %s1703_s30 = sphi %s1799_s30, %s2234_s30  }
   0xe   : > { %s1298_s16 = sadd.s32 4294967294, %s1723_s14   ;;  %p59_p0 = scmp.ne.s32.totalorder %s1707_s10, %s1703_s30 }
   0xf   : > { %p1833_p1 = scmp.eq.s32.totalorder %s1297_s15, 0  ;;  %p1837_p2 = scmp.eq.s32.totalorder %s1297_s15, 1 }
  0x10   : > { %p269_p3 = scmp.eq.s32.totalorder %s1298_s16, 1  ;;  %p1299_p5 = scmp.ge.s32.totalorder %s1723_s14, 1 }
  0x11   : > { %s2212_s17 = scalar_select %p1833_p1, 1, 0 }
  0x12   : > { %s2213_s18 = scalar_select %p1837_p2, 1, 0 }
  0x13   : > { %p1843_p4 = por %p1833_p1, %p59_p0  ;;  %p1848_p6 = por %p269_p3, %p59_p0 }
  0x14   : > { %p276_p7 = scmp.lt.s32.totalorder %s1723_s14, 3  ;;  %s1725_s22 = smov [#allocation5]  }
  0x15   : > { %s2214_s19 = scalar_select %p1843_p4, 1, 0 }
  0x16   : > { %s2215_s20 = scalar_select %p1848_p6, 1, 0 }
  0x17   : > { %p1853_p8 = pnand %p1299_p5, %p276_p7  ;;  %s291_s23 = sshll.u32 %s1725_s22, 4  ;;  %s1857_s23 = int_to_ptr.vmem [resolvable:$true] %s291_s23 }
  0x18   : > { %2216 = sst [smem:[#allocation16_spill]] %s2215_s20  ;;  %s1726_s25 = smov [#allocation7]  }
  0x19   : > { %s2217_s21 = scalar_select %p1853_p8, 1, 0 }
  0x1a   : > { %p1375_p9 = pneg %p1853_p8  ;;  %s304_s26 = sshll.u32 %s1726_s25, 4  ;;  %s1868_s26 = int_to_ptr.vmem [resolvable:$true] %s304_s26 }
  0x1b   : > { %s1727_s27 = smov [#allocation8]   ;;  %s1519_s16 = scalar_lea.hbm %s2192_s2, 256 }
  0x1c   : > { %p1864_p11 = pnand %p1375_p9, %p1833_p1  ;;  %s1870_s28 = sshll.u32 %s1727_s27, 4  ;;  %s325_s28 = int_to_ptr.vmem [resolvable:$true] %s1870_s28 }
  0x1d   : > { %p1520_p12 = scmp.ne.s32.totalorder %s2192_s2, %s1519_s16  ;;  %p1526_p5 = scmp.lt.u32.totalorder %s1519_s16, %s2192_s2 }
  0x1e   : > { %p1880_p13 = pneg %p1864_p11 }
  0x20   : > { %p1522_p0 = pnand %p1880_p13, %p1520_p12 }
  0x22   : > { %p1523_p3 = pneg %p1522_p0 }
  0x24   : > { %p1528_p7 = pnand %p1526_p5, %p1523_p3 }
  0x26   : > { %1531 = shalt.err (!%p1528_p7)
}
  0x27   : > { %s1532_s20 = scalar_lea.vmem %s1857_s23, 256  ;;  %p1540_p1 = scmp.lt.s32.totalorder %s1857_s23, %s1857_s23 }
  0x28   : > { %p1533_p9 = scmp.ne.s32.totalorder %s1857_s23, %s1532_s20  ;;  %p1541_p4 = scmp.lt.s32.totalorder %s1532_s20, %s1532_s20 }
  0x2a   : > { %p1535_p10 = pnand %p1533_p9, %p1880_p13  ;;  %p1542_p12 = por %p1541_p4, %p1540_p1 }
  0x2c   : > { %p1536_p6 = pneg %p1535_p10 }
  0x2e   : > { %p1543_p0 = pnand %p1542_p12, %p1536_p6 }
  0x30   : > { %1546 = shalt.err (!%p1543_p0)
}
  0x31   : > { %s1728_s29 = smov 128   ;;  %s1729_s15 = smov 8  }
  0x32   : > { %1378 = dma.hbm_to_vmem [thread:$0]  (!%p1864_p11), %s2192_s2, 256, %s1857_s23, [#allocation6], %s1728_s29, %s1728_s29, %s1729_s15  }
  0x33   : > { %s1547_s9 = scalar_lea.hbm %s2193_s3, 256 }
  0x34   : > { %p1548_p1 = scmp.ne.s32.totalorder %s2193_s3, %s1547_s9  ;;  %p1554_p10 = scmp.lt.u32.totalorder %s1547_s9, %s2193_s3 }
  0x36   : > { %p1550_p4 = pnand %p1548_p1, %p1880_p13 }
  0x38   : > { %p1551_p6 = pneg %p1550_p4 }
  0x3a   : > { %p1556_p3 = pnand %p1554_p10, %p1551_p6 }
  0x3c   : > { %1559 = shalt.err (!%p1556_p3)
}
  0x3d   : > { %s1560_s23 = scalar_lea.vmem %s1868_s26, 256  ;;  %p1568_p12 = scmp.lt.s32.totalorder %s1868_s26, %s1868_s26 }
  0x3e   : > { %p1561_p5 = scmp.ne.s32.totalorder %s1868_s26, %s1560_s23  ;;  %p1569_p0 = scmp.lt.s32.totalorder %s1560_s23, %s1560_s23 }
  0x40   : > { %p1563_p7 = pnand %p1561_p5, %p1880_p13  ;;  %p1570_p1 = por %p1569_p0, %p1568_p12 }
  0x42   : > { %p1564_p9 = pneg %p1563_p7 }
  0x44   : > { %p1571_p4 = pnand %p1570_p1, %p1564_p9 }
  0x46   : > { %1574 = shalt.err (!%p1571_p4)
}
  0x47   : > { %1381 = dma.hbm_to_vmem [thread:$0]  (!%p1864_p11), %s2193_s3, 256, %s1868_s26, [#allocation6], %s1728_s29, %s1728_s29, %s1729_s15  }
  0x48   : > { %s1575_s16 = scalar_lea.hbm %s2196_s6, 128 }
  0x49   : > { %p1576_p6 = scmp.ne.s32.totalorder %s2196_s6, %s1575_s16  ;;  %p1582_p5 = scmp.lt.u32.totalorder %s1575_s16, %s2196_s6 }
  0x4b   : > { %p1578_p10 = pnand %p1576_p6, %p1880_p13 }
  0x4d   : > { %p1579_p3 = pneg %p1578_p10 }
  0x4f   : > { %p1584_p7 = pnand %p1582_p5, %p1579_p3 }
  0x51   : > { %1587 = shalt.err (!%p1584_p7)
}
  0x52   : > { %s1588_s23 = scalar_lea.vmem %s325_s28, 128  ;;  %p1596_p1 = scmp.lt.s32.totalorder %s325_s28, %s325_s28 }
  0x53   : > { %p1589_p9 = scmp.ne.s32.totalorder %s325_s28, %s1588_s23  ;;  %p1597_p4 = scmp.lt.s32.totalorder %s1588_s23, %s1588_s23 }
  0x55   : > { %p1591_p12 = pnand %p1589_p9, %p1880_p13  ;;  %p1598_p8 = por %p1597_p4, %p1596_p1 }
  0x57   : > { %p1592_p0 = pneg %p1591_p12 }
  0x59   : > { %p1599_p2 = pnand %p1598_p8, %p1592_p0 }
  0x5b   : > { %1602 = shalt.err (!%p1599_p2)
}
  0x5c   : > { %1384 = dma.hbm_to_vmem [thread:$0]  (!%p1864_p11), %s2196_s6, 128, %s325_s28, [#allocation9]  }
  0x5d   : > { %s46_s30 = sadd.s32 1, %s1711_s11  ;;  %s39_s15 = sadd.s32 1, %s1719_s13 }
  0x5e   : > { %p53_p2 = scmp.ne.s32.totalorder %s1711_s11, %s1707_s10  ;;  %p41_p8 = scmp.ge.s32.totalorder %s39_s15, 2 }
  0x5f   : > { %p54_p13 = scmp.eq.s32.totalorder %s1723_s14, 0  ;;  %p2220_p6 = scmp.ne.s32.totalorder %s2213_s18, 0 }
  0x60   : > { %p1396_p3 = scmp.lt.s32.totalorder %s1723_s14, 2  ;;  %s2240_s15 = smov (%p41_p8, %s39_s15), 0 }
  0x61   : > { %p1950_p10 = por %p2220_p6, %p53_p2  ;;  %p55_p5 = por %p54_p13, %p53_p2 }
  0x62   : > { %s341_s4 = sand.u32 1, %s1711_s11   ;;  %s43_s5 = ssub.s32 %s1719_s13, %s2240_s15 }
  0x63   : > { %p44_p7 = scmp.eq.s32.totalorder %s43_s5, 0  ;;  %s1304_s28 = sshll.u32 %s341_s4, 3 }
  0x64   : > { %s1305_s8 = sshll.u32 %s1719_s13, 7  ;;  %s345_s25 = scalar_lea.vmem [#allocation2], %s1304_s28 }
  0x65   : > { %s1962_s9 = scalar_select %p44_p7, %s1711_s11, %s46_s30  }
  0x66   : > { %s1967_s18 = scalar_lea.hbm %s2190_s0, %s1305_s8  ;;  %s352_s27 = sshll.u32 %s345_s25, 4  ;;  %s1969_s27 = int_to_ptr.vmem [resolvable:$true] %s352_s27 }
  0x67   : > { %p1973_p11 = pnand %p1396_p3, %p55_p5  ;;  %s342_s23 = scalar_lea.sflag [#allocation3], %s341_s4 }
  0x68   : > { %s1603_s26 = scalar_lea.hbm %s1967_s18, 128  ;;  %s1608_s5 = scalar_lea.hbm %s2190_s0, 256 }
  0x69   : > { %p1604_p9 = scmp.ne.s32.totalorder %s1967_s18, %s1603_s26  ;;  %p1605_p12 = pneg %p1973_p11 }
  0x6a   : > { %p1609_p4 = scmp.lt.u32.totalorder %s1967_s18, %s2190_s0  ;;  %p1610_p2 = scmp.lt.u32.totalorder %s1608_s5, %s1603_s26 }
  0x6b   : > { %p1606_p0 = pnand %p1605_p12, %p1604_p9  ;;  %p1612_p13 = scmp.lt.u32.totalorder %s1603_s26, %s1967_s18 }
  0x6c   : > { %p1611_p8 = por %p1610_p2, %p1609_p4 }
  0x6d   : > { %p1607_p1 = pneg %p1606_p0 }
  0x6e   : > { %p1613_p6 = por %p1612_p13, %p1611_p8 }
  0x70   : > { %p1614_p3 = pnand %p1613_p6, %p1607_p1 }
  0x72   : > { %1617 = shalt.err (!%p1614_p3)
}
  0x73   : > { %s1618_s4 = scalar_lea.vmem %s1969_s27, 128  ;;  %s1730_s16 = smov [#allocation2]  }
  0x74   : > { %p1619_p5 = scmp.ne.s32.totalorder %s1969_s27, %s1618_s4  ;;  %s1623_s22 = sshll.u32 %s1730_s16, 4  ;;  %s1624_s22 = int_to_ptr.vmem [resolvable:$false] %s1623_s22 }
  0x75   : > { %s1625_s25 = scalar_lea.vmem %s1624_s22, 256  ;;  %p1626_p0 = scmp.lt.s32.totalorder %s1969_s27, %s1624_s22 }
  0x76   : > { %p1621_p7 = pnand %p1619_p5, %p1605_p12  ;;  %p1627_p4 = scmp.lt.s32.totalorder %s1625_s25, %s1618_s4 }
  0x78   : > { %p1622_p9 = pneg %p1621_p7  ;;  %p1628_p2 = por %p1627_p4, %p1626_p0 }
  0x7a   : > { %p1629_p8 = pnand %p1628_p2, %p1622_p9 }
  0x7c   : > { %1632 = shalt.err (!%p1629_p8)
}
  0x7d   : > { %1388 = dma.hbm_to_vmem [thread:$0]  (!%p1973_p11), %s1967_s18, 128, %s1969_s27, %s342_s23  }
  0x7e   : > { %p2223_p1 = scmp.ne.s32.totalorder %s2217_s21, 0 }
  0x7f   : > { %s2005_s26 = sand.u32 (!%p2223_p1), 1, %s1707_s10   ;;  %p2224_p12 = scmp.ne.s32.totalorder (!%p2223_p1), %s2214_s19, 0 }
  0x80   : > { %367 = sbr.rel (%p2223_p1) target bundleno = 1251 (0x4e3), region = 56  ;;  %s1307_s29 = sshll.u32 (!%p2223_p1), %s2005_s26, 3 }
  0x81   : > { %s370_s30 = scalar_lea.sflag (!%p2223_p1), [#allocation3], %s2005_s26  ;;  %s2011_s5 = scalar_lea.vmem (!%p2223_p1), [#allocation2], %s1307_s29 }
  0x87   : > { %1686 = dma.done.wait (%p2224_p12), %s370_s30, 128  }
  0x88   : > { %1688 = vsyncadd (%p2224_p12), %s370_s30, 4294967168  ;;  %p2225_p11 = scmp.ne.s32.totalorder %s2212_s17, 0 }
  0x8a   : > { %1690 = dma.done.wait (%p2225_p11), [#allocation6], 512  }
  0x8b   : > { %1692 = vsyncadd (%p2225_p11), [#allocation6], 4294966784 }
  0x8c   : > { %1694 = dma.done.wait (%p2225_p11), [#allocation9], 128  }
  0x8d   : > { %1696 = vsyncadd (%p2225_p11), [#allocation9], 4294967168  ;;  %v1731_v0 = vmov 0.0|0.0   ;;  %vm1732_vm0 = vmmov 0   ;;  %v1733_v1 = vmov 0.0   ;;  %p423_p13 = scmp.lt.s32.totalorder %s1715_s12, 1  ;;  %v563_v39 = vlaneseq }
  0x8e   : > { %1355 = vmatprep.subr.bf16.mxu0 %v1731_v0  ;;  %1337 = vmatprep.mubr.msk.f32.mxu0 %vm1732_vm0, %v1733_v1  ;;  %v1734_v2 = vmov 6   ;;  %v1735_v3 = vmov 8   ;;  %vm433_vm1 = vcmask 138240   ;;  %v431_v4 = vld [vmem:[#allocation5] sm:$0xff]  ;;  %v432_v5 = vld [vmem:[#allocation5 + $0x8] sm:$0xff]  ;;  %v513_v8 = vld [vmem:[#allocation7] sm:$0xff] }
  0x8f   : > { %1471 = vset.pattern.permute.xlu1 %v1734_v2  ;;  %1340 = vmatprep.subr.mxu1 %v1733_v1  ;;  %s424_s19 = scalar_select %p423_p13, %s1715_s12, 1  ;;  %vm1357_vm2 = vmpackc.low %vm433_vm1, %vm433_vm1  ;;  %v1356_v6 = vpack.c.bf16 %v432_v5, %v431_v4  ;;  %vm523_vm3 = vcmask 72704   ;;  %v514_v9 = vld [vmem:[#allocation7 + $0x8] sm:$0xff]  ;;  %v2040_v12 = vld [vmem:[%s2197_s7] sm:$0xff]  ;;  %v1736_v16 = vmov 7   ;;  %v1737_v17 = vmov 9  }
  0x90   : > { %1473 = vset.pattern.permute.xlu0 %v1735_v3  ;;  %1342 = vmatprep.mubr.msk.f32.mxu1 %vm1732_vm0, %v1733_v1  ;;  %v427_v15 = vld [vmem:[%s2011_s5] sm:$0xff]  ;;  %s2226_s8 = sld [smem:[#allocation19_spill]]  ;;  %v1738_v19 = vmov 0   ;;  %v1739_v20 = vmov 1   ;;  %v1740_v21 = vmov 2   ;;  %v1741_v22 = vmov 3  }
  0x91   : > { %s425_s18 = scalar_lea.vmem %s2191_s1, %s424_s19  ;;  %1358 = vmatpush3.bf16.xpose.msk.msra.mxu0 %vm1357_vm2, %v1356_v6  ;;  %546 = vperm.xlu1 %1471, %v2040_v12   ;;  %v1742_v23 = vmov 10   ;;  %v1743_v24 = vmov 11   ;;  %v1744_v25 = vmov 12   ;;  %v1745_v26 = vmov 13   ;;  %s2227_s22 = sld [smem:[#allocation17_spill]] }
  0x92   : > { %v1315_v7 = vld [vmem:[%s425_s18] ss:$0 sm:$0xff]  ;;  %vm550_vm4 = vcmask 130048   ;;  %v564_v56 = vshrl.u32 %v563_v39, 7  ;;  %vm861_vm9 = vcmask 64512   ;;  %s2228_s5 = sld [smem:[#allocation18_spill]] }
  0x93   : > { %v521_v10 = vmul.f32 %v1315_v7, %v513_v8  ;;  %v522_v11 = vmul.f32 %v1315_v7, %v514_v9  ;;  %s1321_s19 = sshll.u32 %s1715_s12, 7  ;;  %s422_s17 = scalar_lea.vmem [#allocation10], %s1307_s29 }
  0x94   : > { %v565_v5 = vsub.s32 0, %v564_v56  ;;  %s1178_s21 = sshll.u32 %s422_s17, 4  ;;  %s2229_s20 = sld [smem:[#allocation20_spill]]  ;;  %s2142_s21 = int_to_ptr.vmem [resolvable:$true] %s1178_s21 }
  0x95   : > { %v524_v13 = vsel %vm523_vm3, %v521_v10, 0.0  ;;  %v527_v14 = vsel %vm523_vm3, %v522_v11, 0.0  ;;  %1472 = vset.pattern.permute.xlu1 %v1736_v16  ;;  %s1164_s12 = scalar_lea.sflag [#allocation4], %s2005_s26  ;;  %s1633_s28 = scalar_lea.vmem %s2142_s21, 128 }
  0x96   : > { %525 = vadd.xlane.f32.xlu0 %v524_v13  ;;  %624 = vperm.xlu1 %1472, %v2040_v12   ;;  %v430_v18 = vld [vmem:[%s2226_s8] sm:$0x1]  ;;  %p1634_p6 = scmp.ne.s32.totalorder %s2142_s21, %s1633_s28  ;;  %s1748_s29 = smov [#allocation10]  }
  0x97   : > { %s1637_s8 = sshll.u32 %s1748_s29, 4  ;;  %s1638_s8 = int_to_ptr.vmem [resolvable:$false] %s1637_s8 }
  0x98   : > { %1338 = vmatmul.mubr.msk.f32.vlgmr.msra.gmra.mrb[0].mxu0 %vm433_vm1, %v427_v15  ;;  %p1635_p3 = pnand %p1634_p6, %p1950_p10  ;;  %s1639_s4 = scalar_lea.vmem %s1638_s8, 256 }
  0x99   : > { %p1640_p7 = scmp.lt.s32.totalorder %s2142_s21, %s1638_s8  ;;  %p1641_p9 = scmp.lt.s32.totalorder %s1639_s4, %s1633_s28 }
  0x9a   : > { %528 = vadd.xlane.f32.xlu0 %v527_v14  ;;  %1474 = vset.pattern.permute.xlu1 %v1737_v17  ;;  %s2140_s23 = scalar_lea.hbm %s2229_s20, %s1321_s19  ;;  %p1636_p5 = pneg %p1635_p3 }
  0x9b   : > { %776 = vperm.xlu1 %1474, %v2040_v12   ;;  %p1642_p0 = por %p1641_p9, %p1640_p7 }
  0x9d   : > { %p1643_p4 = pnand %p1642_p0, %p1636_p5 }
  0x9f   : > { %1475 = vset.pattern.permute.xlu1 %v1738_v19 }
  0xa0   : > { %560 = vperm.xlu1 %1475, %v430_v18  }
  0xa4   : > { %1476 = vset.pattern.permute.xlu1 %v1739_v20 }
  0xa5   : > { %636 = vperm.xlu1 %1476, %v430_v18  }
  0xa9   : > { %1477 = vset.pattern.permute.xlu1 %v1740_v21 }
  0xaa   : > { %712 = vperm.xlu1 %1477, %v430_v18  }
  0xae   : > { %1478 = vset.pattern.permute.xlu1 %v1741_v22 }
  0xaf   : > { %788 = vperm.xlu1 %1478, %v430_v18  }
  0xb0   : > { %700 = vperm.xlu0 %1473, %v2040_v12  }
  0xb3   : > { %1479 = vset.pattern.permute.xlu1 %v1742_v23 }
  0xb4   : > { %1485 = vset.pattern.permute.xlu0 %v1740_v21  ;;  %618 = vperm.xlu1 %1479, %v2040_v12  }
  0xb5   : > { %959 = vperm.xlu0 %1485, %v2040_v12  }
  0xb8   : > { %1480 = vset.pattern.permute.xlu1 %v1743_v24 }
  0xb9   : > { %694 = vperm.xlu1 %1480, %v2040_v12  }
  0xbd   : > { %1481 = vset.pattern.permute.xlu1 %v1744_v25 }
  0xbe   : > { %770 = vperm.xlu1 %1481, %v2040_v12  }
  0xc2   : > { %1482 = vset.pattern.permute.xlu1 %v1745_v26 }
  0xc3   : > { %846 = vperm.xlu1 %1482, %v2040_v12  }
  0xc7   : > { %1483 = vset.pattern.permute.xlu1 %v1738_v19 }
  0xc8   : > { %852 = vperm.xlu1 %1483, %v2040_v12  }
  0xcc   : > { %1484 = vset.pattern.permute.xlu1 %v1739_v20 }
  0xcd   : > { %858 = vperm.xlu1 %1484, %v2040_v12  }
  0xd1   : > { %1486 = vset.pattern.permute.xlu1 %v1741_v22 }
  0xd2   : > { %964 = vperm.xlu1 %1486, %v2040_v12  }
 0x110   : > { %v547_v27 = vpop.permute.xlu1 %546 }
 0x115   : > { %v625_v28 = vpop.permute.xlu1 %624 }
 0x11a   : > { %v777_v30 = vpop.permute.xlu1 %776 }
 0x11f   : > { %v561_v34 = vpop.permute.xlu1 %560 }
 0x120   : > { %v566_v20 = vrot.slane %v561_v34, %v565_v5 }
 0x123   : > { %v2059_v29 = vpop.xlane.xlu0 %525 }
 0x124   : > { %v637_v42 = vpop.permute.xlu1 %636 }
 0x125   : > { %v642_v21 = vrot.slane %v637_v42, %v565_v5 }
 0x127   : > { %v2061_v31 = vpop.xlane.xlu0 %528 }
 0x128   : > { %v530_v32 = vmax.f32 %v2059_v29, %v2061_v31  ;;  %v537_v33 = vmin.f32 %v2059_v29, %v2061_v31 }
 0x129   : > { %v713_v61 = vpop.permute.xlu1 %712 }
 0x12a   : > { %v531_v35 = vrot.slane %v530_v32, 4  ;;  %v538_v36 = vrot.slane %v537_v33, 4  ;;  %v718_v13 = vrot.slane %v713_v61, %v565_v5 }
 0x12c   : > { %v532_v40 = vmax.f32 %v530_v32, %v531_v35  ;;  %v539_v41 = vmin.f32 %v537_v33, %v538_v36 }
 0x12e   : > { %v533_v57 = vrot.slane %v532_v40, 2  ;;  %v540_v58 = vrot.slane %v539_v41, 2  ;;  %v789_v17 = vpop.permute.xlu1 %788 }
 0x12f   : > { %v701_v37 = vpop.permute.xlu0 %700 }
 0x130   : > { %v534_v6 = vmax.f32 %v532_v40, %v533_v57  ;;  %v541_v7 = vmin.f32 %v539_v41, %v540_v58 }
 0x132   : > { %v535_v19 = vrot.slane %v534_v6, 1  ;;  %v542_v22 = vrot.slane %v541_v7, 1 }
 0x134   : > { %v536_v33 = vmax.f32 %v534_v6, %v535_v19  ;;  %v543_v35 = vmin.f32 %v541_v7, %v542_v22 }
 0x16b   : > { %v2067_v38 = vpop.f32.mrb[0].mxu0 }
 0x16c   : > { %v549_v43 = vmul.f32 %v547_v27, %v2067_v38  ;;  %v627_v44 = vmul.f32 %v625_v28, %v2067_v38  ;;  %v703_v45 = vmul.f32 %v701_v37, %v2067_v38  ;;  %v779_v46 = vmul.f32 %v777_v30, %v2067_v38  ;;  %v1339_v47 = vpop.f32.mrb[1].mxu0 }
 0x16d   : > { %v794_v27 = vrot.slane %v789_v17, %v565_v5 }
 0x16e   : > { %v551_v48 = vsel %vm550_vm4, %v549_v43, 0.0  ;;  %v628_v49 = vsel %vm550_vm4, %v627_v44, 0.0  ;;  %v704_v50 = vsel %vm550_vm4, %v703_v45, 0.0  ;;  %v780_v51 = vsel %vm550_vm4, %v779_v46, 0.0 }
 0x16f   : > { %v552_v52 = vrot.slane %v551_v48, 4  ;;  %v629_v53 = vrot.slane %v628_v49, 4  ;;  %v705_v54 = vrot.slane %v704_v50, 4  ;;  %v781_v55 = vrot.slane %v780_v51, 4 }
 0x171   : > { %v553_v59 = vadd.f32 %v552_v52, %v551_v48  ;;  %v630_v60 = vadd.f32 %v629_v53, %v628_v49  ;;  %v706_v62 = vadd.f32 %v705_v54, %v704_v50  ;;  %v782_v63 = vadd.f32 %v781_v55, %v780_v51 }
 0x173   : > { %v554_v0 = vrot.slane %v553_v59, 2  ;;  %v631_v2 = vrot.slane %v630_v60, 2  ;;  %v707_v3 = vrot.slane %v706_v62, 2  ;;  %v783_v4 = vrot.slane %v782_v63, 2 }
 0x175   : > { %v555_v8 = vadd.f32 %v554_v0, %v553_v59  ;;  %v632_v9 = vadd.f32 %v631_v2, %v630_v60  ;;  %v708_v10 = vadd.f32 %v707_v3, %v706_v62  ;;  %v784_v11 = vadd.f32 %v783_v4, %v782_v63 }
 0x177   : > { %v556_v14 = vrot.slane %v555_v8, 1  ;;  %v633_v15 = vrot.slane %v632_v9, 1  ;;  %v709_v16 = vrot.slane %v708_v10, 1  ;;  %v785_v18 = vrot.slane %v784_v11, 1 }
 0x179   : > { %v557_v23 = vadd.f32 %v556_v14, %v555_v8  ;;  %v634_v24 = vadd.f32 %v633_v15, %v632_v9  ;;  %v710_v25 = vadd.f32 %v709_v16, %v708_v10  ;;  %v786_v26 = vadd.f32 %v785_v18, %v784_v11 }
 0x17b   : > { %v567_v28 = vadd.f32 %v566_v20, %v557_v23  ;;  %v643_v30 = vadd.f32 %v642_v21, %v634_v24  ;;  %v719_v32 = vadd.f32 %v718_v13, %v710_v25  ;;  %v795_v40 = vadd.f32 %v794_v27, %v786_v26 }
 0x17d   : > { %v568_v36 = vmul.f32 0.70710677, %v567_v28  ;;  %v644_v37 = vmul.f32 0.70710677, %v643_v30  ;;  %v720_v39 = vmul.f32 0.70710677, %v719_v32 }
 0x17e   : > { %v796_v56 = vmul.f32 0.70710677, %v795_v40 }
 0x17f   : > { %vm569_vm5 = vcmp.ge.f32.partialorder %v568_v36, 0.0  ;;  %v570_v41 = vmul.f32 %v568_v36, %v536_v33  ;;  %v571_v43 = vmul.f32 %v568_v36, %v543_v35  ;;  %v573_v34 = vmul.f32 %v568_v36, %v2059_v29 }
 0x180   : > { %v594_v42 = vmul.f32 %v568_v36, %v2061_v31  ;;  %vm645_vm6 = vcmp.ge.f32.partialorder %v644_v37, 0.0  ;;  %v646_v44 = vmul.f32 %v644_v37, %v536_v33  ;;  %v647_v45 = vmul.f32 %v644_v37, %v543_v35 }
 0x181   : > { %v572_v46 = vsel %vm569_vm5, %v570_v41, %v571_v43  ;;  %v649_v47 = vmul.f32 %v644_v37, %v2059_v29  ;;  %v670_v48 = vmul.f32 %v644_v37, %v2061_v31  ;;  %vm721_vm7 = vcmp.ge.f32.partialorder %v720_v39, 0.0 }
 0x182   : > { %v574_v49 = vsub.f32 %v573_v34, %v572_v46  ;;  %v595_v50 = vsub.f32 %v594_v42, %v572_v46  ;;  %v648_v51 = vsel %vm645_vm6, %v646_v44, %v647_v45  ;;  %v722_v52 = vmul.f32 %v720_v39, %v536_v33 }
 0x183   : > { %v650_v53 = vsub.f32 %v649_v47, %v648_v51  ;;  %v671_v54 = vsub.f32 %v670_v48, %v648_v51  ;;  %v723_v55 = vmul.f32 %v720_v39, %v543_v35  ;;  %v725_v59 = vmul.f32 %v720_v39, %v2059_v29 }
 0x184   : > { %v575_v57 = vmul.f32 1.442695, %v574_v49  ;;  %v596_v58 = vmul.f32 1.442695, %v595_v50  ;;  %v746_v63 = vmul.f32 %v720_v39, %v2061_v31  ;;  %v798_v0 = vmul.f32 %v796_v56, %v536_v33 }
 0x185   : > { %v651_v60 = vmul.f32 1.442695, %v650_v53  ;;  %v672_v61 = vmul.f32 1.442695, %v671_v54  ;;  %v724_v62 = vsel %vm721_vm7, %v722_v52, %v723_v55  ;;  %v799_v2 = vmul.f32 %v796_v56, %v543_v35 }
 0x186   : > { %1489 = vpow2.f32 %v575_v57  ;;  %v726_v3 = vsub.f32 %v725_v59, %v724_v62  ;;  %vm797_vm8 = vcmp.ge.f32.partialorder %v796_v56, 0.0  ;;  %v747_v4 = vsub.f32 %v746_v63, %v724_v62 }
 0x187   : > { %1491 = vpow2.f32 %v596_v58  ;;  %v801_v5 = vmul.f32 %v796_v56, %v2059_v29  ;;  %v800_v6 = vsel %vm797_vm8, %v798_v0, %v799_v2  ;;  %v822_v9 = vmul.f32 %v796_v56, %v2061_v31 }
 0x188   : > { %1493 = vpow2.f32 %v651_v60  ;;  %v727_v7 = vmul.f32 1.442695, %v726_v3  ;;  %v748_v8 = vmul.f32 1.442695, %v747_v4 }
 0x189   : > { %1495 = vpow2.f32 %v672_v61  ;;  %v802_v10 = vsub.f32 %v801_v5, %v800_v6  ;;  %v823_v14 = vsub.f32 %v822_v9, %v800_v6 }
 0x18a   : > { %1497 = vpow2.f32 %v727_v7 }
 0x18b   : > { %1499 = vpow2.f32 %v748_v8  ;;  %v803_v18 = vmul.f32 1.442695, %v802_v10  ;;  %v824_v39 = vmul.f32 1.442695, %v823_v14 }
 0x18d   : > { %1501 = vpow2.f32 %v803_v18 }
 0x18e   : > { %1503 = vpow2.f32 %v824_v39 }
 0x190   : > { %v1490_v11 = vpop.eup %1489 }
 0x191   : > { %v1492_v13 = vpop.eup %1491  ;;  %v577_v15 = vsel %vm550_vm4, %v1490_v11, 0.0  ;;  %v585_v16 = vmul.f32 %v1490_v11, %v2059_v29 }
 0x192   : > { %v1494_v17 = vpop.eup %1493  ;;  %v578_v19 = vrot.slane %v577_v15, 4  ;;  %v598_v20 = vsel %vm550_vm4, %v1492_v13, 0.0  ;;  %v606_v21 = vmul.f32 %v1492_v13, %v2061_v31 }
 0x193   : > { %v1496_v22 = vpop.eup %1495  ;;  %v586_v23 = vsel %vm550_vm4, %v585_v16, 0.0  ;;  %v599_v24 = vrot.slane %v598_v20, 4  ;;  %v653_v25 = vsel %vm550_vm4, %v1494_v17, 0.0  ;;  %v661_v26 = vmul.f32 %v1494_v17, %v2059_v29 }
 0x194   : > { %v579_v27 = vadd.f32 %v578_v19, %v577_v15  ;;  %v587_v28 = vrot.slane %v586_v23, 4  ;;  %v607_v30 = vsel %vm550_vm4, %v606_v21, 0.0  ;;  %v654_v32 = vrot.slane %v653_v25, 4  ;;  %v1498_v52 = vpop.eup %1497 }
 0x195   : > { %v600_v33 = vadd.f32 %v599_v24, %v598_v20  ;;  %v608_v35 = vrot.slane %v607_v30, 4  ;;  %v662_v36 = vsel %vm550_vm4, %v661_v26, 0.0  ;;  %v674_v37 = vsel %vm550_vm4, %v1496_v22, 0.0  ;;  %v1500_v55 = vpop.eup %1499 }
 0x196   : > { %v580_v40 = vrot.slane %v579_v27, 2  ;;  %v655_v41 = vadd.f32 %v654_v32, %v653_v25  ;;  %v675_v34 = vrot.slane %v674_v37, 4  ;;  %v682_v42 = vmul.f32 %v1496_v22, %v2061_v31 }
 0x197   : > { %v601_v43 = vrot.slane %v600_v33, 2  ;;  %v588_v45 = vadd.f32 %v587_v28, %v586_v23  ;;  %v663_v47 = vrot.slane %v662_v36, 4  ;;  %v609_v49 = vadd.f32 %v608_v35, %v607_v30  ;;  %v1502_v7 = vpop.eup %1501 }
 0x198   : > { %v581_v44 = vadd.f32 %v580_v40, %v579_v27  ;;  %v656_v46 = vrot.slane %v655_v41, 2  ;;  %v676_v50 = vadd.f32 %v675_v34, %v674_v37  ;;  %v683_v51 = vsel %vm550_vm4, %v682_v42, 0.0  ;;  %v1504_v25 = vpop.eup %1503 }
 0x199   : > { %v602_v48 = vadd.f32 %v601_v43, %v600_v33  ;;  %v684_v58 = vrot.slane %v683_v51, 4  ;;  %v589_v59 = vrot.slane %v588_v45, 2  ;;  %v664_v61 = vadd.f32 %v663_v47, %v662_v36 }
 0x19a   : > { %v582_v53 = vrot.slane %v581_v44, 1  ;;  %v657_v54 = vadd.f32 %v656_v46, %v655_v41  ;;  %v677_v57 = vrot.slane %v676_v50, 2  ;;  %v610_v0 = vrot.slane %v609_v49, 2 }
 0x19b   : > { %v603_v56 = vrot.slane %v602_v48, 1  ;;  %v729_v3 = vsel %vm550_vm4, %v1498_v52, 0.0  ;;  %v685_v6 = vadd.f32 %v684_v58, %v683_v51  ;;  %v590_v8 = vadd.f32 %v589_v59, %v588_v45 }
 0x19c   : > { %v658_v60 = vrot.slane %v657_v54, 1  ;;  %v583_v62 = vadd.f32 %v582_v53, %v581_v44  ;;  %v678_v2 = vadd.f32 %v677_v57, %v676_v50  ;;  %v730_v9 = vrot.slane %v729_v3, 4 }
 0x19d   : > { %v604_v63 = vadd.f32 %v603_v56, %v602_v48  ;;  %v737_v10 = vmul.f32 %v1498_v52, %v2059_v29  ;;  %v750_v11 = vsel %vm550_vm4, %v1500_v55, 0.0  ;;  %v611_v14 = vadd.f32 %v610_v0, %v609_v49 }
 0x19e   : > { %v659_v4 = vadd.f32 %v658_v60, %v657_v54  ;;  %v679_v5 = vrot.slane %v678_v2, 1  ;;  %v665_v15 = vrot.slane %v664_v61, 2  ;;  %v731_v17 = vadd.f32 %v730_v9, %v729_v3 }
 0x19f   : > { %v605_v13 = vadd.f32 %v604_v63, %v583_v62  ;;  %v738_v18 = vsel %vm550_vm4, %v737_v10, 0.0  ;;  %v751_v19 = vrot.slane %v750_v11, 4  ;;  %v758_v20 = vmul.f32 %v1500_v55, %v2061_v31 }
 0x1a0   : > { %v680_v16 = vadd.f32 %v679_v5, %v678_v2  ;;  %v686_v22 = vrot.slane %v685_v6, 2  ;;  %v739_v23 = vrot.slane %v738_v18, 4  ;;  %v805_v24 = vsel %vm550_vm4, %v1502_v7, 0.0 }
 0x1a1   : > { %v732_v26 = vrot.slane %v731_v17, 2  ;;  %v752_v27 = vadd.f32 %v751_v19, %v750_v11  ;;  %v759_v28 = vsel %vm550_vm4, %v758_v20, 0.0  ;;  %v806_v30 = vrot.slane %v805_v24, 4 }
 0x1a2   : > { %v681_v21 = vadd.f32 %v680_v16, %v659_v4  ;;  %1505 = vrcp.f32 %v605_v13  ;;  %v666_v32 = vadd.f32 %v665_v15, %v664_v61  ;;  %v740_v33 = vadd.f32 %v739_v23, %v738_v18 }
 0x1a3   : > { %v760_v35 = vrot.slane %v759_v28, 4  ;;  %v733_v36 = vadd.f32 %v732_v26, %v731_v17  ;;  %v753_v37 = vrot.slane %v752_v27, 2  ;;  %v807_v39 = vadd.f32 %v806_v30, %v805_v24 }
 0x1a4   : > { %v813_v40 = vmul.f32 %v1502_v7, %v2059_v29  ;;  %v687_v41 = vadd.f32 %v686_v22, %v685_v6  ;;  %1507 = vrcp.f32 %v681_v21  ;;  %v826_v34 = vsel %vm550_vm4, %v1504_v25, 0.0  ;;  %v619_v6 = vpop.permute.xlu1 %618 }
 0x1a5   : > { %v761_v43 = vadd.f32 %v760_v35, %v759_v28  ;;  %v734_v42 = vrot.slane %v733_v36, 1  ;;  %v754_v44 = vadd.f32 %v753_v37, %v752_v27  ;;  %v808_v45 = vrot.slane %v807_v39, 2 }
 0x1a6   : > { %v814_v46 = vsel %vm550_vm4, %v813_v40, 0.0  ;;  %v741_v47 = vrot.slane %v740_v33, 2  ;;  %v827_v50 = vrot.slane %v826_v34, 4  ;;  %v834_v54 = vmul.f32 %v1504_v25, %v2061_v31 }
 0x1a7   : > { %v762_v48 = vrot.slane %v761_v43, 2  ;;  %v815_v49 = vrot.slane %v814_v46, 4  ;;  %v735_v51 = vadd.f32 %v734_v42, %v733_v36  ;;  %v755_v52 = vrot.slane %v754_v44, 1 }
 0x1a8   : > { %v809_v53 = vadd.f32 %v808_v45, %v807_v39  ;;  %v591_v29 = vrot.slane %v590_v8, 1  ;;  %v612_v55 = vrot.slane %v611_v14, 1  ;;  %v667_v56 = vrot.slane %v666_v32, 1  ;;  %v695_v27 = vpop.permute.xlu1 %694 }
 0x1a9   : > { %v828_v57 = vadd.f32 %v827_v50, %v826_v34  ;;  %v688_v58 = vrot.slane %v687_v41, 1  ;;  %v756_v59 = vadd.f32 %v755_v52, %v754_v44  ;;  %v816_v60 = vadd.f32 %v815_v49, %v814_v46 }
 0x1aa   : > { %v835_v61 = vsel %vm550_vm4, %v834_v54, 0.0  ;;  %v810_v62 = vrot.slane %v809_v53, 1  ;;  %v742_v0 = vadd.f32 %v741_v47, %v740_v33  ;;  %v763_v3 = vadd.f32 %v762_v48, %v761_v43 }
 0x1ab   : > { %v829_v63 = vrot.slane %v828_v57, 2  ;;  %v757_v2 = vadd.f32 %v756_v59, %v735_v51  ;;  %v836_v4 = vrot.slane %v835_v61, 4  ;;  %v592_v7 = vadd.f32 %v591_v29, %v590_v8  ;;  %v856_v29 = vld [vmem:[%s2227_s22] sm:$0xff] }
 0x1ac   : > { %v1506_v5 = vpop.eup %1505  ;;  %v613_v9 = vadd.f32 %v612_v55, %v611_v14  ;;  %v668_v31 = vadd.f32 %v667_v56, %v666_v32  ;;  %v689_v11 = vadd.f32 %v688_v58, %v687_v41  ;;  %v817_v13 = vrot.slane %v816_v60, 2  ;;  %v771_v41 = vpop.permute.xlu1 %770 }
 0x1ad   : > { %v830_v10 = vadd.f32 %v829_v63, %v828_v57  ;;  %1509 = vrcp.f32 %v757_v2  ;;  %v837_v15 = vadd.f32 %v836_v4, %v835_v61  ;;  %v811_v17 = vadd.f32 %v810_v62, %v809_v53 }
 0x1ae   : > { %v1508_v16 = vpop.eup %1507  ;;  %v743_v19 = vrot.slane %v742_v0, 1  ;;  %v764_v20 = vrot.slane %v763_v3, 1  ;;  %v614_v23 = vadd.f32 %v613_v9, %v592_v7  ;;  %v690_v24 = vadd.f32 %v689_v11, %v668_v31 }
 0x1af   : > { %v831_v18 = vrot.slane %v830_v10, 1  ;;  %v838_v21 = vrot.slane %v837_v15, 2  ;;  %v818_v25 = vadd.f32 %v817_v13, %v816_v60  ;;  %v1746_v55 = vmov 4  }
 0x1b0   : > { %v616_v14 = vmul.f32 %v1506_v5, %v614_v23  ;;  %v692_v28 = vmul.f32 %v1508_v16, %v690_v24  ;;  %v744_v30 = vadd.f32 %v743_v19, %v742_v0  ;;  %v765_v32 = vadd.f32 %v764_v20, %v763_v3  ;;  %v847_v48 = vpop.permute.xlu1 %846  ;;  %1487 = vset.pattern.permute.xlu1 %v1746_v55  ;;  %v960_v19 = vpop.permute.xlu0 %959  ;;  %v968_v24 = vld [vmem:[%s2228_s5] sm:$0xff] }
 0x1b1   : > { %v832_v22 = vadd.f32 %v831_v18, %v830_v10  ;;  %v839_v26 = vadd.f32 %v838_v21, %v837_v15  ;;  %v819_v33 = vrot.slane %v818_v25, 1  ;;  %970 = vperm.xlu1 %1487, %v2040_v12  }
 0x1b2   : > { %v621_v37 = vmul.f32 %v619_v6, %v616_v14  ;;  %v697_v39 = vmul.f32 %v695_v27, %v692_v28  ;;  %v766_v40 = vadd.f32 %v765_v32, %v744_v30 }
 0x1b3   : > { %v833_v8 = vadd.f32 %v832_v22, %v811_v17  ;;  %v840_v35 = vrot.slane %v839_v26, 1  ;;  %v820_v34 = vadd.f32 %v819_v33, %v818_v25  ;;  %v1747_v25 = vmov 5  }
 0x1b4   : > { %v698_v44 = vadd.f32 %v697_v39, %v621_v37  ;;  %v853_v52 = vpop.permute.xlu1 %852  ;;  %1488 = vset.pattern.permute.xlu0 %v1747_v25 }
 0x1b5   : > { %1511 = vrcp.f32 %v833_v8  ;;  %v841_v42 = vadd.f32 %v840_v35, %v839_v26  ;;  %1085 = vperm.xlu0 %1488, %v2040_v12  }
 0x1b7   : > { %v1510_v36 = vpop.eup %1509  ;;  %v842_v46 = vadd.f32 %v841_v42, %v820_v34 }
 0x1b8   : > { %v768_v43 = vmul.f32 %v1510_v36, %v766_v40  ;;  %v859_v56 = vpop.permute.xlu1 %858 }
 0x1ba   : > { %v773_v45 = vmul.f32 %v771_v41, %v768_v43 }
 0x1bc   : > { %v774_v49 = vadd.f32 %v773_v45, %v698_v44  ;;  %v965_v21 = vpop.permute.xlu1 %964 }
 0x1bf   : > { %v1512_v47 = vpop.eup %1511 }
 0x1c0   : > { %v844_v50 = vmul.f32 %v1512_v47, %v842_v46 }
 0x1c2   : > { %v849_v51 = vmul.f32 %v847_v48, %v844_v50 }
 0x1c4   : > { %v850_v53 = vadd.f32 %v849_v51, %v774_v49 }
 0x1c6   : > { %v855_v54 = vadd.f32 %v853_v52, %v850_v53 }
 0x1c8   : > { %1341 = vmatpush3.msra.mxu1 %v855_v54 }
 0x1c9   : > { %1343 = vmatmul.mubr.msk.f32.vlgmr.msra.gmra.mrb[0].mxu1 %vm861_vm9, %v856_v29  ;;  %1345 = vmatprep.subr.mxu1 %v1733_v1 }
 0x1ca   : > { %1347 = vmatprep.mubr.msk.f32.mxu1 %vm1732_vm0, %v1733_v1 }
 0x230   : > { %v971_v26 = vpop.permute.xlu1 %970 }
 0x29c   : > { %v931_v57 = vpop.f32.mrb[0].mxu1 }
 0x29d   : > { %v932_v58 = vadd.f32 %v931_v57, %v859_v56  ;;  %v1344_v59 = vpop.f32.mrb[1].mxu1 }
 0x29f   : > { %v2118_v60 = vadd.f32 %v932_v58, %v2067_v38 }
 0x2a1   : > { %v936_v61 = vsel %vm550_vm4, %v2118_v60, 0.0 }
 0x2a2   : > { %v937_v62 = vrot.slane %v936_v61, 4 }
 0x2a4   : > { %v938_v63 = vadd.f32 %v937_v62, %v936_v61 }
 0x2a6   : > { %v939_v0 = vrot.slane %v938_v63, 2 }
 0x2a8   : > { %v940_v2 = vadd.f32 %v939_v0, %v938_v63  ;;  %v1083_v0 = vld [vmem:[#allocation8] sm:$0xff] }
 0x2aa   : > { %v941_v3 = vrot.slane %v940_v2, 1 }
 0x2ac   : > { %v942_v4 = vadd.f32 %v941_v3, %v940_v2  ;;  %v1086_v2 = vpop.permute.xlu0 %1085 }
 0x2ae   : > { %v944_v5 = vmul.f32 0.125, %v942_v4 }
 0x2b0   : > { %v945_v6 = vsub.f32 %v2118_v60, %v944_v5 }
 0x2b2   : > { %v946_v7 = vmul.f32 %v945_v6, %v945_v6 }
 0x2b4   : > { %v947_v9 = vsel %vm550_vm4, %v946_v7, 0.0 }
 0x2b5   : > { %v948_v31 = vrot.slane %v947_v9, 4 }
 0x2b7   : > { %v949_v10 = vadd.f32 %v948_v31, %v947_v9 }
 0x2b9   : > { %v950_v11 = vrot.slane %v949_v10, 2 }
 0x2bb   : > { %v951_v38 = vadd.f32 %v950_v11, %v949_v10 }
 0x2bd   : > { %v952_v13 = vrot.slane %v951_v38, 1 }
 0x2bf   : > { %v953_v15 = vadd.f32 %v952_v13, %v951_v38 }
 0x2c1   : > { %v954_v16 = vmul.f32 0.125, %v953_v15 }
 0x2c3   : > { %v955_v17 = vadd.f32 1e-05, %v954_v16 }
 0x2c5   : > { %1513 = vrsqrt.f32 %v955_v17 }
 0x2cf   : > { %v1514_v18 = vpop.eup %1513 }
 0x2d0   : > { %v957_v20 = vmul.f32 %v1514_v18, %v945_v6 }
 0x2d2   : > { %v962_v22 = vmul.f32 %v960_v19, %v957_v20 }
 0x2d4   : > { %v967_v23 = vadd.f32 %v965_v21, %v962_v22 }
 0x2d6   : > { %1346 = vmatpush3.msra.mxu1 %v967_v23 }
 0x2d7   : > { %1348 = vmatmul.mubr.msk.f32.vlgmr.msra.gmra.mrb[2].mxu1 %vm861_vm9, %v968_v24  ;;  %1350 = vmatprep.subr.mxu1 %v1733_v1 }
 0x2d8   : > { %1352 = vmatprep.mubr.msk.f32.mxu1 %vm1732_vm0, %v1733_v1 }
 0x3aa   : > { %v1042_v27 = vpop.f32.mrb[2].mxu1 }
 0x3ab   : > { %v1043_v8 = vadd.f32 %v1042_v27, %v971_v26  ;;  %v1349_v14 = vpop.f32.mrb[3].mxu1 }
 0x3ad   : > { %v1047_v28 = vmul.f32 0.70710677, %v1043_v8  ;;  %v1046_v61 = vmul.f32 0.5, %v1043_v8 }
 0x3af   : > { %v1048_v30 = vand.u32 2147483647, %v1047_v28  ;;  %vm1078_vm10 = vcmp.ge.f32.partialorder %v1047_v28, 0.0 }
 0x3b1   : > { %v1049_v32 = vmul.f32 0.5, %v1048_v30  ;;  %v1053_v46 = vsub.f32 0.0, %v1048_v30 }
 0x3b3   : > { %v1050_v33 = vadd.f32 1.0, %v1049_v32  ;;  %v1054_v49 = vmul.f32 %v1053_v46, %v1048_v30 }
 0x3b5   : > { %1515 = vrcp.f32 %v1050_v33  ;;  %v1318_v52 = vadd.f32 -1.2655122, %v1054_v49 }
 0x3bf   : > { %v1516_v35 = vpop.eup %1515 }
 0x3c0   : > { %v1056_v36 = vmul.f32 0.17087276, %v1516_v35 }
 0x3c2   : > { %v1057_v37 = vadd.f32 -0.82215226, %v1056_v36 }
 0x3c4   : > { %v1058_v39 = vmul.f32 %v1516_v35, %v1057_v37 }
 0x3c6   : > { %v1059_v40 = vadd.f32 1.4885159, %v1058_v39 }
 0x3c8   : > { %v1060_v41 = vmul.f32 %v1516_v35, %v1059_v40 }
 0x3ca   : > { %v1061_v1 = vadd.f32 -1.135204, %v1060_v41 }
 0x3cc   : > { %v1062_v43 = vmul.f32 %v1516_v35, %v1061_v1 }
 0x3ce   : > { %v1063_v34 = vadd.f32 0.27886808, %v1062_v43 }
 0x3d0   : > { %v1064_v42 = vmul.f32 %v1516_v35, %v1063_v34 }
 0x3d2   : > { %v1065_v12 = vadd.f32 -0.18628806, %v1064_v42 }
 0x3d4   : > { %v1066_v44 = vmul.f32 %v1516_v35, %v1065_v12 }
 0x3d6   : > { %v1067_v45 = vadd.f32 0.09678418, %v1066_v44 }
 0x3d8   : > { %v1068_v47 = vmul.f32 %v1516_v35, %v1067_v45 }
 0x3da   : > { %v1069_v48 = vadd.f32 0.37409195, %v1068_v47 }
 0x3dc   : > { %v1070_v50 = vmul.f32 %v1516_v35, %v1069_v48 }
 0x3de   : > { %v1071_v51 = vadd.f32 1.0000237, %v1070_v50 }
 0x3e0   : > { %v1072_v53 = vmul.f32 %v1516_v35, %v1071_v51 }
 0x3e2   : > { %v1073_v54 = vadd.f32 %v1318_v52, %v1072_v53 }
 0x3e4   : > { %v1074_v29 = vmul.f32 1.442695, %v1073_v54 }
 0x3e6   : > { %1517 = vpow2.f32 %v1074_v29 }
 0x3f0   : > { %v1518_v55 = vpop.eup %1517 }
 0x3f1   : > { %v1076_v56 = vmul.f32 %v1518_v55, %v1516_v35 }
 0x3f3   : > { %v1077_v57 = vsub.f32 1.0, %v1076_v56 }
 0x3f5   : > { %v1079_v58 = vsub.f32 0.0, %v1077_v57 }
 0x3f7   : > { %v1080_v59 = vsel %vm1078_vm10, %v1077_v57, %v1079_v58 }
 0x3f8   : > { %v1081_v62 = vadd.f32 1.0, %v1080_v59 }
 0x3fa   : > { %v1082_v63 = vmul.f32 %v1081_v62, %v1046_v61 }
 0x3fc   : > { %1351 = vmatpush3.msra.mxu1 %v1082_v63 }
 0x3fd   : > { %1353 = vmatmul.mubr.msk.f32.vlgmr.msra.gmra.mrb[4].mxu1 %vm861_vm9, %v1083_v0 }
 0x4d0   : > { %v1157_v3 = vpop.f32.mrb[4].mxu1 }
 0x4d1   : > { %v1158_v4 = vadd.f32 %v1157_v3, %v1086_v2  ;;  %v1354_v5 = vpop.f32.mrb[5].mxu1 }
 0x4d3   : > { %v1161_v6 = vadd.f32 %v1158_v4, %v2118_v60 }
 0x4d5   : > { %1162 = vst.msk [vmem:[%s422_s17] sm:$0xff] %vm550_vm4, %v1161_v6 }
 0x4d6   : > { %1646 = shalt.err (!%p1643_p4)
}
 0x4d7   : > { %s1647_s26 = scalar_lea.hbm %s2140_s23, 128  ;;  %s1651_s25 = scalar_lea.hbm %s2229_s20, 256 }
 0x4d8   : > { %p1648_p2 = scmp.ne.s32.totalorder %s2140_s23, %s1647_s26  ;;  %p1652_p12 = scmp.lt.u32.totalorder %s2140_s23, %s2229_s20 }
 0x4d9   : > { %p1653_p11 = scmp.lt.u32.totalorder %s1651_s25, %s1647_s26  ;;  %p1655_p6 = scmp.lt.u32.totalorder %s1647_s26, %s2140_s23 }
 0x4da   : > { %p1649_p8 = pnand %p1648_p2, %p1950_p10 }
 0x4db   : > { %p1654_p13 = por %p1653_p11, %p1652_p12 }
 0x4dc   : > { %p1650_p1 = pneg %p1649_p8 }
 0x4dd   : > { %p1656_p3 = por %p1655_p6, %p1654_p13 }
 0x4df   : > { %p1657_p5 = pnand %p1656_p3, %p1650_p1 }
 0x4e1   : > { %1660 = shalt.err (!%p1657_p5)
}
 0x4e2   : > { %1373 = dma.vmem_to_hbm [thread:$0]  (%p1950_p10), %s2142_s21, 128, %s2140_s23, %s1164_s12  }
 0x4e3 PF: > { %s2230_s19 = sld [smem:[#allocation15_spill]]  ;;  %s2231_s17 = sld [smem:[#allocation16_spill]] }
 0x4e4   : > { %p2233_p9 = scmp.ge.s32.totalorder %s1723_s14, 2 }
 0x4e9   : > { %s1190_s18 = sand.u32 1, %s2230_s19   ;;  %p2232_p7 = scmp.ne.s32.totalorder %s2231_s17, 0 }
 0x4ea   : > { %s1191_s27 = scalar_lea.sflag [#allocation4], %s1190_s18 }
 0x4eb   : > { %p1390_p0 = pnand %p2233_p9, %p2232_p7 }
 0x4ed   : > { %1698 = dma.done.wait (!%p1390_p0), %s1191_s27, 128  }
 0x4ee   : > { %1700 = vsyncadd (!%p1390_p0), %s1191_s27, 4294967168  ;;  %s27_s14 = sadd.s32 1, %s1723_s14   ;;  %s2234_s30 = smov %s1707_s10 }
 0x4ef   : > { %p24_p4 = scmp.ge.s32.totalorder %s27_s14, 4   ;;  %s2235_s10 = smov %s1711_s11 }
 0x4f0   : > { %s2236_s11 = smov %s1962_s9  ;;  %s2237_s12 = smov %s1719_s13 }
 0x4f1   : > { %s2238_s13 = smov %s2240_s15  ;;  %26 = sbr.rel (!%p24_p4) target bundleno = 13 (0xd), region = 117 }
 0x4f8   :  { %1196 = vsyncpa [#allocation3], 1 }
 0x4f9   :  { %1198 = vsyncpa [#allocation3 + $0x1], 1 }
 0x4fa   :  { %1199 = vsyncpa [#allocation6], 1 }
 0x4fb   :  { %1200 = vsyncpa [#allocation9], 1 }
 0x4fc   :  { %1201 = vsyncpa [#allocation4], 1 }
 0x4fd   :  { %1203 = vsyncpa [#allocation4 + $0x1], 1 }

// kernel: tpu_custom_call.1
= control target key start
LH: loop header
LB: loop body
LE: loop exit
PB: predicated region body
PF: predicated region fallthrough
CT: control target
= control target key end

     0   :  { %s2190_s0 = inlined_call_operand.hbm [shape: f32[2,8,17], index: 0, kind: input, shape index: {}]   ;;  %s2191_s1 = inlined_call_operand.vmem [shape: f32[2,1,9], index: 1, kind: input, shape index: {}]   ;;  %s2192_s2 = inlined_call_operand.hbm [shape: f32[16,17], index: 2, kind: input, shape index: {}]   ;;  %s2193_s3 = inlined_call_operand.hbm [shape: f32[16,9], index: 3, kind: input, shape index: {}]   ;;  %s2194_s4 = inlined_call_operand.vmem [shape: f32[8,8], index: 4, kind: input, shape index: {}]   ;;  %s2195_s5 = inlined_call_operand.vmem [shape: f32[8,8], index: 5, kind: input, shape index: {}]   ;;  %s2196_s6 = inlined_call_operand.hbm [shape: f32[8,8], index: 6, kind: input, shape index: {}]   ;;  %s2197_s7 = inlined_call_operand.vmem [shape: f32[8,14], index: 7, kind: input, shape index: {}]   ;;  %s2198_s8 = inlined_call_operand.vmem [shape: f32[1,4], index: 8, kind: input, shape index: {}]   ;;  %s2199_s9 = inlined_call_operand.hbm [shape: f32[2,8,16], index: 9, kind: output, shape index: {}]  }
   0x1   :  { %2207 = sst [smem:[#allocation17_spill]] %s2194_s4 }
   0x2   :  { %2208 = sst [smem:[#allocation18_spill]] %s2195_s5 }
   0x3   :  { %2209 = sst [smem:[#allocation19_spill]] %s2198_s8 }
   0x4   :  { %2210 = sst [smem:[#allocation20_spill]] %s2199_s9 }
   0x5   :  { %14 = vsyncpa [#allocation3], 0 }
   0x6   :  { %16 = vsyncpa [#allocation3 + $0x1], 0 }
   0x7   :  { %17 = vsyncpa [#allocation6], 0 }
   0x8   :  { %18 = vsyncpa [#allocation9], 0 }
   0x9   :  { %19 = vsyncpa [#allocation4], 0 }
   0xa   :  { %21 = vsyncpa [#allocation4 + $0x1], 0  ;;  %s1799_s30 = smov 0   ;;  %s1801_s10 = smov 0  }
   0xb   :  { %s1803_s11 = smov 0   ;;  %s1805_s12 = smov 0  }
   0xc   :  { %s1807_s13 = smov 0   ;;  %s1809_s14 = smov 0  }
   0xd LB: > { %2211 = sst [smem:[#allocation15_spill]] %s1703_s30  ;;  %s1297_s15 = sadd.s32 4294967295, %s1723_s14   ;;  %s1723_s14 = sphi %s1809_s14, %s27_s14   ;;  %s1719_s13 = sphi %s1807_s13, %s2238_s13   ;;  %s1715_s12 = sphi %s1805_s12, %s2237_s12   ;;  %s1711_s11 = sphi %s1803_s11, %s2236_s11   ;;  %s1707_s10 = sphi %s1801_s10, %s2235_s10   ;;  %s1703_s30 = sphi %s1799_s30, %s2234_s30  }
   0xe   : > { %s1298_s16 = sadd.s32 4294967294, %s1723_s14   ;;  %p59_p0 = scmp.ne.s32.totalorder %s1707_s10, %s1703_s30 }
   0xf   : > { %p1833_p1 = scmp.eq.s32.totalorder %s1297_s15, 0  ;;  %p1837_p2 = scmp.eq.s32.totalorder %s1297_s15, 1 }
  0x10   : > { %p269_p3 = scmp.eq.s32.totalorder %s1298_s16, 1  ;;  %p1299_p5 = scmp.ge.s32.totalorder %s1723_s14, 1 }
  0x11   : > { %s2212_s17 = scalar_select %p1833_p1, 1, 0 }
  0x12   : > { %s2213_s18 = scalar_select %p1837_p2, 1, 0 }
  0x13   : > { %p1843_p4 = por %p1833_p1, %p59_p0  ;;  %p1848_p6 = por %p269_p3, %p59_p0 }
  0x14   : > { %p276_p7 = scmp.lt.s32.totalorder %s1723_s14, 3  ;;  %s1725_s22 = smov [#allocation5]  }
  0x15   : > { %s2214_s19 = scalar_select %p1843_p4, 1, 0 }
  0x16   : > { %s2215_s20 = scalar_select %p1848_p6, 1, 0 }
  0x17   : > { %p1853_p8 = pnand %p1299_p5, %p276_p7  ;;  %s291_s23 = sshll.u32 %s1725_s22, 4  ;;  %s1857_s23 = int_to_ptr.vmem [resolvable:$true] %s291_s23 }
  0x18   : > { %2216 = sst [smem:[#allocation16_spill]] %s2215_s20  ;;  %s1726_s25 = smov [#allocation7]  }
  0x19   : > { %s2217_s21 = scalar_select %p1853_p8, 1, 0 }
  0x1a   : > { %p1375_p9 = pneg %p1853_p8  ;;  %s304_s26 = sshll.u32 %s1726_s25, 4  ;;  %s1868_s26 = int_to_ptr.vmem [resolvable:$true] %s304_s26 }
  0x1b   : > { %s1727_s27 = smov [#allocation8]   ;;  %s1519_s16 = scalar_lea.hbm %s2192_s2, 256 }
  0x1c   : > { %p1864_p11 = pnand %p1375_p9, %p1833_p1  ;;  %s1870_s28 = sshll.u32 %s1727_s27, 4  ;;  %s325_s28 = int_to_ptr.vmem [resolvable:$true] %s1870_s28 }
  0x1d   : > { %p1520_p12 = scmp.ne.s32.totalorder %s2192_s2, %s1519_s16  ;;  %p1526_p5 = scmp.lt.u32.totalorder %s1519_s16, %s2192_s2 }
  0x1e   : > { %p1880_p13 = pneg %p1864_p11 }
  0x20   : > { %p1522_p0 = pnand %p1880_p13, %p1520_p12 }
  0x22   : > { %p1523_p3 = pneg %p1522_p0 }
  0x24   : > { %p1528_p7 = pnand %p1526_p5, %p1523_p3 }
  0x26   : > { %1531 = shalt.err (!%p1528_p7)
}
  0x27   : > { %s1532_s20 = scalar_lea.vmem %s1857_s23, 256  ;;  %p1540_p1 = scmp.lt.s32.totalorder %s1857_s23, %s1857_s23 }
  0x28   : > { %p1533_p9 = scmp.ne.s32.totalorder %s1857_s23, %s1532_s20  ;;  %p1541_p4 = scmp.lt.s32.totalorder %s1532_s20, %s1532_s20 }
  0x2a   : > { %p1535_p10 = pnand %p1533_p9, %p1880_p13  ;;  %p1542_p12 = por %p1541_p4, %p1540_p1 }
  0x2c   : > { %p1536_p6 = pneg %p1535_p10 }
  0x2e   : > { %p1543_p0 = pnand %p1542_p12, %p1536_p6 }
  0x30   : > { %1546 = shalt.err (!%p1543_p0)
}
  0x31   : > { %s1728_s29 = smov 128   ;;  %s1729_s15 = smov 8  }
  0x32   : > { %1378 = dma.hbm_to_vmem [thread:$0]  (!%p1864_p11), %s2192_s2, 256, %s1857_s23, [#allocation6], %s1728_s29, %s1728_s29, %s1729_s15  }
  0x33   : > { %s1547_s9 = scalar_lea.hbm %s2193_s3, 256 }
  0x34   : > { %p1548_p1 = scmp.ne.s32.totalorder %s2193_s3, %s1547_s9  ;;  %p1554_p10 = scmp.lt.u32.totalorder %s1547_s9, %s2193_s3 }
  0x36   : > { %p1550_p4 = pnand %p1548_p1, %p1880_p13 }
  0x38   : > { %p1551_p6 = pneg %p1550_p4 }
  0x3a   : > { %p1556_p3 = pnand %p1554_p10, %p1551_p6 }
  0x3c   : > { %1559 = shalt.err (!%p1556_p3)
}
  0x3d   : > { %s1560_s23 = scalar_lea.vmem %s1868_s26, 256  ;;  %p1568_p12 = scmp.lt.s32.totalorder %s1868_s26, %s1868_s26 }
  0x3e   : > { %p1561_p5 = scmp.ne.s32.totalorder %s1868_s26, %s1560_s23  ;;  %p1569_p0 = scmp.lt.s32.totalorder %s1560_s23, %s1560_s23 }
  0x40   : > { %p1563_p7 = pnand %p1561_p5, %p1880_p13  ;;  %p1570_p1 = por %p1569_p0, %p1568_p12 }
  0x42   : > { %p1564_p9 = pneg %p1563_p7 }
  0x44   : > { %p1571_p4 = pnand %p1570_p1, %p1564_p9 }
  0x46   : > { %1574 = shalt.err (!%p1571_p4)
}
  0x47   : > { %1381 = dma.hbm_to_vmem [thread:$0]  (!%p1864_p11), %s2193_s3, 256, %s1868_s26, [#allocation6], %s1728_s29, %s1728_s29, %s1729_s15  }
  0x48   : > { %s1575_s16 = scalar_lea.hbm %s2196_s6, 128 }
  0x49   : > { %p1576_p6 = scmp.ne.s32.totalorder %s2196_s6, %s1575_s16  ;;  %p1582_p5 = scmp.lt.u32.totalorder %s1575_s16, %s2196_s6 }
  0x4b   : > { %p1578_p10 = pnand %p1576_p6, %p1880_p13 }
  0x4d   : > { %p1579_p3 = pneg %p1578_p10 }
  0x4f   : > { %p1584_p7 = pnand %p1582_p5, %p1579_p3 }
  0x51   : > { %1587 = shalt.err (!%p1584_p7)
}
  0x52   : > { %s1588_s23 = scalar_lea.vmem %s325_s28, 128  ;;  %p1596_p1 = scmp.lt.s32.totalorder %s325_s28, %s325_s28 }
  0x53   : > { %p1589_p9 = scmp.ne.s32.totalorder %s325_s28, %s1588_s23  ;;  %p1597_p4 = scmp.lt.s32.totalorder %s1588_s23, %s1588_s23 }
  0x55   : > { %p1591_p12 = pnand %p1589_p9, %p1880_p13  ;;  %p1598_p8 = por %p1597_p4, %p1596_p1 }
  0x57   : > { %p1592_p0 = pneg %p1591_p12 }
  0x59   : > { %p1599_p2 = pnand %p1598_p8, %p1592_p0 }
  0x5b   : > { %1602 = shalt.err (!%p1599_p2)
}
  0x5c   : > { %1384 = dma.hbm_to_vmem [thread:$0]  (!%p1864_p11), %s2196_s6, 128, %s325_s28, [#allocation9]  }
  0x5d   : > { %s46_s30 = sadd.s32 1, %s1711_s11  ;;  %s39_s15 = sadd.s32 1, %s1719_s13 }
  0x5e   : > { %p53_p2 = scmp.ne.s32.totalorder %s1711_s11, %s1707_s10  ;;  %p41_p8 = scmp.ge.s32.totalorder %s39_s15, 2 }
  0x5f   : > { %p54_p13 = scmp.eq.s32.totalorder %s1723_s14, 0  ;;  %p2220_p6 = scmp.ne.s32.totalorder %s2213_s18, 0 }
  0x60   : > { %p1396_p3 = scmp.lt.s32.totalorder %s1723_s14, 2  ;;  %s2240_s15 = smov (%p41_p8, %s39_s15), 0 }
  0x61   : > { %p1950_p10 = por %p2220_p6, %p53_p2  ;;  %p55_p5 = por %p54_p13, %p53_p2 }
  0x62   : > { %s341_s4 = sand.u32 1, %s1711_s11   ;;  %s43_s5 = ssub.s32 %s1719_s13, %s2240_s15 }
  0x63   : > { %p44_p7 = scmp.eq.s32.totalorder %s43_s5, 0  ;;  %s1304_s28 = sshll.u32 %s341_s4, 3 }
  0x64   : > { %s1305_s8 = sshll.u32 %s1719_s13, 7  ;;  %s345_s25 = scalar_lea.vmem [#allocation2], %s1304_s28 }
  0x65   : > { %s1962_s9 = scalar_select %p44_p7, %s1711_s11, %s46_s30  }
  0x66   : > { %s1967_s18 = scalar_lea.hbm %s2190_s0, %s1305_s8  ;;  %s352_s27 = sshll.u32 %s345_s25, 4  ;;  %s1969_s27 = int_to_ptr.vmem [resolvable:$true] %s352_s27 }
  0x67   : > { %p1973_p11 = pnand %p1396_p3, %p55_p5  ;;  %s342_s23 = scalar_lea.sflag [#allocation3], %s341_s4 }
  0x68   : > { %s1603_s26 = scalar_lea.hbm %s1967_s18, 128  ;;  %s1608_s5 = scalar_lea.hbm %s2190_s0, 256 }
  0x69   : > { %p1604_p9 = scmp.ne.s32.totalorder %s1967_s18, %s1603_s26  ;;  %p1605_p12 = pneg %p1973_p11 }
  0x6a   : > { %p1609_p4 = scmp.lt.u32.totalorder %s1967_s18, %s2190_s0  ;;  %p1610_p2 = scmp.lt.u32.totalorder %s1608_s5, %s1603_s26 }
  0x6b   : > { %p1606_p0 = pnand %p1605_p12, %p1604_p9  ;;  %p1612_p13 = scmp.lt.u32.totalorder %s1603_s26, %s1967_s18 }
  0x6c   : > { %p1611_p8 = por %p1610_p2, %p1609_p4 }
  0x6d   : > { %p1607_p1 = pneg %p1606_p0 }
  0x6e   : > { %p1613_p6 = por %p1612_p13, %p1611_p8 }
  0x70   : > { %p1614_p3 = pnand %p1613_p6, %p1607_p1 }
  0x72   : > { %1617 = shalt.err (!%p1614_p3)
}
  0x73   : > { %s1618_s4 = scalar_lea.vmem %s1969_s27, 128  ;;  %s1730_s16 = smov [#allocation2]  }
  0x74   : > { %p1619_p5 = scmp.ne.s32.totalorder %s1969_s27, %s1618_s4  ;;  %s1623_s22 = sshll.u32 %s1730_s16, 4  ;;  %s1624_s22 = int_to_ptr.vmem [resolvable:$false] %s1623_s22 }
  0x75   : > { %s1625_s25 = scalar_lea.vmem %s1624_s22, 256  ;;  %p1626_p0 = scmp.lt.s32.totalorder %s1969_s27, %s1624_s22 }
  0x76   : > { %p1621_p7 = pnand %p1619_p5, %p1605_p12  ;;  %p1627_p4 = scmp.lt.s32.totalorder %s1625_s25, %s1618_s4 }
  0x78   : > { %p1622_p9 = pneg %p1621_p7  ;;  %p1628_p2 = por %p1627_p4, %p1626_p0 }
  0x7a   : > { %p1629_p8 = pnand %p1628_p2, %p1622_p9 }
  0x7c   : > { %1632 = shalt.err (!%p1629_p8)
}
  0x7d   : > { %1388 = dma.hbm_to_vmem [thread:$0]  (!%p1973_p11), %s1967_s18, 128, %s1969_s27, %s342_s23  }
  0x7e   : > { %p2223_p1 = scmp.ne.s32.totalorder %s2217_s21, 0 }
  0x7f   : > { %s2005_s26 = sand.u32 (!%p2223_p1), 1, %s1707_s10   ;;  %p2224_p12 = scmp.ne.s32.totalorder (!%p2223_p1), %s2214_s19, 0 }
  0x80   : > { %367 = sbr.rel (%p2223_p1) target bundleno = 1251 (0x4e3), region = 56  ;;  %s1307_s29 = sshll.u32 (!%p2223_p1), %s2005_s26, 3 }
  0x81   : > { %s370_s30 = scalar_lea.sflag (!%p2223_p1), [#allocation3], %s2005_s26  ;;  %s2011_s5 = scalar_lea.vmem (!%p2223_p1), [#allocation2], %s1307_s29 }
  0x87   : > { %1686 = dma.done.wait (%p2224_p12), %s370_s30, 128  }
  0x88   : > { %1688 = vsyncadd (%p2224_p12), %s370_s30, 4294967168  ;;  %p2225_p11 = scmp.ne.s32.totalorder %s2212_s17, 0 }
  0x8a   : > { %1690 = dma.done.wait (%p2225_p11), [#allocation6], 512  }
  0x8b   : > { %1692 = vsyncadd (%p2225_p11), [#allocation6], 4294966784 }
  0x8c   : > { %1694 = dma.done.wait (%p2225_p11), [#allocation9], 128  }
  0x8d   : > { %1696 = vsyncadd (%p2225_p11), [#allocation9], 4294967168  ;;  %v1731_v0 = vmov 0.0|0.0   ;;  %vm1732_vm0 = vmmov 0   ;;  %v1733_v1 = vmov 0.0   ;;  %p423_p13 = scmp.lt.s32.totalorder %s1715_s12, 1  ;;  %v563_v39 = vlaneseq }
  0x8e   : > { %1355 = vmatprep.subr.bf16.mxu0 %v1731_v0  ;;  %1337 = vmatprep.mubr.msk.f32.mxu0 %vm1732_vm0, %v1733_v1  ;;  %v1734_v2 = vmov 6   ;;  %v1735_v3 = vmov 8   ;;  %vm433_vm1 = vcmask 138240   ;;  %v431_v4 = vld [vmem:[#allocation5] sm:$0xff]  ;;  %v432_v5 = vld [vmem:[#allocation5 + $0x8] sm:$0xff]  ;;  %v513_v8 = vld [vmem:[#allocation7] sm:$0xff] }
  0x8f   : > { %1471 = vset.pattern.permute.xlu1 %v1734_v2  ;;  %1340 = vmatprep.subr.mxu1 %v1733_v1  ;;  %s424_s19 = scalar_select %p423_p13, %s1715_s12, 1  ;;  %vm1357_vm2 = vmpackc.low %vm433_vm1, %vm433_vm1  ;;  %v1356_v6 = vpack.c.bf16 %v432_v5, %v431_v4  ;;  %vm523_vm3 = vcmask 72704   ;;  %v514_v9 = vld [vmem:[#allocation7 + $0x8] sm:$0xff]  ;;  %v2040_v12 = vld [vmem:[%s2197_s7] sm:$0xff]  ;;  %v1736_v16 = vmov 7   ;;  %v1737_v17 = vmov 9  }
  0x90   : > { %1473 = vset.pattern.permute.xlu0 %v1735_v3  ;;  %1342 = vmatprep.mubr.msk.f32.mxu1 %vm1732_vm0, %v1733_v1  ;;  %v427_v15 = vld [vmem:[%s2011_s5] sm:$0xff]  ;;  %s2226_s8 = sld [smem:[#allocation19_spill]]  ;;  %v1738_v19 = vmov 0   ;;  %v1739_v20 = vmov 1   ;;  %v1740_v21 = vmov 2   ;;  %v1741_v22 = vmov 3  }
  0x91   : > { %s425_s18 = scalar_lea.vmem %s2191_s1, %s424_s19  ;;  %1358 = vmatpush3.bf16.xpose.msk.msra.mxu0 %vm1357_vm2, %v1356_v6  ;;  %546 = vperm.xlu1 %1471, %v2040_v12   ;;  %v1742_v23 = vmov 10   ;;  %v1743_v24 = vmov 11   ;;  %v1744_v25 = vmov 12   ;;  %v1745_v26 = vmov 13   ;;  %s2227_s22 = sld [smem:[#allocation17_spill]] }
  0x92   : > { %v1315_v7 = vld [vmem:[%s425_s18] ss:$0 sm:$0xff]  ;;  %vm550_vm4 = vcmask 130048   ;;  %v564_v56 = vshrl.u32 %v563_v39, 7  ;;  %vm861_vm9 = vcmask 64512   ;;  %s2228_s5 = sld [smem:[#allocation18_spill]] }
  0x93   : > { %v521_v10 = vmul.f32 %v1315_v7, %v513_v8  ;;  %v522_v11 = vmul.f32 %v1315_v7, %v514_v9  ;;  %s1321_s19 = sshll.u32 %s1715_s12, 7  ;;  %s422_s17 = scalar_lea.vmem [#allocation10], %s1307_s29 }
  0x94   : > { %v565_v5 = vsub.s32 0, %v564_v56  ;;  %s1178_s21 = sshll.u32 %s422_s17, 4  ;;  %s2229_s20 = sld [smem:[#allocation20_spill]]  ;;  %s2142_s21 = int_to_ptr.vmem [resolvable:$true] %s1178_s21 }
  0x95   : > { %v524_v13 = vsel %vm523_vm3, %v521_v10, 0.0  ;;  %v527_v14 = vsel %vm523_vm3, %v522_v11, 0.0  ;;  %1472 = vset.pattern.permute.xlu1 %v1736_v16  ;;  %s1164_s12 = scalar_lea.sflag [#allocation4], %s2005_s26  ;;  %s1633_s28 = scalar_lea.vmem %s2142_s21, 128 }
  0x96   : > { %525 = vadd.xlane.f32.xlu0 %v524_v13  ;;  %624 = vperm.xlu1 %1472, %v2040_v12   ;;  %v430_v18 = vld [vmem:[%s2226_s8] sm:$0x1]  ;;  %p1634_p6 = scmp.ne.s32.totalorder %s2142_s21, %s1633_s28  ;;  %s1748_s29 = smov [#allocation10]  }
  0x97   : > { %s1637_s8 = sshll.u32 %s1748_s29, 4  ;;  %s1638_s8 = int_to_ptr.vmem [resolvable:$false] %s1637_s8 }
  0x98   : > { %1338 = vmatmul.mubr.msk.f32.vlgmr.msra.gmra.mrb[0].mxu0 %vm433_vm1, %v427_v15  ;;  %p1635_p3 = pnand %p1634_p6, %p1950_p10  ;;  %s1639_s4 = scalar_lea.vmem %s1638_s8, 256 }
  0x99   : > { %p1640_p7 = scmp.lt.s32.totalorder %s2142_s21, %s1638_s8  ;;  %p1641_p9 = scmp.lt.s32.totalorder %s1639_s4, %s1633_s28 }
  0x9a   : > { %528 = vadd.xlane.f32.xlu0 %v527_v14  ;;  %1474 = vset.pattern.permute.xlu1 %v1737_v17  ;;  %s2140_s23 = scalar_lea.hbm %s2229_s20, %s1321_s19  ;;  %p1636_p5 = pneg %p1635_p3 }
  0x9b   : > { %776 = vperm.xlu1 %1474, %v2040_v12   ;;  %p1642_p0 = por %p1641_p9, %p1640_p7 }
  0x9d   : > { %p1643_p4 = pnand %p1642_p0, %p1636_p5 }
  0x9f   : > { %1475 = vset.pattern.permute.xlu1 %v1738_v19 }
  0xa0   : > { %560 = vperm.xlu1 %1475, %v430_v18  }
  0xa4   : > { %1476 = vset.pattern.permute.xlu1 %v1739_v20 }
  0xa5   : > { %636 = vperm.xlu1 %1476, %v430_v18  }
  0xa9   : > { %1477 = vset.pattern.permute.xlu1 %v1740_v21 }
  0xaa   : > { %712 = vperm.xlu1 %1477, %v430_v18  }
  0xae   : > { %1478 = vset.pattern.permute.xlu1 %v1741_v22 }
  0xaf   : > { %788 = vperm.xlu1 %1478, %v430_v18  }
  0xb0   : > { %700 = vperm.xlu0 %1473, %v2040_v12  }
  0xb3   : > { %1479 = vset.pattern.permute.xlu1 %v1742_v23 }
  0xb4   : > { %1485 = vset.pattern.permute.xlu0 %v1740_v21  ;;  %618 = vperm.xlu1 %1479, %v2040_v12  }
  0xb5   : > { %959 = vperm.xlu0 %1485, %v2040_v12  }
  0xb8   : > { %1480 = vset.pattern.permute.xlu1 %v1743_v24 }
  0xb9   : > { %694 = vperm.xlu1 %1480, %v2040_v12  }
  0xbd   : > { %1481 = vset.pattern.permute.xlu1 %v1744_v25 }
  0xbe   : > { %770 = vperm.xlu1 %1481, %v2040_v12  }
  0xc2   : > { %1482 = vset.pattern.permute.xlu1 %v1745_v26 }
  0xc3   : > { %846 = vperm.xlu1 %1482, %v2040_v12  }
  0xc7   : > { %1483 = vset.pattern.permute.xlu1 %v1738_v19 }
  0xc8   : > { %852 = vperm.xlu1 %1483, %v2040_v12  }
  0xcc   : > { %1484 = vset.pattern.permute.xlu1 %v1739_v20 }
  0xcd   : > { %858 = vperm.xlu1 %1484, %v2040_v12  }
  0xd1   : > { %1486 = vset.pattern.permute.xlu1 %v1741_v22 }
  0xd2   : > { %964 = vperm.xlu1 %1486, %v2040_v12  }
 0x110   : > { %v547_v27 = vpop.permute.xlu1 %546 }
 0x115   : > { %v625_v28 = vpop.permute.xlu1 %624 }
 0x11a   : > { %v777_v30 = vpop.permute.xlu1 %776 }
 0x11f   : > { %v561_v34 = vpop.permute.xlu1 %560 }
 0x120   : > { %v566_v20 = vrot.slane %v561_v34, %v565_v5 }
 0x123   : > { %v2059_v29 = vpop.xlane.xlu0 %525 }
 0x124   : > { %v637_v42 = vpop.permute.xlu1 %636 }
 0x125   : > { %v642_v21 = vrot.slane %v637_v42, %v565_v5 }
 0x127   : > { %v2061_v31 = vpop.xlane.xlu0 %528 }
 0x128   : > { %v530_v32 = vmax.f32 %v2059_v29, %v2061_v31  ;;  %v537_v33 = vmin.f32 %v2059_v29, %v2061_v31 }
 0x129   : > { %v713_v61 = vpop.permute.xlu1 %712 }
 0x12a   : > { %v531_v35 = vrot.slane %v530_v32, 4  ;;  %v538_v36 = vrot.slane %v537_v33, 4  ;;  %v718_v13 = vrot.slane %v713_v61, %v565_v5 }
 0x12c   : > { %v532_v40 = vmax.f32 %v530_v32, %v531_v35  ;;  %v539_v41 = vmin.f32 %v537_v33, %v538_v36 }
 0x12e   : > { %v533_v57 = vrot.slane %v532_v40, 2  ;;  %v540_v58 = vrot.slane %v539_v41, 2  ;;  %v789_v17 = vpop.permute.xlu1 %788 }
 0x12f   : > { %v701_v37 = vpop.permute.xlu0 %700 }
 0x130   : > { %v534_v6 = vmax.f32 %v532_v40, %v533_v57  ;;  %v541_v7 = vmin.f32 %v539_v41, %v540_v58 }
 0x132   : > { %v535_v19 = vrot.slane %v534_v6, 1  ;;  %v542_v22 = vrot.slane %v541_v7, 1 }
 0x134   : > { %v536_v33 = vmax.f32 %v534_v6, %v535_v19  ;;  %v543_v35 = vmin.f32 %v541_v7, %v542_v22 }
 0x16b   : > { %v2067_v38 = vpop.f32.mrb[0].mxu0 }
 0x16c   : > { %v549_v43 = vmul.f32 %v547_v27, %v2067_v38  ;;  %v627_v44 = vmul.f32 %v625_v28, %v2067_v38  ;;  %v703_v45 = vmul.f32 %v701_v37, %v2067_v38  ;;  %v779_v46 = vmul.f32 %v777_v30, %v2067_v38  ;;  %v1339_v47 = vpop.f32.mrb[1].mxu0 }
 0x16d   : > { %v794_v27 = vrot.slane %v789_v17, %v565_v5 }
 0x16e   : > { %v551_v48 = vsel %vm550_vm4, %v549_v43, 0.0  ;;  %v628_v49 = vsel %vm550_vm4, %v627_v44, 0.0  ;;  %v704_v50 = vsel %vm550_vm4, %v703_v45, 0.0  ;;  %v780_v51 = vsel %vm550_vm4, %v779_v46, 0.0 }
 0x16f   : > { %v552_v52 = vrot.slane %v551_v48, 4  ;;  %v629_v53 = vrot.slane %v628_v49, 4  ;;  %v705_v54 = vrot.slane %v704_v50, 4  ;;  %v781_v55 = vrot.slane %v780_v51, 4 }
 0x171   : > { %v553_v59 = vadd.f32 %v552_v52, %v551_v48  ;;  %v630_v60 = vadd.f32 %v629_v53, %v628_v49  ;;  %v706_v62 = vadd.f32 %v705_v54, %v704_v50  ;;  %v782_v63 = vadd.f32 %v781_v55, %v780_v51 }
 0x173   : > { %v554_v0 = vrot.slane %v553_v59, 2  ;;  %v631_v2 = vrot.slane %v630_v60, 2  ;;  %v707_v3 = vrot.slane %v706_v62, 2  ;;  %v783_v4 = vrot.slane %v782_v63, 2 }
 0x175   : > { %v555_v8 = vadd.f32 %v554_v0, %v553_v59  ;;  %v632_v9 = vadd.f32 %v631_v2, %v630_v60  ;;  %v708_v10 = vadd.f32 %v707_v3, %v706_v62  ;;  %v784_v11 = vadd.f32 %v783_v4, %v782_v63 }
 0x177   : > { %v556_v14 = vrot.slane %v555_v8, 1  ;;  %v633_v15 = vrot.slane %v632_v9, 1  ;;  %v709_v16 = vrot.slane %v708_v10, 1  ;;  %v785_v18 = vrot.slane %v784_v11, 1 }
 0x179   : > { %v557_v23 = vadd.f32 %v556_v14, %v555_v8  ;;  %v634_v24 = vadd.f32 %v633_v15, %v632_v9  ;;  %v710_v25 = vadd.f32 %v709_v16, %v708_v10  ;;  %v786_v26 = vadd.f32 %v785_v18, %v784_v11 }
 0x17b   : > { %v567_v28 = vadd.f32 %v566_v20, %v557_v23  ;;  %v643_v30 = vadd.f32 %v642_v21, %v634_v24  ;;  %v719_v32 = vadd.f32 %v718_v13, %v710_v25  ;;  %v795_v40 = vadd.f32 %v794_v27, %v786_v26 }
 0x17d   : > { %v568_v36 = vmul.f32 0.70710677, %v567_v28  ;;  %v644_v37 = vmul.f32 0.70710677, %v643_v30  ;;  %v720_v39 = vmul.f32 0.70710677, %v719_v32 }
 0x17e   : > { %v796_v56 = vmul.f32 0.70710677, %v795_v40 }
 0x17f   : > { %vm569_vm5 = vcmp.ge.f32.partialorder %v568_v36, 0.0  ;;  %v570_v41 = vmul.f32 %v568_v36, %v536_v33  ;;  %v571_v43 = vmul.f32 %v568_v36, %v543_v35  ;;  %v573_v34 = vmul.f32 %v568_v36, %v2059_v29 }
 0x180   : > { %v594_v42 = vmul.f32 %v568_v36, %v2061_v31  ;;  %vm645_vm6 = vcmp.ge.f32.partialorder %v644_v37, 0.0  ;;  %v646_v44 = vmul.f32 %v644_v37, %v536_v33  ;;  %v647_v45 = vmul.f32 %v644_v37, %v543_v35 }
 0x181   : > { %v572_v46 = vsel %vm569_vm5, %v570_v41, %v571_v43  ;;  %v649_v47 = vmul.f32 %v644_v37, %v2059_v29  ;;  %v670_v48 = vmul.f32 %v644_v37, %v2061_v31  ;;  %vm721_vm7 = vcmp.ge.f32.partialorder %v720_v39, 0.0 }
 0x182   : > { %v574_v49 = vsub.f32 %v573_v34, %v572_v46  ;;  %v595_v50 = vsub.f32 %v594_v42, %v572_v46  ;;  %v648_v51 = vsel %vm645_vm6, %v646_v44, %v647_v45  ;;  %v722_v52 = vmul.f32 %v720_v39, %v536_v33 }
 0x183   : > { %v650_v53 = vsub.f32 %v649_v47, %v648_v51  ;;  %v671_v54 = vsub.f32 %v670_v48, %v648_v51  ;;  %v723_v55 = vmul.f32 %v720_v39, %v543_v35  ;;  %v725_v59 = vmul.f32 %v720_v39, %v2059_v29 }
 0x184   : > { %v575_v57 = vmul.f32 1.442695, %v574_v49  ;;  %v596_v58 = vmul.f32 1.442695, %v595_v50  ;;  %v746_v63 = vmul.f32 %v720_v39, %v2061_v31  ;;  %v798_v0 = vmul.f32 %v796_v56, %v536_v33 }
 0x185   : > { %v651_v60 = vmul.f32 1.442695, %v650_v53  ;;  %v672_v61 = vmul.f32 1.442695, %v671_v54  ;;  %v724_v62 = vsel %vm721_vm7, %v722_v52, %v723_v55  ;;  %v799_v2 = vmul.f32 %v796_v56, %v543_v35 }
 0x186   : > { %1489 = vpow2.f32 %v575_v57  ;;  %v726_v3 = vsub.f32 %v725_v59, %v724_v62  ;;  %vm797_vm8 = vcmp.ge.f32.partialorder %v796_v56, 0.0  ;;  %v747_v4 = vsub.f32 %v746_v63, %v724_v62 }
 0x187   : > { %1491 = vpow2.f32 %v596_v58  ;;  %v801_v5 = vmul.f32 %v796_v56, %v2059_v29  ;;  %v800_v6 = vsel %vm797_vm8, %v798_v0, %v799_v2  ;;  %v822_v9 = vmul.f32 %v796_v56, %v2061_v31 }
 0x188   : > { %1493 = vpow2.f32 %v651_v60  ;;  %v727_v7 = vmul.f32 1.442695, %v726_v3  ;;  %v748_v8 = vmul.f32 1.442695, %v747_v4 }
 0x189   : > { %1495 = vpow2.f32 %v672_v61  ;;  %v802_v10 = vsub.f32 %v801_v5, %v800_v6  ;;  %v823_v14 = vsub.f32 %v822_v9, %v800_v6 }
 0x18a   : > { %1497 = vpow2.f32 %v727_v7 }
 0x18b   : > { %1499 = vpow2.f32 %v748_v8  ;;  %v803_v18 = vmul.f32 1.442695, %v802_v10  ;;  %v824_v39 = vmul.f32 1.442695, %v823_v14 }
 0x18d   : > { %1501 = vpow2.f32 %v803_v18 }
 0x18e   : > { %1503 = vpow2.f32 %v824_v39 }
 0x190   : > { %v1490_v11 = vpop.eup %1489 }
 0x191   : > { %v1492_v13 = vpop.eup %1491  ;;  %v577_v15 = vsel %vm550_vm4, %v1490_v11, 0.0  ;;  %v585_v16 = vmul.f32 %v1490_v11, %v2059_v29 }
 0x192   : > { %v1494_v17 = vpop.eup %1493  ;;  %v578_v19 = vrot.slane %v577_v15, 4  ;;  %v598_v20 = vsel %vm550_vm4, %v1492_v13, 0.0  ;;  %v606_v21 = vmul.f32 %v1492_v13, %v2061_v31 }
 0x193   : > { %v1496_v22 = vpop.eup %1495  ;;  %v586_v23 = vsel %vm550_vm4, %v585_v16, 0.0  ;;  %v599_v24 = vrot.slane %v598_v20, 4  ;;  %v653_v25 = vsel %vm550_vm4, %v1494_v17, 0.0  ;;  %v661_v26 = vmul.f32 %v1494_v17, %v2059_v29 }
 0x194   : > { %v579_v27 = vadd.f32 %v578_v19, %v577_v15  ;;  %v587_v28 = vrot.slane %v586_v23, 4  ;;  %v607_v30 = vsel %vm550_vm4, %v606_v21, 0.0  ;;  %v654_v32 = vrot.slane %v653_v25, 4  ;;  %v1498_v52 = vpop.eup %1497 }
 0x195   : > { %v600_v33 = vadd.f32 %v599_v24, %v598_v20  ;;  %v608_v35 = vrot.slane %v607_v30, 4  ;;  %v662_v36 = vsel %vm550_vm4, %v661_v26, 0.0  ;;  %v674_v37 = vsel %vm550_vm4, %v1496_v22, 0.0  ;;  %v1500_v55 = vpop.eup %1499 }
 0x196   : > { %v580_v40 = vrot.slane %v579_v27, 2  ;;  %v655_v41 = vadd.f32 %v654_v32, %v653_v25  ;;  %v675_v34 = vrot.slane %v674_v37, 4  ;;  %v682_v42 = vmul.f32 %v1496_v22, %v2061_v31 }
 0x197   : > { %v601_v43 = vrot.slane %v600_v33, 2  ;;  %v588_v45 = vadd.f32 %v587_v28, %v586_v23  ;;  %v663_v47 = vrot.slane %v662_v36, 4  ;;  %v609_v49 = vadd.f32 %v608_v35, %v607_v30  ;;  %v1502_v7 = vpop.eup %1501 }
 0x198   : > { %v581_v44 = vadd.f32 %v580_v40, %v579_v27  ;;  %v656_v46 = vrot.slane %v655_v41, 2  ;;  %v676_v50 = vadd.f32 %v675_v34, %v674_v37  ;;  %v683_v51 = vsel %vm550_vm4, %v682_v42, 0.0  ;;  %v1504_v25 = vpop.eup %1503 }
 0x199   : > { %v602_v48 = vadd.f32 %v601_v43, %v600_v33  ;;  %v684_v58 = vrot.slane %v683_v51, 4  ;;  %v589_v59 = vrot.slane %v588_v45, 2  ;;  %v664_v61 = vadd.f32 %v663_v47, %v662_v36 }
 0x19a   : > { %v582_v53 = vrot.slane %v581_v44, 1  ;;  %v657_v54 = vadd.f32 %v656_v46, %v655_v41  ;;  %v677_v57 = vrot.slane %v676_v50, 2  ;;  %v610_v0 = vrot.slane %v609_v49, 2 }
 0x19b   : > { %v603_v56 = vrot.slane %v602_v48, 1  ;;  %v729_v3 = vsel %vm550_vm4, %v1498_v52, 0.0  ;;  %v685_v6 = vadd.f32 %v684_v58, %v683_v51  ;;  %v590_v8 = vadd.f32 %v589_v59, %v588_v45 }
 0x19c   : > { %v658_v60 = vrot.slane %v657_v54, 1  ;;  %v583_v62 = vadd.f32 %v582_v53, %v581_v44  ;;  %v678_v2 = vadd.f32 %v677_v57, %v676_v50  ;;  %v730_v9 = vrot.slane %v729_v3, 4 }
 0x19d   : > { %v604_v63 = vadd.f32 %v603_v56, %v602_v48  ;;  %v737_v10 = vmul.f32 %v1498_v52, %v2059_v29  ;;  %v750_v11 = vsel %vm550_vm4, %v1500_v55, 0.0  ;;  %v611_v14 = vadd.f32 %v610_v0, %v609_v49 }
 0x19e   : > { %v659_v4 = vadd.f32 %v658_v60, %v657_v54  ;;  %v679_v5 = vrot.slane %v678_v2, 1  ;;  %v665_v15 = vrot.slane %v664_v61, 2  ;;  %v731_v17 = vadd.f32 %v730_v9, %v729_v3 }
 0x19f   : > { %v605_v13 = vadd.f32 %v604_v63, %v583_v62  ;;  %v738_v18 = vsel %vm550_vm4, %v737_v10, 0.0  ;;  %v751_v19 = vrot.slane %v750_v11, 4  ;;  %v758_v20 = vmul.f32 %v1500_v55, %v2061_v31 }
 0x1a0   : > { %v680_v16 = vadd.f32 %v679_v5, %v678_v2  ;;  %v686_v22 = vrot.slane %v685_v6, 2  ;;  %v739_v23 = vrot.slane %v738_v18, 4  ;;  %v805_v24 = vsel %vm550_vm4, %v1502_v7, 0.0 }
 0x1a1   : > { %v732_v26 = vrot.slane %v731_v17, 2  ;;  %v752_v27 = vadd.f32 %v751_v19, %v750_v11  ;;  %v759_v28 = vsel %vm550_vm4, %v758_v20, 0.0  ;;  %v806_v30 = vrot.slane %v805_v24, 4 }
 0x1a2   : > { %v681_v21 = vadd.f32 %v680_v16, %v659_v4  ;;  %1505 = vrcp.f32 %v605_v13  ;;  %v666_v32 = vadd.f32 %v665_v15, %v664_v61  ;;  %v740_v33 = vadd.f32 %v739_v23, %v738_v18 }
 0x1a3   : > { %v760_v35 = vrot.slane %v759_v28, 4  ;;  %v733_v36 = vadd.f32 %v732_v26, %v731_v17  ;;  %v753_v37 = vrot.slane %v752_v27, 2  ;;  %v807_v39 = vadd.f32 %v806_v30, %v805_v24 }
 0x1a4   : > { %v813_v40 = vmul.f32 %v1502_v7, %v2059_v29  ;;  %v687_v41 = vadd.f32 %v686_v22, %v685_v6  ;;  %1507 = vrcp.f32 %v681_v21  ;;  %v826_v34 = vsel %vm550_vm4, %v1504_v25, 0.0  ;;  %v619_v6 = vpop.permute.xlu1 %618 }
 0x1a5   : > { %v761_v43 = vadd.f32 %v760_v35, %v759_v28  ;;  %v734_v42 = vrot.slane %v733_v36, 1  ;;  %v754_v44 = vadd.f32 %v753_v37, %v752_v27  ;;  %v808_v45 = vrot.slane %v807_v39, 2 }
 0x1a6   : > { %v814_v46 = vsel %vm550_vm4, %v813_v40, 0.0  ;;  %v741_v47 = vrot.slane %v740_v33, 2  ;;  %v827_v50 = vrot.slane %v826_v34, 4  ;;  %v834_v54 = vmul.f32 %v1504_v25, %v2061_v31 }
 0x1a7   : > { %v762_v48 = vrot.slane %v761_v43, 2  ;;  %v815_v49 = vrot.slane %v814_v46, 4  ;;  %v735_v51 = vadd.f32 %v734_v42, %v733_v36  ;;  %v755_v52 = vrot.slane %v754_v44, 1 }
 0x1a8   : > { %v809_v53 = vadd.f32 %v808_v45, %v807_v39  ;;  %v591_v29 = vrot.slane %v590_v8, 1  ;;  %v612_v55 = vrot.slane %v611_v14, 1  ;;  %v667_v56 = vrot.slane %v666_v32, 1  ;;  %v695_v27 = vpop.permute.xlu1 %694 }
 0x1a9   : > { %v828_v57 = vadd.f32 %v827_v50, %v826_v34  ;;  %v688_v58 = vrot.slane %v687_v41, 1  ;;  %v756_v59 = vadd.f32 %v755_v52, %v754_v44  ;;  %v816_v60 = vadd.f32 %v815_v49, %v814_v46 }
 0x1aa   : > { %v835_v61 = vsel %vm550_vm4, %v834_v54, 0.0  ;;  %v810_v62 = vrot.slane %v809_v53, 1  ;;  %v742_v0 = vadd.f32 %v741_v47, %v740_v33  ;;  %v763_v3 = vadd.f32 %v762_v48, %v761_v43 }
 0x1ab   : > { %v829_v63 = vrot.slane %v828_v57, 2  ;;  %v757_v2 = vadd.f32 %v756_v59, %v735_v51  ;;  %v836_v4 = vrot.slane %v835_v61, 4  ;;  %v592_v7 = vadd.f32 %v591_v29, %v590_v8  ;;  %v856_v29 = vld [vmem:[%s2227_s22] sm:$0xff] }
 0x1ac   : > { %v1506_v5 = vpop.eup %1505  ;;  %v613_v9 = vadd.f32 %v612_v55, %v611_v14  ;;  %v668_v31 = vadd.f32 %v667_v56, %v666_v32  ;;  %v689_v11 = vadd.f32 %v688_v58, %v687_v41  ;;  %v817_v13 = vrot.slane %v816_v60, 2  ;;  %v771_v41 = vpop.permute.xlu1 %770 }
 0x1ad   : > { %v830_v10 = vadd.f32 %v829_v63, %v828_v57  ;;  %1509 = vrcp.f32 %v757_v2  ;;  %v837_v15 = vadd.f32 %v836_v4, %v835_v61  ;;  %v811_v17 = vadd.f32 %v810_v62, %v809_v53 }
 0x1ae   : > { %v1508_v16 = vpop.eup %1507  ;;  %v743_v19 = vrot.slane %v742_v0, 1  ;;  %v764_v20 = vrot.slane %v763_v3, 1  ;;  %v614_v23 = vadd.f32 %v613_v9, %v592_v7  ;;  %v690_v24 = vadd.f32 %v689_v11, %v668_v31 }
 0x1af   : > { %v831_v18 = vrot.slane %v830_v10, 1  ;;  %v838_v21 = vrot.slane %v837_v15, 2  ;;  %v818_v25 = vadd.f32 %v817_v13, %v816_v60  ;;  %v1746_v55 = vmov 4  }
 0x1b0   : > { %v616_v14 = vmul.f32 %v1506_v5, %v614_v23  ;;  %v692_v28 = vmul.f32 %v1508_v16, %v690_v24  ;;  %v744_v30 = vadd.f32 %v743_v19, %v742_v0  ;;  %v765_v32 = vadd.f32 %v764_v20, %v763_v3  ;;  %v847_v48 = vpop.permute.xlu1 %846  ;;  %1487 = vset.pattern.permute.xlu1 %v1746_v55  ;;  %v960_v19 = vpop.permute.xlu0 %959  ;;  %v968_v24 = vld [vmem:[%s2228_s5] sm:$0xff] }
 0x1b1   : > { %v832_v22 = vadd.f32 %v831_v18, %v830_v10  ;;  %v839_v26 = vadd.f32 %v838_v21, %v837_v15  ;;  %v819_v33 = vrot.slane %v818_v25, 1  ;;  %970 = vperm.xlu1 %1487, %v2040_v12  }
 0x1b2   : > { %v621_v37 = vmul.f32 %v619_v6, %v616_v14  ;;  %v697_v39 = vmul.f32 %v695_v27, %v692_v28  ;;  %v766_v40 = vadd.f32 %v765_v32, %v744_v30 }
 0x1b3   : > { %v833_v8 = vadd.f32 %v832_v22, %v811_v17  ;;  %v840_v35 = vrot.slane %v839_v26, 1  ;;  %v820_v34 = vadd.f32 %v819_v33, %v818_v25  ;;  %v1747_v25 = vmov 5  }
 0x1b4   : > { %v698_v44 = vadd.f32 %v697_v39, %v621_v37  ;;  %v853_v52 = vpop.permute.xlu1 %852  ;;  %1488 = vset.pattern.permute.xlu0 %v1747_v25 }
 0x1b5   : > { %1511 = vrcp.f32 %v833_v8  ;;  %v841_v42 = vadd.f32 %v840_v35, %v839_v26  ;;  %1085 = vperm.xlu0 %1488, %v2040_v12  }
 0x1b7   : > { %v1510_v36 = vpop.eup %1509  ;;  %v842_v46 = vadd.f32 %v841_v42, %v820_v34 }
 0x1b8   : > { %v768_v43 = vmul.f32 %v1510_v36, %v766_v40  ;;  %v859_v56 = vpop.permute.xlu1 %858 }
 0x1ba   : > { %v773_v45 = vmul.f32 %v771_v41, %v768_v43 }
 0x1bc   : > { %v774_v49 = vadd.f32 %v773_v45, %v698_v44  ;;  %v965_v21 = vpop.permute.xlu1 %964 }
 0x1bf   : > { %v1512_v47 = vpop.eup %1511 }
 0x1c0   : > { %v844_v50 = vmul.f32 %v1512_v47, %v842_v46 }
 0x1c2   : > { %v849_v51 = vmul.f32 %v847_v48, %v844_v50 }
 0x1c4   : > { %v850_v53 = vadd.f32 %v849_v51, %v774_v49 }
 0x1c6   : > { %v855_v54 = vadd.f32 %v853_v52, %v850_v53 }
 0x1c8   : > { %1341 = vmatpush3.msra.mxu1 %v855_v54 }
 0x1c9   : > { %1343 = vmatmul.mubr.msk.f32.vlgmr.msra.gmra.mrb[0].mxu1 %vm861_vm9, %v856_v29  ;;  %1345 = vmatprep.subr.mxu1 %v1733_v1 }
 0x1ca   : > { %1347 = vmatprep.mubr.msk.f32.mxu1 %vm1732_vm0, %v1733_v1 }
 0x230   : > { %v971_v26 = vpop.permute.xlu1 %970 }
 0x29c   : > { %v931_v57 = vpop.f32.mrb[0].mxu1 }
 0x29d   : > { %v932_v58 = vadd.f32 %v931_v57, %v859_v56  ;;  %v1344_v59 = vpop.f32.mrb[1].mxu1 }
 0x29f   : > { %v2118_v60 = vadd.f32 %v932_v58, %v2067_v38 }
 0x2a1   : > { %v936_v61 = vsel %vm550_vm4, %v2118_v60, 0.0 }
 0x2a2   : > { %v937_v62 = vrot.slane %v936_v61, 4 }
 0x2a4   : > { %v938_v63 = vadd.f32 %v937_v62, %v936_v61 }
 0x2a6   : > { %v939_v0 = vrot.slane %v938_v63, 2 }
 0x2a8   : > { %v940_v2 = vadd.f32 %v939_v0, %v938_v63  ;;  %v1083_v0 = vld [vmem:[#allocation8] sm:$0xff] }
 0x2aa   : > { %v941_v3 = vrot.slane %v940_v2, 1 }
 0x2ac   : > { %v942_v4 = vadd.f32 %v941_v3, %v940_v2  ;;  %v1086_v2 = vpop.permute.xlu0 %1085 }
 0x2ae   : > { %v944_v5 = vmul.f32 0.125, %v942_v4 }
 0x2b0   : > { %v945_v6 = vsub.f32 %v2118_v60, %v944_v5 }
 0x2b2   : > { %v946_v7 = vmul.f32 %v945_v6, %v945_v6 }
 0x2b4   : > { %v947_v9 = vsel %vm550_vm4, %v946_v7, 0.0 }
 0x2b5   : > { %v948_v31 = vrot.slane %v947_v9, 4 }
 0x2b7   : > { %v949_v10 = vadd.f32 %v948_v31, %v947_v9 }
 0x2b9   : > { %v950_v11 = vrot.slane %v949_v10, 2 }
 0x2bb   : > { %v951_v38 = vadd.f32 %v950_v11, %v949_v10 }
 0x2bd   : > { %v952_v13 = vrot.slane %v951_v38, 1 }
 0x2bf   : > { %v953_v15 = vadd.f32 %v952_v13, %v951_v38 }
 0x2c1   : > { %v954_v16 = vmul.f32 0.125, %v953_v15 }
 0x2c3   : > { %v955_v17 = vadd.f32 1e-05, %v954_v16 }
 0x2c5   : > { %1513 = vrsqrt.f32 %v955_v17 }
 0x2cf   : > { %v1514_v18 = vpop.eup %1513 }
 0x2d0   : > { %v957_v20 = vmul.f32 %v1514_v18, %v945_v6 }
 0x2d2   : > { %v962_v22 = vmul.f32 %v960_v19, %v957_v20 }
 0x2d4   : > { %v967_v23 = vadd.f32 %v965_v21, %v962_v22 }
 0x2d6   : > { %1346 = vmatpush3.msra.mxu1 %v967_v23 }
 0x2d7   : > { %1348 = vmatmul.mubr.msk.f32.vlgmr.msra.gmra.mrb[2].mxu1 %vm861_vm9, %v968_v24  ;;  %1350 = vmatprep.subr.mxu1 %v1733_v1 }
 0x2d8   : > { %1352 = vmatprep.mubr.msk.f32.mxu1 %vm1732_vm0, %v1733_v1 }
 0x3aa   : > { %v1042_v27 = vpop.f32.mrb[2].mxu1 }
 0x3ab   : > { %v1043_v8 = vadd.f32 %v1042_v27, %v971_v26  ;;  %v1349_v14 = vpop.f32.mrb[3].mxu1 }
 0x3ad   : > { %v1047_v28 = vmul.f32 0.70710677, %v1043_v8  ;;  %v1046_v61 = vmul.f32 0.5, %v1043_v8 }
 0x3af   : > { %v1048_v30 = vand.u32 2147483647, %v1047_v28  ;;  %vm1078_vm10 = vcmp.ge.f32.partialorder %v1047_v28, 0.0 }
 0x3b1   : > { %v1049_v32 = vmul.f32 0.5, %v1048_v30  ;;  %v1053_v46 = vsub.f32 0.0, %v1048_v30 }
 0x3b3   : > { %v1050_v33 = vadd.f32 1.0, %v1049_v32  ;;  %v1054_v49 = vmul.f32 %v1053_v46, %v1048_v30 }
 0x3b5   : > { %1515 = vrcp.f32 %v1050_v33  ;;  %v1318_v52 = vadd.f32 -1.2655122, %v1054_v49 }
 0x3bf   : > { %v1516_v35 = vpop.eup %1515 }
 0x3c0   : > { %v1056_v36 = vmul.f32 0.17087276, %v1516_v35 }
 0x3c2   : > { %v1057_v37 = vadd.f32 -0.82215226, %v1056_v36 }
 0x3c4   : > { %v1058_v39 = vmul.f32 %v1516_v35, %v1057_v37 }
 0x3c6   : > { %v1059_v40 = vadd.f32 1.4885159, %v1058_v39 }
 0x3c8   : > { %v1060_v41 = vmul.f32 %v1516_v35, %v1059_v40 }
 0x3ca   : > { %v1061_v1 = vadd.f32 -1.135204, %v1060_v41 }
 0x3cc   : > { %v1062_v43 = vmul.f32 %v1516_v35, %v1061_v1 }
 0x3ce   : > { %v1063_v34 = vadd.f32 0.27886808, %v1062_v43 }
 0x3d0   : > { %v1064_v42 = vmul.f32 %v1516_v35, %v1063_v34 }
 0x3d2   : > { %v1065_v12 = vadd.f32 -0.18628806, %v1064_v42 }
 0x3d4   : > { %v1066_v44 = vmul.f32 %v1516_v35, %v1065_v12 }
 0x3d6   : > { %v1067_v45 = vadd.f32 0.09678418, %v1066_v44 }
 0x3d8   : > { %v1068_v47 = vmul.f32 %v1516_v35, %v1067_v45 }
 0x3da   : > { %v1069_v48 = vadd.f32 0.37409195, %v1068_v47 }
 0x3dc   : > { %v1070_v50 = vmul.f32 %v1516_v35, %v1069_v48 }
 0x3de   : > { %v1071_v51 = vadd.f32 1.0000237, %v1070_v50 }
 0x3e0   : > { %v1072_v53 = vmul.f32 %v1516_v35, %v1071_v51 }
 0x3e2   : > { %v1073_v54 = vadd.f32 %v1318_v52, %v1072_v53 }
 0x3e4   : > { %v1074_v29 = vmul.f32 1.442695, %v1073_v54 }
 0x3e6   : > { %1517 = vpow2.f32 %v1074_v29 }
 0x3f0   : > { %v1518_v55 = vpop.eup %1517 }
 0x3f1   : > { %v1076_v56 = vmul.f32 %v1518_v55, %v1516_v35 }
 0x3f3   : > { %v1077_v57 = vsub.f32 1.0, %v1076_v56 }
 0x3f5   : > { %v1079_v58 = vsub.f32 0.0, %v1077_v57 }
 0x3f7   : > { %v1080_v59 = vsel %vm1078_vm10, %v1077_v57, %v1079_v58 }
 0x3f8   : > { %v1081_v62 = vadd.f32 1.0, %v1080_v59 }
 0x3fa   : > { %v1082_v63 = vmul.f32 %v1081_v62, %v1046_v61 }
 0x3fc   : > { %1351 = vmatpush3.msra.mxu1 %v1082_v63 }
 0x3fd   : > { %1353 = vmatmul.mubr.msk.f32.vlgmr.msra.gmra.mrb[4].mxu1 %vm861_vm9, %v1083_v0 }
 0x4d0   : > { %v1157_v3 = vpop.f32.mrb[4].mxu1 }
 0x4d1   : > { %v1158_v4 = vadd.f32 %v1157_v3, %v1086_v2  ;;  %v1354_v5 = vpop.f32.mrb[5].mxu1 }
 0x4d3   : > { %v1161_v6 = vadd.f32 %v1158_v4, %v2118_v60 }
 0x4d5   : > { %1162 = vst.msk [vmem:[%s422_s17] sm:$0xff] %vm550_vm4, %v1161_v6 }
 0x4d6   : > { %1646 = shalt.err (!%p1643_p4)
}
 0x4d7   : > { %s1647_s26 = scalar_lea.hbm %s2140_s23, 128  ;;  %s1651_s25 = scalar_lea.hbm %s2229_s20, 256 }
 0x4d8   : > { %p1648_p2 = scmp.ne.s32.totalorder %s2140_s23, %s1647_s26  ;;  %p1652_p12 = scmp.lt.u32.totalorder %s2140_s23, %s2229_s20 }
 0x4d9   : > { %p1653_p11 = scmp.lt.u32.totalorder %s1651_s25, %s1647_s26  ;;  %p1655_p6 = scmp.lt.u32.totalorder %s1647_s26, %s2140_s23 }
 0x4da   : > { %p1649_p8 = pnand %p1648_p2, %p1950_p10 }
 0x4db   : > { %p1654_p13 = por %p1653_p11, %p1652_p12 }
 0x4dc   : > { %p1650_p1 = pneg %p1649_p8 }
 0x4dd   : > { %p1656_p3 = por %p1655_p6, %p1654_p13 }
 0x4df   : > { %p1657_p5 = pnand %p1656_p3, %p1650_p1 }
 0x4e1   : > { %1660 = shalt.err (!%p1657_p5)
}
 0x4e2   : > { %1373 = dma.vmem_to_hbm [thread:$0]  (%p1950_p10), %s2142_s21, 128, %s2140_s23, %s1164_s12  }
 0x4e3 PF: > { %s2230_s19 = sld [smem:[#allocation15_spill]]  ;;  %s2231_s17 = sld [smem:[#allocation16_spill]] }
 0x4e4   : > { %p2233_p9 = scmp.ge.s32.totalorder %s1723_s14, 2 }
 0x4e9   : > { %s1190_s18 = sand.u32 1, %s2230_s19   ;;  %p2232_p7 = scmp.ne.s32.totalorder %s2231_s17, 0 }
 0x4ea   : > { %s1191_s27 = scalar_lea.sflag [#allocation4], %s1190_s18 }
 0x4eb   : > { %p1390_p0 = pnand %p2233_p9, %p2232_p7 }
 0x4ed   : > { %1698 = dma.done.wait (!%p1390_p0), %s1191_s27, 128  }
 0x4ee   : > { %1700 = vsyncadd (!%p1390_p0), %s1191_s27, 4294967168  ;;  %s27_s14 = sadd.s32 1, %s1723_s14   ;;  %s2234_s30 = smov %s1707_s10 }
 0x4ef   : > { %p24_p4 = scmp.ge.s32.totalorder %s27_s14, 4   ;;  %s2235_s10 = smov %s1711_s11 }
 0x4f0   : > { %s2236_s11 = smov %s1962_s9  ;;  %s2237_s12 = smov %s1719_s13 }
 0x4f1   : > { %s2238_s13 = smov %s2240_s15  ;;  %26 = sbr.rel (!%p24_p4) target bundleno = 13 (0xd), region = 117 }
 0x4f8   :  { %1196 = vsyncpa [#allocation3], 1 }
 0x4f9   :  { %1198 = vsyncpa [#allocation3 + $0x1], 1 }
 0x4fa   :  { %1199 = vsyncpa [#allocation6], 1 }
 0x4fb   :  { %1200 = vsyncpa [#allocation9], 1 }
 0x4fc   :  { %1201 = vsyncpa [#allocation4], 1 }
 0x4fd   :  { %1203 = vsyncpa [#allocation4 + $0x1], 1 }

</bundles_post_ra>
